<compile_context>
chip_gen: v6e
topology: v6e:2x2x1
jax: 0.10.0
libtpu: 0.0.40
codegen_flags: <defaults>
</compile_context>

<pallas_src>
import functools
import math

import jax
import jax.numpy as jnp
from jax.experimental import pallas as pl
from jax.experimental.pallas import tpu as pltpu

C_PAD = 128          # every channel dim is zero-padded to the 128-lane width
LEAKY_SLOPE = 0.1    # TODO(synk): TE_Module source not provided; slope assumed.


# ----------------------------------------------------------------------------
# Fused Pallas kernel: conv1 -> pool -> conv2 -> pool -> conv3 -> GAP -> fc
# (one grid step == one image; everything stays in VMEM)
# ----------------------------------------------------------------------------
def _fused_forward_kernel(p1_ref, w1_ref, b1_ref, w2_ref, b2_ref, w3_ref, b3_ref,
                          fcw_ref, fcb_ref,
                          logits_ref, feat_ref, atten_ref,
                          s1_ref, s2_ref, *, leaky_slope):
    f32 = jnp.float32
    bf16 = jnp.bfloat16

    def leaky(v):
        # LeakyReLU(slope) == max(x, slope*x) for 0 < slope < 1
        return jnp.maximum(v, leaky_slope * v)

    # ----------------- conv1: (256, 27) @ (27, 128) on the MXU -----------------
    a1 = jnp.dot(p1_ref[0], w1_ref[...], preferred_element_type=f32)   # (256,128)
    a1 = leaky(a1 + b1_ref[...])

    # --------- 2x2 max-pool (16x16 -> 8x8) into zero-padded s1 (10,10,128) -----
    # conv1 rows are (h, w) row-major: flat = 32*ho + 16*r + 2*wo + s
    a1r = a1.reshape(8, 32, C_PAD)                        # (ho, 16r+2wo+s, c)
    vmax = jnp.maximum(a1r[:, :16, :], a1r[:, 16:, :])    # r-max: (ho, 2wo+s, c)
    s1_ref[...] = jnp.zeros_like(s1_ref)                  # zero border (conv pad=1)
    for w in range(8):
        col = jnp.maximum(vmax[:, 2 * w:2 * w + 1, :],
                          vmax[:, 2 * w + 1:2 * w + 2, :])            # (8,1,128)
        s1_ref[1:9, 1 + w:2 + w, :] = col.astype(s1_ref.dtype)

    # --------- conv2: 9 shifted-slice matmuls on VMEM-resident input -----------
    a2 = jnp.zeros((64, C_PAD), f32)
    for di in range(3):
        for dj in range(3):
            patch = s1_ref[di:di + 8, dj:dj + 8, :].reshape(64, C_PAD)
            a2 = a2 + jnp.dot(patch, w2_ref[di * 3 + dj],
                              preferred_element_type=f32)
    a2 = leaky(a2 + b2_ref[...])

    # --------- 2x2 max-pool (8x8 -> 4x4) into zero-padded s2 (6,6,128) ---------
    a2r = a2.reshape(4, 16, C_PAD)                        # (ho, 8r+2wo+s, c)
    vmax2 = jnp.maximum(a2r[:, :8, :], a2r[:, 8:, :])     # (ho, 2wo+s, c)
    s2_ref[...] = jnp.zeros_like(s2_ref)
    for w in range(4):
        col = jnp.maximum(vmax2[:, 2 * w:2 * w + 1, :],
                          vmax2[:, 2 * w + 1:2 * w + 2, :])           # (4,1,128)
        s2_ref[1:5, 1 + w:2 + w, :] = col.astype(s2_ref.dtype)

    # --------- conv3 (per output row) + fused GAP + fc epilogue ----------------
    feat_sum = jnp.zeros((1, C_PAD), f32)
    for h in range(4):
        row = jnp.zeros((4, C_PAD), f32)
        for di in range(3):
            for dj in range(3):
                patch = s2_ref[h + di, dj:dj + 4, :]                  # (4,128)
                row = row + jnp.dot(patch, w3_ref[di * 3 + dj],
                                    preferred_element_type=f32)
        row = leaky(row + b3_ref[...])
        atten_ref[0, 4 * h:4 * h + 4, :] = row.astype(atten_ref.dtype)
        feat_sum = feat_sum + jnp.sum(row, axis=0, keepdims=True)

    feat = feat_sum * (1.0 / 16.0)                                    # GAP, (1,128)
    feat_ref[0] = feat.astype(feat_ref.dtype)

    logits = jnp.dot(feat.astype(bf16), fcw_ref[...],
                     preferred_element_type=f32) + fcb_ref[...]
    logits_ref[0] = logits.astype(logits_ref.dtype)


def _fused_forward(p1, w1, b1, w2, b2, w3, b3, fcw, fcb, *, leaky_slope=LEAKY_SLOPE):
    N, M1, K1 = p1.shape
    kernel = functools.partial(_fused_forward_kernel, leaky_slope=leaky_slope)
    out_shape = (
        jax.ShapeDtypeStruct((N, 1, C_PAD), jnp.float32),    # logits (padded lanes)
        jax.ShapeDtypeStruct((N, 1, C_PAD), jnp.float32),    # GAP features
        jax.ShapeDtypeStruct((N, 16, C_PAD), jnp.float32),   # conv3 map (4*4 rows)
    )
    grid_spec = pltpu.PrefetchScalarGridSpec(
        num_scalar_prefetch=0,
        grid=(N,),
        in_specs=[
            pl.BlockSpec((1, M1, K1), lambda n: (n, 0, 0)),   # conv1 patches
            pl.BlockSpec(w1.shape, lambda n: (0, 0)),
            pl.BlockSpec(b1.shape, lambda n: (0, 0)),
            pl.BlockSpec(w2.shape, lambda n: (0, 0, 0)),
            pl.BlockSpec(b2.shape, lambda n: (0, 0)),
            pl.BlockSpec(w3.shape, lambda n: (0, 0, 0)),
            pl.BlockSpec(b3.shape, lambda n: (0, 0)),
            pl.BlockSpec(fcw.shape, lambda n: (0, 0)),
            pl.BlockSpec(fcb.shape, lambda n: (0, 0)),
        ],
        out_specs=[
            pl.BlockSpec((1, 1, C_PAD), lambda n: (n, 0, 0)),
            pl.BlockSpec((1, 1, C_PAD), lambda n: (n, 0, 0)),
            pl.BlockSpec((1, 16, C_PAD), lambda n: (n, 0, 0)),
        ],
        scratch_shapes=[
            pltpu.VMEM((10, 10, C_PAD), jnp.bfloat16),   # zero-padded pooled conv1
            pltpu.VMEM((6, 6, C_PAD), jnp.bfloat16),     # zero-padded pooled conv2
        ],
    )
    return pl.pallas_call(
        kernel,
        out_shape=out_shape,
        grid_spec=grid_spec,
        compiler_params=pltpu.CompilerParams(
            dimension_semantics=("parallel",),        # batch splits across TCs (v7x)
            vmem_limit_bytes=32 * 1024 * 1024,
        ),
    )(p1, w1, b1, w2, b2, w3, b3, fcw, fcb)


# ----------------------------------------------------------------------------
# Wrapper-side glue: conv1 im2col (tiny), parameter packing (pad/cast, once)
# ----------------------------------------------------------------------------
def im2col(x, kh, kw, pad):
    """NCHW -> patches (N, Ho*Wo, C*kh*kw), K ordering (C, kh, kw) as in PyTorch."""
    N, C, H, W = x.shape
    xp = jnp.pad(x, ((0, 0), (0, 0), (pad, pad), (pad, pad)))
    Ho = H + 2 * pad - kh + 1
    Wo = W + 2 * pad - kw + 1
    cols = [xp[:, :, i:i + Ho, j:j + Wo] for i in range(kh) for j in range(kw)]
    p = jnp.stack(cols, axis=2)                          # (N, C, kh*kw, Ho, Wo)
    p = p.reshape(N, C * kh * kw, Ho, Wo)
    p = p.transpose(0, 2, 3, 1).reshape(N, Ho * Wo, C * kh * kw)
    return p, Ho, Wo


def _pad_to(x, target, axis):
    pad = [(0, 0)] * x.ndim
    pad[axis] = (0, target - x.shape[axis])
    return jnp.pad(x, pad)


def pack_params(params):
    """Pad channels to 128, per-tap layout, bf16 MXU operands / f32 biases."""
    w1, b1 = params["conv1"]
    w2, b2 = params["conv2"]
    w3, b3 = params["conv3"]
    c1, c2, c3 = w1.shape[0], w2.shape[0], w3.shape[0]

    w1k = _pad_to(w1.reshape(c1, -1).T, C_PAD, 1).astype(jnp.bfloat16)    # (27,128)
    b1k = _pad_to(b1, C_PAD, 0).reshape(1, C_PAD).astype(jnp.float32)

    w2t = jnp.transpose(w2, (2, 3, 1, 0)).reshape(9, w2.shape[1], c2)     # (9,cin,cout)
    w2k = _pad_to(_pad_to(w2t, C_PAD, 1), C_PAD, 2).astype(jnp.bfloat16)  # (9,128,128)
    b2k = _pad_to(b2, C_PAD, 0).reshape(1, C_PAD).astype(jnp.float32)

    w3t = jnp.transpose(w3, (2, 3, 1, 0)).reshape(9, w3.shape[1], c3)
    w3k = _pad_to(_pad_to(w3t, C_PAD, 1), C_PAD, 2).astype(jnp.bfloat16)  # (9,128,128)
    b3k = _pad_to(b3, C_PAD, 0).reshape(1, C_PAD).astype(jnp.float32)

    fck = _pad_to(params["fc_w"].T, C_PAD, 1).astype(jnp.bfloat16)        # (128,128)
    fcbk = _pad_to(params["fc_b"], C_PAD, 0).reshape(1, C_PAD).astype(jnp.float32)

    return dict(w1=w1k, b1=b1k, w2=w2k, b2=b2k, w3=w3k, b3=b3k, fcw=fck, fcb=fcbk)


# ----------------------------------------------------------------------------
# Parameters (deterministic, in-script; PyTorch-style layouts)
# ----------------------------------------------------------------------------
def init_params(key, num_classes=10, indim=128):
    ks = jax.random.split(key, 4)

    def conv_init(k, cout, cin, kh, kw):
        fan_in = cin * kh * kw
        bound = 1.0 / math.sqrt(fan_in)
        kw_, kb_ = jax.random.split(k)
        w = jax.random.uniform(kw_, (cout, cin, kh, kw), jnp.float32, -bound, bound)
        b = jax.random.uniform(kb_, (cout,), jnp.float32, -bound, bound)
        return w, b

    params = {
        "conv1": conv_init(ks[0], 32, 3, 3, 3),
        "conv2": conv_init(ks[1], 64, 32, 3, 3),
        "conv3": conv_init(ks[2], indim, 64, 3, 3),
    }
    # fc = nn.Linear(indim, num_classes); bias zeroed in Classifier_Mixmatch.__init__
    fbound = 1.0 / math.sqrt(indim)
    params["fc_w"] = jax.random.uniform(ks[3], (num_classes, indim), jnp.float32,
                                        -fbound, fbound)
    params["fc_b"] = jnp.zeros((num_classes,), jnp.float32)
    return params


# ----------------------------------------------------------------------------
# Forward pass (Classifier_Mixmatch.forward)
# ----------------------------------------------------------------------------
def classifier_mixmatch_forward(params, x, out_feat_keys=None):
    # TODO(synk): TE_Module source was not provided; a representative 3-stage
    # conv backbone (_num_stages=3, global average pool on conv3) that yields
    # indim=128 features is used, as the classifier's __init__ implies.
    N = x.shape[0]
    packed = pack_params(params)
    patches1, Ho, Wo = im2col(x.astype(jnp.float32), 3, 3, 1)     # (N, 256, 27)
    assert (Ho, Wo) == (16, 16), "fused kernel is specialized to 16x16 inputs"
    p1 = patches1.astype(jnp.bfloat16)

    logits_p, feat3, atten3 = _fused_forward(
        p1, packed["w1"], packed["b1"], packed["w2"], packed["b2"],
        packed["w3"], packed["b3"], packed["fcw"], packed["fcb"])

    if out_feat_keys is None:
        num_classes = params["fc_w"].shape[0]
        return logits_p[:, 0, :num_classes]                       # self.fc(x1)
    feat = feat3[:, 0, :]                                          # (N, 128)
    atten = atten3.reshape(N, 4, 4, C_PAD).transpose(0, 3, 1, 2)   # (N,128,4,4)
    return feat, atten


# ----------------------------------------------------------------------------
if __name__ == "__main__":
    key = jax.random.PRNGKey(0)
    pkey, xkey = jax.random.split(key)
    params = init_params(pkey)

    # small NCHW input consistent with an image classifier (CIFAR-like channels)
    x = jax.random.normal(xkey, (2, 3, 16, 16), jnp.float32)

    logits = classifier_mixmatch_forward(params, x, out_feat_keys=None)
    logits = jax.block_until_ready(logits)
    assert logits.shape == (2, 10) and logits.dtype == jnp.float32

    print("KERNEL_OK")
</pallas_src>

<mosaic_0001>
module attributes {stable_mosaic.version = 11 : i64} {
  func.func @_fused_forward_kernel(%arg0: i32, %arg1: memref<1x256x27xbf16, #tpu.memory_space<vmem>>, %arg2: memref<27x128xbf16, #tpu.memory_space<vmem>>, %arg3: memref<1x128xf32, #tpu.memory_space<vmem>>, %arg4: memref<9x128x128xbf16, #tpu.memory_space<vmem>>, %arg5: memref<1x128xf32, #tpu.memory_space<vmem>>, %arg6: memref<9x128x128xbf16, #tpu.memory_space<vmem>>, %arg7: memref<1x128xf32, #tpu.memory_space<vmem>>, %arg8: memref<128x128xbf16, #tpu.memory_space<vmem>>, %arg9: memref<1x128xf32, #tpu.memory_space<vmem>>, %arg10: memref<1x1x128xf32, #tpu.memory_space<vmem>>, %arg11: memref<1x1x128xf32, #tpu.memory_space<vmem>>, %arg12: memref<1x16x128xf32, #tpu.memory_space<vmem>>, %arg13: memref<10x10x128xbf16, #tpu.memory_space<vmem>>, %arg14: memref<6x6x128xbf16, #tpu.memory_space<vmem>>) attributes {dimension_semantics = [#tpu.dimension_semantics<parallel>], iteration_bounds = array<i64: 2>, scalar_prefetch = 0 : i64, scratch_operands = 2 : i64, tpu.core_type = #tpu.core_type<tc>, window_params = [{transform_indices = @transform_0, window_bounds = array<i64: 1, 256, 27>}, {pipeline_mode = #tpu.pipeline_mode<synchronous>, transform_indices = @transform_1, window_bounds = array<i64: 27, 128>}, {pipeline_mode = #tpu.pipeline_mode<synchronous>, transform_indices = @transform_2, window_bounds = array<i64: 1, 128>}, {pipeline_mode = #tpu.pipeline_mode<synchronous>, transform_indices = @transform_3, window_bounds = array<i64: 9, 128, 128>}, {pipeline_mode = #tpu.pipeline_mode<synchronous>, transform_indices = @transform_4, window_bounds = array<i64: 1, 128>}, {pipeline_mode = #tpu.pipeline_mode<synchronous>, transform_indices = @transform_5, window_bounds = array<i64: 9, 128, 128>}, {pipeline_mode = #tpu.pipeline_mode<synchronous>, transform_indices = @transform_6, window_bounds = array<i64: 1, 128>}, {pipeline_mode = #tpu.pipeline_mode<synchronous>, transform_indices = @transform_7, window_bounds = array<i64: 128, 128>}, {pipeline_mode = #tpu.pipeline_mode<synchronous>, transform_indices = @transform_8, window_bounds = array<i64: 1, 128>}, {transform_indices = @transform_9, window_bounds = array<i64: 1, 1, 128>}, {transform_indices = @transform_10, window_bounds = array<i64: 1, 1, 128>}, {transform_indices = @transform_11, window_bounds = array<i64: 1, 16, 128>}]} {
    %c0 = arith.constant 0 : index
    %c0_0 = arith.constant 0 : index
    %c0_1 = arith.constant 0 : index
    %0 = vector.load %arg1[%c0, %c0_0, %c0_1] : memref<1x256x27xbf16, #tpu.memory_space<vmem>>, vector<1x256x27xbf16>
    %1 = vector.shape_cast %0 : vector<1x256x27xbf16> to vector<256x27xbf16>
    %c0_2 = arith.constant 0 : index
    %c0_3 = arith.constant 0 : index
    %2 = vector.load %arg2[%c0_2, %c0_3] : memref<27x128xbf16, #tpu.memory_space<vmem>>, vector<27x128xbf16>
    %cst = arith.constant dense<0.000000e+00> : vector<256x128xf32>
    %3 = tpu.matmul %1, %2, %cst {dimension_numbers = #tpu.dot_dimension_numbers<[1], [0], [0], [1], [0, 0, 1, 1], [], []>} : vector<256x27xbf16>, vector<27x128xbf16>, vector<256x128xf32> -> vector<256x128xf32>
    %c0_4 = arith.constant 0 : index
    %c0_5 = arith.constant 0 : index
    %4 = vector.load %arg3[%c0_4, %c0_5] : memref<1x128xf32, #tpu.memory_space<vmem>>, vector<1x128xf32>
    %5 = vector.broadcast %4 : vector<1x128xf32> to vector<256x128xf32>
    %6 = arith.addf %3, %5 : vector<256x128xf32>
    %cst_6 = arith.constant 1.000000e-01 : f32
    %7 = vector.broadcast %cst_6 : f32 to vector<256x128xf32>
    %8 = arith.mulf %7, %6 : vector<256x128xf32>
    %9 = arith.maximumf %6, %8 : vector<256x128xf32>
    %10 = vector.shape_cast %9 : vector<256x128xf32> to vector<8x32x128xf32>
    %11 = vector.extract_strided_slice %10 {offsets = [0, 0, 0], sizes = [8, 16, 128], strides = [1, 1, 1]} : vector<8x32x128xf32> to vector<8x16x128xf32>
    %12 = vector.extract_strided_slice %10 {offsets = [0, 16, 0], sizes = [8, 16, 128], strides = [1, 1, 1]} : vector<8x32x128xf32> to vector<8x16x128xf32>
    %13 = arith.maximumf %11, %12 : vector<8x16x128xf32>
    %cst_7 = arith.constant 0.000000e+00 : bf16
    %14 = vector.broadcast %cst_7 : bf16 to vector<10x10x128xbf16>
    %c0_8 = arith.constant 0 : index
    %c0_9 = arith.constant 0 : index
    %c0_10 = arith.constant 0 : index
    %15 = vector.load %arg13[%c0_8, %c0_9, %c0_10] : memref<10x10x128xbf16, #tpu.memory_space<vmem>>, vector<10x10x128xbf16>
    tpu.vector_store %arg13[%c0_8, %c0_9, %c0_10], %14 {strides = array<i32>} : memref<10x10x128xbf16, #tpu.memory_space<vmem>>, vector<10x10x128xbf16>,
    %16 = vector.extract_strided_slice %13 {offsets = [0, 0, 0], sizes = [8, 1, 128], strides = [1, 1, 1]} : vector<8x16x128xf32> to vector<8x1x128xf32>
    %17 = vector.extract_strided_slice %13 {offsets = [0, 1, 0], sizes = [8, 1, 128], strides = [1, 1, 1]} : vector<8x16x128xf32> to vector<8x1x128xf32>
    %18 = arith.maximumf %16, %17 : vector<8x1x128xf32>
    %19 = arith.truncf %18 : vector<8x1x128xf32> to vector<8x1x128xbf16>
    %c1 = arith.constant 1 : index
    %c1_11 = arith.constant 1 : index
    %c0_12 = arith.constant 0 : index
    %20 = vector.load %arg13[%c1, %c1_11, %c0_12] : memref<10x10x128xbf16, #tpu.memory_space<vmem>>, vector<8x1x128xbf16>
    tpu.vector_store %arg13[%c1, %c1_11, %c0_12], %19 {strides = array<i32>} : memref<10x10x128xbf16, #tpu.memory_space<vmem>>, vector<8x1x128xbf16>,
    %21 = vector.extract_strided_slice %13 {offsets = [0, 2, 0], sizes = [8, 1, 128], strides = [1, 1, 1]} : vector<8x16x128xf32> to vector<8x1x128xf32>
    %22 = vector.extract_strided_slice %13 {offsets = [0, 3, 0], sizes = [8, 1, 128], strides = [1, 1, 1]} : vector<8x16x128xf32> to vector<8x1x128xf32>
    %23 = arith.maximumf %21, %22 : vector<8x1x128xf32>
    %24 = arith.truncf %23 : vector<8x1x128xf32> to vector<8x1x128xbf16>
    %c1_13 = arith.constant 1 : index
    %c2 = arith.constant 2 : index
    %c0_14 = arith.constant 0 : index
    %25 = vector.load %arg13[%c1_13, %c2, %c0_14] : memref<10x10x128xbf16, #tpu.memory_space<vmem>>, vector<8x1x128xbf16>
    tpu.vector_store %arg13[%c1_13, %c2, %c0_14], %24 {strides = array<i32>} : memref<10x10x128xbf16, #tpu.memory_space<vmem>>, vector<8x1x128xbf16>,
    %26 = vector.extract_strided_slice %13 {offsets = [0, 4, 0], sizes = [8, 1, 128], strides = [1, 1, 1]} : vector<8x16x128xf32> to vector<8x1x128xf32>
    %27 = vector.extract_strided_slice %13 {offsets = [0, 5, 0], sizes = [8, 1, 128], strides = [1, 1, 1]} : vector<8x16x128xf32> to vector<8x1x128xf32>
    %28 = arith.maximumf %26, %27 : vector<8x1x128xf32>
    %29 = arith.truncf %28 : vector<8x1x128xf32> to vector<8x1x128xbf16>
    %c1_15 = arith.constant 1 : index
    %c3 = arith.constant 3 : index
    %c0_16 = arith.constant 0 : index
    %30 = vector.load %arg13[%c1_15, %c3, %c0_16] : memref<10x10x128xbf16, #tpu.memory_space<vmem>>, vector<8x1x128xbf16>
    tpu.vector_store %arg13[%c1_15, %c3, %c0_16], %29 {strides = array<i32>} : memref<10x10x128xbf16, #tpu.memory_space<vmem>>, vector<8x1x128xbf16>,
    %31 = vector.extract_strided_slice %13 {offsets = [0, 6, 0], sizes = [8, 1, 128], strides = [1, 1, 1]} : vector<8x16x128xf32> to vector<8x1x128xf32>
    %32 = vector.extract_strided_slice %13 {offsets = [0, 7, 0], sizes = [8, 1, 128], strides = [1, 1, 1]} : vector<8x16x128xf32> to vector<8x1x128xf32>
    %33 = arith.maximumf %31, %32 : vector<8x1x128xf32>
    %34 = arith.truncf %33 : vector<8x1x128xf32> to vector<8x1x128xbf16>
    %c1_17 = arith.constant 1 : index
    %c4 = arith.constant 4 : index
    %c0_18 = arith.constant 0 : index
    %35 = vector.load %arg13[%c1_17, %c4, %c0_18] : memref<10x10x128xbf16, #tpu.memory_space<vmem>>, vector<8x1x128xbf16>
    tpu.vector_store %arg13[%c1_17, %c4, %c0_18], %34 {strides = array<i32>} : memref<10x10x128xbf16, #tpu.memory_space<vmem>>, vector<8x1x128xbf16>,
    %36 = vector.extract_strided_slice %13 {offsets = [0, 8, 0], sizes = [8, 1, 128], strides = [1, 1, 1]} : vector<8x16x128xf32> to vector<8x1x128xf32>
    %37 = vector.extract_strided_slice %13 {offsets = [0, 9, 0], sizes = [8, 1, 128], strides = [1, 1, 1]} : vector<8x16x128xf32> to vector<8x1x128xf32>
    %38 = arith.maximumf %36, %37 : vector<8x1x128xf32>
    %39 = arith.truncf %38 : vector<8x1x128xf32> to vector<8x1x128xbf16>
    %c1_19 = arith.constant 1 : index
    %c5 = arith.constant 5 : index
    %c0_20 = arith.constant 0 : index
    %40 = vector.load %arg13[%c1_19, %c5, %c0_20] : memref<10x10x128xbf16, #tpu.memory_space<vmem>>, vector<8x1x128xbf16>
    tpu.vector_store %arg13[%c1_19, %c5, %c0_20], %39 {strides = array<i32>} : memref<10x10x128xbf16, #tpu.memory_space<vmem>>, vector<8x1x128xbf16>,
    %41 = vector.extract_strided_slice %13 {offsets = [0, 10, 0], sizes = [8, 1, 128], strides = [1, 1, 1]} : vector<8x16x128xf32> to vector<8x1x128xf32>
    %42 = vector.extract_strided_slice %13 {offsets = [0, 11, 0], sizes = [8, 1, 128], strides = [1, 1, 1]} : vector<8x16x128xf32> to vector<8x1x128xf32>
    %43 = arith.maximumf %41, %42 : vector<8x1x128xf32>
    %44 = arith.truncf %43 : vector<8x1x128xf32> to vector<8x1x128xbf16>
    %c1_21 = arith.constant 1 : index
    %c6 = arith.constant 6 : index
    %c0_22 = arith.constant 0 : index
    %45 = vector.load %arg13[%c1_21, %c6, %c0_22] : memref<10x10x128xbf16, #tpu.memory_space<vmem>>, vector<8x1x128xbf16>
    tpu.vector_store %arg13[%c1_21, %c6, %c0_22], %44 {strides = array<i32>} : memref<10x10x128xbf16, #tpu.memory_space<vmem>>, vector<8x1x128xbf16>,
    %46 = vector.extract_strided_slice %13 {offsets = [0, 12, 0], sizes = [8, 1, 128], strides = [1, 1, 1]} : vector<8x16x128xf32> to vector<8x1x128xf32>
    %47 = vector.extract_strided_slice %13 {offsets = [0, 13, 0], sizes = [8, 1, 128], strides = [1, 1, 1]} : vector<8x16x128xf32> to vector<8x1x128xf32>
    %48 = arith.maximumf %46, %47 : vector<8x1x128xf32>
    %49 = arith.truncf %48 : vector<8x1x128xf32> to vector<8x1x128xbf16>
    %c1_23 = arith.constant 1 : index
    %c7 = arith.constant 7 : index
    %c0_24 = arith.constant 0 : index
    %50 = vector.load %arg13[%c1_23, %c7, %c0_24] : memref<10x10x128xbf16, #tpu.memory_space<vmem>>, vector<8x1x128xbf16>
    tpu.vector_store %arg13[%c1_23, %c7, %c0_24], %49 {strides = array<i32>} : memref<10x10x128xbf16, #tpu.memory_space<vmem>>, vector<8x1x128xbf16>,
    %51 = vector.extract_strided_slice %13 {offsets = [0, 14, 0], sizes = [8, 1, 128], strides = [1, 1, 1]} : vector<8x16x128xf32> to vector<8x1x128xf32>
    %52 = vector.extract_strided_slice %13 {offsets = [0, 15, 0], sizes = [8, 1, 128], strides = [1, 1, 1]} : vector<8x16x128xf32> to vector<8x1x128xf32>
    %53 = arith.maximumf %51, %52 : vector<8x1x128xf32>
    %54 = arith.truncf %53 : vector<8x1x128xf32> to vector<8x1x128xbf16>
    %c1_25 = arith.constant 1 : index
    %c8 = arith.constant 8 : index
    %c0_26 = arith.constant 0 : index
    %55 = vector.load %arg13[%c1_25, %c8, %c0_26] : memref<10x10x128xbf16, #tpu.memory_space<vmem>>, vector<8x1x128xbf16>
    tpu.vector_store %arg13[%c1_25, %c8, %c0_26], %54 {strides = array<i32>} : memref<10x10x128xbf16, #tpu.memory_space<vmem>>, vector<8x1x128xbf16>,
    %cst_27 = arith.constant 0.000000e+00 : f32
    %56 = vector.broadcast %cst_27 : f32 to vector<64x128xf32>
    %c0_28 = arith.constant 0 : index
    %c0_29 = arith.constant 0 : index
    %c0_30 = arith.constant 0 : index
    %57 = vector.load %arg13[%c0_28, %c0_29, %c0_30] : memref<10x10x128xbf16, #tpu.memory_space<vmem>>, vector<8x8x128xbf16>
    %58 = vector.shape_cast %57 : vector<8x8x128xbf16> to vector<64x128xbf16>
    %c0_31 = arith.constant 0 : index
    %c0_32 = arith.constant 0 : index
    %c0_33 = arith.constant 0 : index
    %59 = vector.load %arg4[%c0_31, %c0_32, %c0_33] : memref<9x128x128xbf16, #tpu.memory_space<vmem>>, vector<1x128x128xbf16>
    %60 = vector.shape_cast %59 : vector<1x128x128xbf16> to vector<128x128xbf16>
    %cst_34 = arith.constant dense<0.000000e+00> : vector<64x128xf32>
    %61 = tpu.matmul %58, %60, %cst_34 {dimension_numbers = #tpu.dot_dimension_numbers<[1], [0], [0], [1], [0, 0, 1, 1], [], []>} : vector<64x128xbf16>, vector<128x128xbf16>, vector<64x128xf32> -> vector<64x128xf32>
    %62 = arith.addf %56, %61 : vector<64x128xf32>
    %c0_35 = arith.constant 0 : index
    %c1_36 = arith.constant 1 : index
    %c0_37 = arith.constant 0 : index
    %63 = vector.load %arg13[%c0_35, %c1_36, %c0_37] : memref<10x10x128xbf16, #tpu.memory_space<vmem>>, vector<8x8x128xbf16>
    %64 = vector.shape_cast %63 : vector<8x8x128xbf16> to vector<64x128xbf16>
    %c1_38 = arith.constant 1 : index
    %c0_39 = arith.constant 0 : index
    %c0_40 = arith.constant 0 : index
    %65 = vector.load %arg4[%c1_38, %c0_39, %c0_40] : memref<9x128x128xbf16, #tpu.memory_space<vmem>>, vector<1x128x128xbf16>
    %66 = vector.shape_cast %65 : vector<1x128x128xbf16> to vector<128x128xbf16>
    %cst_41 = arith.constant dense<0.000000e+00> : vector<64x128xf32>
    %67 = tpu.matmul %64, %66, %cst_41 {dimension_numbers = #tpu.dot_dimension_numbers<[1], [0], [0], [1], [0, 0, 1, 1], [], []>} : vector<64x128xbf16>, vector<128x128xbf16>, vector<64x128xf32> -> vector<64x128xf32>
    %68 = arith.addf %62, %67 : vector<64x128xf32>
    %c0_42 = arith.constant 0 : index
    %c2_43 = arith.constant 2 : index
    %c0_44 = arith.constant 0 : index
    %69 = vector.load %arg13[%c0_42, %c2_43, %c0_44] : memref<10x10x128xbf16, #tpu.memory_space<vmem>>, vector<8x8x128xbf16>
    %70 = vector.shape_cast %69 : vector<8x8x128xbf16> to vector<64x128xbf16>
    %c2_45 = arith.constant 2 : index
    %c0_46 = arith.constant 0 : index
    %c0_47 = arith.constant 0 : index
    %71 = vector.load %arg4[%c2_45, %c0_46, %c0_47] : memref<9x128x128xbf16, #tpu.memory_space<vmem>>, vector<1x128x128xbf16>
    %72 = vector.shape_cast %71 : vector<1x128x128xbf16> to vector<128x128xbf16>
    %cst_48 = arith.constant dense<0.000000e+00> : vector<64x128xf32>
    %73 = tpu.matmul %70, %72, %cst_48 {dimension_numbers = #tpu.dot_dimension_numbers<[1], [0], [0], [1], [0, 0, 1, 1], [], []>} : vector<64x128xbf16>, vector<128x128xbf16>, vector<64x128xf32> -> vector<64x128xf32>
    %74 = arith.addf %68, %73 : vector<64x128xf32>
    %c1_49 = arith.constant 1 : index
    %c0_50 = arith.constant 0 : index
    %c0_51 = arith.constant 0 : index
    %75 = vector.load %arg13[%c1_49, %c0_50, %c0_51] : memref<10x10x128xbf16, #tpu.memory_space<vmem>>, vector<8x8x128xbf16>
    %76 = vector.shape_cast %75 : vector<8x8x128xbf16> to vector<64x128xbf16>
    %c3_52 = arith.constant 3 : index
    %c0_53 = arith.constant 0 : index
    %c0_54 = arith.constant 0 : index
    %77 = vector.load %arg4[%c3_52, %c0_53, %c0_54] : memref<9x128x128xbf16, #tpu.memory_space<vmem>>, vector<1x128x128xbf16>
    %78 = vector.shape_cast %77 : vector<1x128x128xbf16> to vector<128x128xbf16>
    %cst_55 = arith.constant dense<0.000000e+00> : vector<64x128xf32>
    %79 = tpu.matmul %76, %78, %cst_55 {dimension_numbers = #tpu.dot_dimension_numbers<[1], [0], [0], [1], [0, 0, 1, 1], [], []>} : vector<64x128xbf16>, vector<128x128xbf16>, vector<64x128xf32> -> vector<64x128xf32>
    %80 = arith.addf %74, %79 : vector<64x128xf32>
    %c1_56 = arith.constant 1 : index
    %c1_57 = arith.constant 1 : index
    %c0_58 = arith.constant 0 : index
    %81 = vector.load %arg13[%c1_56, %c1_57, %c0_58] : memref<10x10x128xbf16, #tpu.memory_space<vmem>>, vector<8x8x128xbf16>
    %82 = vector.shape_cast %81 : vector<8x8x128xbf16> to vector<64x128xbf16>
    %c4_59 = arith.constant 4 : index
    %c0_60 = arith.constant 0 : index
    %c0_61 = arith.constant 0 : index
    %83 = vector.load %arg4[%c4_59, %c0_60, %c0_61] : memref<9x128x128xbf16, #tpu.memory_space<vmem>>, vector<1x128x128xbf16>
    %84 = vector.shape_cast %83 : vector<1x128x128xbf16> to vector<128x128xbf16>
    %cst_62 = arith.constant dense<0.000000e+00> : vector<64x128xf32>
    %85 = tpu.matmul %82, %84, %cst_62 {dimension_numbers = #tpu.dot_dimension_numbers<[1], [0], [0], [1], [0, 0, 1, 1], [], []>} : vector<64x128xbf16>, vector<128x128xbf16>, vector<64x128xf32> -> vector<64x128xf32>
    %86 = arith.addf %80, %85 : vector<64x128xf32>
    %c1_63 = arith.constant 1 : index
    %c2_64 = arith.constant 2 : index
    %c0_65 = arith.constant 0 : index
    %87 = vector.load %arg13[%c1_63, %c2_64, %c0_65] : memref<10x10x128xbf16, #tpu.memory_space<vmem>>, vector<8x8x128xbf16>
    %88 = vector.shape_cast %87 : vector<8x8x128xbf16> to vector<64x128xbf16>
    %c5_66 = arith.constant 5 : index
    %c0_67 = arith.constant 0 : index
    %c0_68 = arith.constant 0 : index
    %89 = vector.load %arg4[%c5_66, %c0_67, %c0_68] : memref<9x128x128xbf16, #tpu.memory_space<vmem>>, vector<1x128x128xbf16>
    %90 = vector.shape_cast %89 : vector<1x128x128xbf16> to vector<128x128xbf16>
    %cst_69 = arith.constant dense<0.000000e+00> : vector<64x128xf32>
    %91 = tpu.matmul %88, %90, %cst_69 {dimension_numbers = #tpu.dot_dimension_numbers<[1], [0], [0], [1], [0, 0, 1, 1], [], []>} : vector<64x128xbf16>, vector<128x128xbf16>, vector<64x128xf32> -> vector<64x128xf32>
    %92 = arith.addf %86, %91 : vector<64x128xf32>
    %c2_70 = arith.constant 2 : index
    %c0_71 = arith.constant 0 : index
    %c0_72 = arith.constant 0 : index
    %93 = vector.load %arg13[%c2_70, %c0_71, %c0_72] : memref<10x10x128xbf16, #tpu.memory_space<vmem>>, vector<8x8x128xbf16>
    %94 = vector.shape_cast %93 : vector<8x8x128xbf16> to vector<64x128xbf16>
    %c6_73 = arith.constant 6 : index
    %c0_74 = arith.constant 0 : index
    %c0_75 = arith.constant 0 : index
    %95 = vector.load %arg4[%c6_73, %c0_74, %c0_75] : memref<9x128x128xbf16, #tpu.memory_space<vmem>>, vector<1x128x128xbf16>
    %96 = vector.shape_cast %95 : vector<1x128x128xbf16> to vector<128x128xbf16>
    %cst_76 = arith.constant dense<0.000000e+00> : vector<64x128xf32>
    %97 = tpu.matmul %94, %96, %cst_76 {dimension_numbers = #tpu.dot_dimension_numbers<[1], [0], [0], [1], [0, 0, 1, 1], [], []>} : vector<64x128xbf16>, vector<128x128xbf16>, vector<64x128xf32> -> vector<64x128xf32>
    %98 = arith.addf %92, %97 : vector<64x128xf32>
    %c2_77 = arith.constant 2 : index
    %c1_78 = arith.constant 1 : index
    %c0_79 = arith.constant 0 : index
    %99 = vector.load %arg13[%c2_77, %c1_78, %c0_79] : memref<10x10x128xbf16, #tpu.memory_space<vmem>>, vector<8x8x128xbf16>
    %100 = vector.shape_cast %99 : vector<8x8x128xbf16> to vector<64x128xbf16>
    %c7_80 = arith.constant 7 : index
    %c0_81 = arith.constant 0 : index
    %c0_82 = arith.constant 0 : index
    %101 = vector.load %arg4[%c7_80, %c0_81, %c0_82] : memref<9x128x128xbf16, #tpu.memory_space<vmem>>, vector<1x128x128xbf16>
    %102 = vector.shape_cast %101 : vector<1x128x128xbf16> to vector<128x128xbf16>
    %cst_83 = arith.constant dense<0.000000e+00> : vector<64x128xf32>
    %103 = tpu.matmul %100, %102, %cst_83 {dimension_numbers = #tpu.dot_dimension_numbers<[1], [0], [0], [1], [0, 0, 1, 1], [], []>} : vector<64x128xbf16>, vector<128x128xbf16>, vector<64x128xf32> -> vector<64x128xf32>
    %104 = arith.addf %98, %103 : vector<64x128xf32>
    %c2_84 = arith.constant 2 : index
    %c2_85 = arith.constant 2 : index
    %c0_86 = arith.constant 0 : index
    %105 = vector.load %arg13[%c2_84, %c2_85, %c0_86] : memref<10x10x128xbf16, #tpu.memory_space<vmem>>, vector<8x8x128xbf16>
    %106 = vector.shape_cast %105 : vector<8x8x128xbf16> to vector<64x128xbf16>
    %c8_87 = arith.constant 8 : index
    %c0_88 = arith.constant 0 : index
    %c0_89 = arith.constant 0 : index
    %107 = vector.load %arg4[%c8_87, %c0_88, %c0_89] : memref<9x128x128xbf16, #tpu.memory_space<vmem>>, vector<1x128x128xbf16>
    %108 = vector.shape_cast %107 : vector<1x128x128xbf16> to vector<128x128xbf16>
    %cst_90 = arith.constant dense<0.000000e+00> : vector<64x128xf32>
    %109 = tpu.matmul %106, %108, %cst_90 {dimension_numbers = #tpu.dot_dimension_numbers<[1], [0], [0], [1], [0, 0, 1, 1], [], []>} : vector<64x128xbf16>, vector<128x128xbf16>, vector<64x128xf32> -> vector<64x128xf32>
    %110 = arith.addf %104, %109 : vector<64x128xf32>
    %c0_91 = arith.constant 0 : index
    %c0_92 = arith.constant 0 : index
    %111 = vector.load %arg5[%c0_91, %c0_92] : memref<1x128xf32, #tpu.memory_space<vmem>>, vector<1x128xf32>
    %112 = vector.broadcast %111 : vector<1x128xf32> to vector<64x128xf32>
    %113 = arith.addf %110, %112 : vector<64x128xf32>
    %cst_93 = arith.constant 1.000000e-01 : f32
    %114 = vector.broadcast %cst_93 : f32 to vector<64x128xf32>
    %115 = arith.mulf %114, %113 : vector<64x128xf32>
    %116 = arith.maximumf %113, %115 : vector<64x128xf32>
    %117 = vector.shape_cast %116 : vector<64x128xf32> to vector<4x16x128xf32>
    %118 = vector.extract_strided_slice %117 {offsets = [0, 0, 0], sizes = [4, 8, 128], strides = [1, 1, 1]} : vector<4x16x128xf32> to vector<4x8x128xf32>
    %119 = vector.extract_strided_slice %117 {offsets = [0, 8, 0], sizes = [4, 8, 128], strides = [1, 1, 1]} : vector<4x16x128xf32> to vector<4x8x128xf32>
    %120 = arith.maximumf %118, %119 : vector<4x8x128xf32>
    %cst_94 = arith.constant 0.000000e+00 : bf16
    %121 = vector.broadcast %cst_94 : bf16 to vector<6x6x128xbf16>
    %c0_95 = arith.constant 0 : index
    %c0_96 = arith.constant 0 : index
    %c0_97 = arith.constant 0 : index
    %122 = vector.load %arg14[%c0_95, %c0_96, %c0_97] : memref<6x6x128xbf16, #tpu.memory_space<vmem>>, vector<6x6x128xbf16>
    tpu.vector_store %arg14[%c0_95, %c0_96, %c0_97], %121 {strides = array<i32>} : memref<6x6x128xbf16, #tpu.memory_space<vmem>>, vector<6x6x128xbf16>,
    %123 = vector.extract_strided_slice %120 {offsets = [0, 0, 0], sizes = [4, 1, 128], strides = [1, 1, 1]} : vector<4x8x128xf32> to vector<4x1x128xf32>
    %124 = vector.extract_strided_slice %120 {offsets = [0, 1, 0], sizes = [4, 1, 128], strides = [1, 1, 1]} : vector<4x8x128xf32> to vector<4x1x128xf32>
    %125 = arith.maximumf %123, %124 : vector<4x1x128xf32>
    %126 = arith.truncf %125 : vector<4x1x128xf32> to vector<4x1x128xbf16>
    %c1_98 = arith.constant 1 : index
    %c1_99 = arith.constant 1 : index
    %c0_100 = arith.constant 0 : index
    %127 = vector.load %arg14[%c1_98, %c1_99, %c0_100] : memref<6x6x128xbf16, #tpu.memory_space<vmem>>, vector<4x1x128xbf16>
    tpu.vector_store %arg14[%c1_98, %c1_99, %c0_100], %126 {strides = array<i32>} : memref<6x6x128xbf16, #tpu.memory_space<vmem>>, vector<4x1x128xbf16>,
    %128 = vector.extract_strided_slice %120 {offsets = [0, 2, 0], sizes = [4, 1, 128], strides = [1, 1, 1]} : vector<4x8x128xf32> to vector<4x1x128xf32>
    %129 = vector.extract_strided_slice %120 {offsets = [0, 3, 0], sizes = [4, 1, 128], strides = [1, 1, 1]} : vector<4x8x128xf32> to vector<4x1x128xf32>
    %130 = arith.maximumf %128, %129 : vector<4x1x128xf32>
    %131 = arith.truncf %130 : vector<4x1x128xf32> to vector<4x1x128xbf16>
    %c1_101 = arith.constant 1 : index
    %c2_102 = arith.constant 2 : index
    %c0_103 = arith.constant 0 : index
    %132 = vector.load %arg14[%c1_101, %c2_102, %c0_103] : memref<6x6x128xbf16, #tpu.memory_space<vmem>>, vector<4x1x128xbf16>
    tpu.vector_store %arg14[%c1_101, %c2_102, %c0_103], %131 {strides = array<i32>} : memref<6x6x128xbf16, #tpu.memory_space<vmem>>, vector<4x1x128xbf16>,
    %133 = vector.extract_strided_slice %120 {offsets = [0, 4, 0], sizes = [4, 1, 128], strides = [1, 1, 1]} : vector<4x8x128xf32> to vector<4x1x128xf32>
    %134 = vector.extract_strided_slice %120 {offsets = [0, 5, 0], sizes = [4, 1, 128], strides = [1, 1, 1]} : vector<4x8x128xf32> to vector<4x1x128xf32>
    %135 = arith.maximumf %133, %134 : vector<4x1x128xf32>
    %136 = arith.truncf %135 : vector<4x1x128xf32> to vector<4x1x128xbf16>
    %c1_104 = arith.constant 1 : index
    %c3_105 = arith.constant 3 : index
    %c0_106 = arith.constant 0 : index
    %137 = vector.load %arg14[%c1_104, %c3_105, %c0_106] : memref<6x6x128xbf16, #tpu.memory_space<vmem>>, vector<4x1x128xbf16>
    tpu.vector_store %arg14[%c1_104, %c3_105, %c0_106], %136 {strides = array<i32>} : memref<6x6x128xbf16, #tpu.memory_space<vmem>>, vector<4x1x128xbf16>,
    %138 = vector.extract_strided_slice %120 {offsets = [0, 6, 0], sizes = [4, 1, 128], strides = [1, 1, 1]} : vector<4x8x128xf32> to vector<4x1x128xf32>
    %139 = vector.extract_strided_slice %120 {offsets = [0, 7, 0], sizes = [4, 1, 128], strides = [1, 1, 1]} : vector<4x8x128xf32> to vector<4x1x128xf32>
    %140 = arith.maximumf %138, %139 : vector<4x1x128xf32>
    %141 = arith.truncf %140 : vector<4x1x128xf32> to vector<4x1x128xbf16>
    %c1_107 = arith.constant 1 : index
    %c4_108 = arith.constant 4 : index
    %c0_109 = arith.constant 0 : index
    %142 = vector.load %arg14[%c1_107, %c4_108, %c0_109] : memref<6x6x128xbf16, #tpu.memory_space<vmem>>, vector<4x1x128xbf16>
    tpu.vector_store %arg14[%c1_107, %c4_108, %c0_109], %141 {strides = array<i32>} : memref<6x6x128xbf16, #tpu.memory_space<vmem>>, vector<4x1x128xbf16>,
    %cst_110 = arith.constant 0.000000e+00 : f32
    %143 = vector.broadcast %cst_110 : f32 to vector<1x128xf32>
    %cst_111 = arith.constant 0.000000e+00 : f32
    %144 = vector.broadcast %cst_111 : f32 to vector<4x128xf32>
    %c0_112 = arith.constant 0 : index
    %c0_113 = arith.constant 0 : index
    %c0_114 = arith.constant 0 : index
    %145 = vector.load %arg14[%c0_112, %c0_113, %c0_114] : memref<6x6x128xbf16, #tpu.memory_space<vmem>>, vector<1x4x128xbf16>
    %146 = vector.shape_cast %145 : vector<1x4x128xbf16> to vector<4x128xbf16>
    %c0_115 = arith.constant 0 : index
    %c0_116 = arith.constant 0 : index
    %c0_117 = arith.constant 0 : index
    %147 = vector.load %arg6[%c0_115, %c0_116, %c0_117] : memref<9x128x128xbf16, #tpu.memory_space<vmem>>, vector<1x128x128xbf16>
    %148 = vector.shape_cast %147 : vector<1x128x128xbf16> to vector<128x128xbf16>
    %cst_118 = arith.constant dense<0.000000e+00> : vector<4x128xf32>
    %149 = tpu.matmul %146, %148, %cst_118 {dimension_numbers = #tpu.dot_dimension_numbers<[1], [0], [0], [1], [0, 0, 1, 1], [], []>} : vector<4x128xbf16>, vector<128x128xbf16>, vector<4x128xf32> -> vector<4x128xf32>
    %150 = arith.addf %144, %149 : vector<4x128xf32>
    %c0_119 = arith.constant 0 : index
    %c1_120 = arith.constant 1 : index
    %c0_121 = arith.constant 0 : index
    %151 = vector.load %arg14[%c0_119, %c1_120, %c0_121] : memref<6x6x128xbf16, #tpu.memory_space<vmem>>, vector<1x4x128xbf16>
    %152 = vector.shape_cast %151 : vector<1x4x128xbf16> to vector<4x128xbf16>
    %c1_122 = arith.constant 1 : index
    %c0_123 = arith.constant 0 : index
    %c0_124 = arith.constant 0 : index
    %153 = vector.load %arg6[%c1_122, %c0_123, %c0_124] : memref<9x128x128xbf16, #tpu.memory_space<vmem>>, vector<1x128x128xbf16>
    %154 = vector.shape_cast %153 : vector<1x128x128xbf16> to vector<128x128xbf16>
    %cst_125 = arith.constant dense<0.000000e+00> : vector<4x128xf32>
    %155 = tpu.matmul %152, %154, %cst_125 {dimension_numbers = #tpu.dot_dimension_numbers<[1], [0], [0], [1], [0, 0, 1, 1], [], []>} : vector<4x128xbf16>, vector<128x128xbf16>, vector<4x128xf32> -> vector<4x128xf32>
    %156 = arith.addf %150, %155 : vector<4x128xf32>
    %c0_126 = arith.constant 0 : index
    %c2_127 = arith.constant 2 : index
    %c0_128 = arith.constant 0 : index
    %157 = vector.load %arg14[%c0_126, %c2_127, %c0_128] : memref<6x6x128xbf16, #tpu.memory_space<vmem>>, vector<1x4x128xbf16>
    %158 = vector.shape_cast %157 : vector<1x4x128xbf16> to vector<4x128xbf16>
    %c2_129 = arith.constant 2 : index
    %c0_130 = arith.constant 0 : index
    %c0_131 = arith.constant 0 : index
    %159 = vector.load %arg6[%c2_129, %c0_130, %c0_131] : memref<9x128x128xbf16, #tpu.memory_space<vmem>>, vector<1x128x128xbf16>
    %160 = vector.shape_cast %159 : vector<1x128x128xbf16> to vector<128x128xbf16>
    %cst_132 = arith.constant dense<0.000000e+00> : vector<4x128xf32>
    %161 = tpu.matmul %158, %160, %cst_132 {dimension_numbers = #tpu.dot_dimension_numbers<[1], [0], [0], [1], [0, 0, 1, 1], [], []>} : vector<4x128xbf16>, vector<128x128xbf16>, vector<4x128xf32> -> vector<4x128xf32>
    %162 = arith.addf %156, %161 : vector<4x128xf32>
    %c1_133 = arith.constant 1 : index
    %c0_134 = arith.constant 0 : index
    %c0_135 = arith.constant 0 : index
    %163 = vector.load %arg14[%c1_133, %c0_134, %c0_135] : memref<6x6x128xbf16, #tpu.memory_space<vmem>>, vector<1x4x128xbf16>
    %164 = vector.shape_cast %163 : vector<1x4x128xbf16> to vector<4x128xbf16>
    %c3_136 = arith.constant 3 : index
    %c0_137 = arith.constant 0 : index
    %c0_138 = arith.constant 0 : index
    %165 = vector.load %arg6[%c3_136, %c0_137, %c0_138] : memref<9x128x128xbf16, #tpu.memory_space<vmem>>, vector<1x128x128xbf16>
    %166 = vector.shape_cast %165 : vector<1x128x128xbf16> to vector<128x128xbf16>
    %cst_139 = arith.constant dense<0.000000e+00> : vector<4x128xf32>
    %167 = tpu.matmul %164, %166, %cst_139 {dimension_numbers = #tpu.dot_dimension_numbers<[1], [0], [0], [1], [0, 0, 1, 1], [], []>} : vector<4x128xbf16>, vector<128x128xbf16>, vector<4x128xf32> -> vector<4x128xf32>
    %168 = arith.addf %162, %167 : vector<4x128xf32>
    %c1_140 = arith.constant 1 : index
    %c1_141 = arith.constant 1 : index
    %c0_142 = arith.constant 0 : index
    %169 = vector.load %arg14[%c1_140, %c1_141, %c0_142] : memref<6x6x128xbf16, #tpu.memory_space<vmem>>, vector<1x4x128xbf16>
    %170 = vector.shape_cast %169 : vector<1x4x128xbf16> to vector<4x128xbf16>
    %c4_143 = arith.constant 4 : index
    %c0_144 = arith.constant 0 : index
    %c0_145 = arith.constant 0 : index
    %171 = vector.load %arg6[%c4_143, %c0_144, %c0_145] : memref<9x128x128xbf16, #tpu.memory_space<vmem>>, vector<1x128x128xbf16>
    %172 = vector.shape_cast %171 : vector<1x128x128xbf16> to vector<128x128xbf16>
    %cst_146 = arith.constant dense<0.000000e+00> : vector<4x128xf32>
    %173 = tpu.matmul %170, %172, %cst_146 {dimension_numbers = #tpu.dot_dimension_numbers<[1], [0], [0], [1], [0, 0, 1, 1], [], []>} : vector<4x128xbf16>, vector<128x128xbf16>, vector<4x128xf32> -> vector<4x128xf32>
    %174 = arith.addf %168, %173 : vector<4x128xf32>
    %c1_147 = arith.constant 1 : index
    %c2_148 = arith.constant 2 : index
    %c0_149 = arith.constant 0 : index
    %175 = vector.load %arg14[%c1_147, %c2_148, %c0_149] : memref<6x6x128xbf16, #tpu.memory_space<vmem>>, vector<1x4x128xbf16>
    %176 = vector.shape_cast %175 : vector<1x4x128xbf16> to vector<4x128xbf16>
    %c5_150 = arith.constant 5 : index
    %c0_151 = arith.constant 0 : index
    %c0_152 = arith.constant 0 : index
    %177 = vector.load %arg6[%c5_150, %c0_151, %c0_152] : memref<9x128x128xbf16, #tpu.memory_space<vmem>>, vector<1x128x128xbf16>
    %178 = vector.shape_cast %177 : vector<1x128x128xbf16> to vector<128x128xbf16>
    %cst_153 = arith.constant dense<0.000000e+00> : vector<4x128xf32>
    %179 = tpu.matmul %176, %178, %cst_153 {dimension_numbers = #tpu.dot_dimension_numbers<[1], [0], [0], [1], [0, 0, 1, 1], [], []>} : vector<4x128xbf16>, vector<128x128xbf16>, vector<4x128xf32> -> vector<4x128xf32>
    %180 = arith.addf %174, %179 : vector<4x128xf32>
    %c2_154 = arith.constant 2 : index
    %c0_155 = arith.constant 0 : index
    %c0_156 = arith.constant 0 : index
    %181 = vector.load %arg14[%c2_154, %c0_155, %c0_156] : memref<6x6x128xbf16, #tpu.memory_space<vmem>>, vector<1x4x128xbf16>
    %182 = vector.shape_cast %181 : vector<1x4x128xbf16> to vector<4x128xbf16>
    %c6_157 = arith.constant 6 : index
    %c0_158 = arith.constant 0 : index
    %c0_159 = arith.constant 0 : index
    %183 = vector.load %arg6[%c6_157, %c0_158, %c0_159] : memref<9x128x128xbf16, #tpu.memory_space<vmem>>, vector<1x128x128xbf16>
    %184 = vector.shape_cast %183 : vector<1x128x128xbf16> to vector<128x128xbf16>
    %cst_160 = arith.constant dense<0.000000e+00> : vector<4x128xf32>
    %185 = tpu.matmul %182, %184, %cst_160 {dimension_numbers = #tpu.dot_dimension_numbers<[1], [0], [0], [1], [0, 0, 1, 1], [], []>} : vector<4x128xbf16>, vector<128x128xbf16>, vector<4x128xf32> -> vector<4x128xf32>
    %186 = arith.addf %180, %185 : vector<4x128xf32>
    %c2_161 = arith.constant 2 : index
    %c1_162 = arith.constant 1 : index
    %c0_163 = arith.constant 0 : index
    %187 = vector.load %arg14[%c2_161, %c1_162, %c0_163] : memref<6x6x128xbf16, #tpu.memory_space<vmem>>, vector<1x4x128xbf16>
    %188 = vector.shape_cast %187 : vector<1x4x128xbf16> to vector<4x128xbf16>
    %c7_164 = arith.constant 7 : index
    %c0_165 = arith.constant 0 : index
    %c0_166 = arith.constant 0 : index
    %189 = vector.load %arg6[%c7_164, %c0_165, %c0_166] : memref<9x128x128xbf16, #tpu.memory_space<vmem>>, vector<1x128x128xbf16>
    %190 = vector.shape_cast %189 : vector<1x128x128xbf16> to vector<128x128xbf16>
    %cst_167 = arith.constant dense<0.000000e+00> : vector<4x128xf32>
    %191 = tpu.matmul %188, %190, %cst_167 {dimension_numbers = #tpu.dot_dimension_numbers<[1], [0], [0], [1], [0, 0, 1, 1], [], []>} : vector<4x128xbf16>, vector<128x128xbf16>, vector<4x128xf32> -> vector<4x128xf32>
    %192 = arith.addf %186, %191 : vector<4x128xf32>
    %c2_168 = arith.constant 2 : index
    %c2_169 = arith.constant 2 : index
    %c0_170 = arith.constant 0 : index
    %193 = vector.load %arg14[%c2_168, %c2_169, %c0_170] : memref<6x6x128xbf16, #tpu.memory_space<vmem>>, vector<1x4x128xbf16>
    %194 = vector.shape_cast %193 : vector<1x4x128xbf16> to vector<4x128xbf16>
    %c8_171 = arith.constant 8 : index
    %c0_172 = arith.constant 0 : index
    %c0_173 = arith.constant 0 : index
    %195 = vector.load %arg6[%c8_171, %c0_172, %c0_173] : memref<9x128x128xbf16, #tpu.memory_space<vmem>>, vector<1x128x128xbf16>
    %196 = vector.shape_cast %195 : vector<1x128x128xbf16> to vector<128x128xbf16>
    %cst_174 = arith.constant dense<0.000000e+00> : vector<4x128xf32>
    %197 = tpu.matmul %194, %196, %cst_174 {dimension_numbers = #tpu.dot_dimension_numbers<[1], [0], [0], [1], [0, 0, 1, 1], [], []>} : vector<4x128xbf16>, vector<128x128xbf16>, vector<4x128xf32> -> vector<4x128xf32>
    %198 = arith.addf %192, %197 : vector<4x128xf32>
    %c0_175 = arith.constant 0 : index
    %c0_176 = arith.constant 0 : index
    %199 = vector.load %arg7[%c0_175, %c0_176] : memref<1x128xf32, #tpu.memory_space<vmem>>, vector<1x128xf32>
    %200 = vector.broadcast %199 : vector<1x128xf32> to vector<4x128xf32>
    %201 = arith.addf %198, %200 : vector<4x128xf32>
    %cst_177 = arith.constant 1.000000e-01 : f32
    %202 = vector.broadcast %cst_177 : f32 to vector<4x128xf32>
    %203 = arith.mulf %202, %201 : vector<4x128xf32>
    %204 = arith.maximumf %201, %203 : vector<4x128xf32>
    %c0_178 = arith.constant 0 : index
    %c0_179 = arith.constant 0 : index
    %c0_180 = arith.constant 0 : index
    %205 = vector.load %arg12[%c0_178, %c0_179, %c0_180] : memref<1x16x128xf32, #tpu.memory_space<vmem>>, vector<1x4x128xf32>
    %206 = vector.shape_cast %205 : vector<1x4x128xf32> to vector<4x128xf32>
    %207 = vector.shape_cast %204 : vector<4x128xf32> to vector<1x4x128xf32>
    tpu.vector_store %arg12[%c0_178, %c0_179, %c0_180], %207 {strides = array<i32>} : memref<1x16x128xf32, #tpu.memory_space<vmem>>, vector<1x4x128xf32>,
    %cst_181 = arith.constant dense<0.000000e+00> : vector<128xf32>
    %208 = vector.multi_reduction <add>, %204, %cst_181 [0] : vector<4x128xf32> to vector<128xf32>
    %209 = vector.shape_cast %208 : vector<128xf32> to vector<1x128xf32>
    %210 = arith.addf %143, %209 : vector<1x128xf32>
    %cst_182 = arith.constant 0.000000e+00 : f32
    %211 = vector.broadcast %cst_182 : f32 to vector<4x128xf32>
    %c1_183 = arith.constant 1 : index
    %c0_184 = arith.constant 0 : index
    %c0_185 = arith.constant 0 : index
    %212 = vector.load %arg14[%c1_183, %c0_184, %c0_185] : memref<6x6x128xbf16, #tpu.memory_space<vmem>>, vector<1x4x128xbf16>
    %213 = vector.shape_cast %212 : vector<1x4x128xbf16> to vector<4x128xbf16>
    %c0_186 = arith.constant 0 : index
    %c0_187 = arith.constant 0 : index
    %c0_188 = arith.constant 0 : index
    %214 = vector.load %arg6[%c0_186, %c0_187, %c0_188] : memref<9x128x128xbf16, #tpu.memory_space<vmem>>, vector<1x128x128xbf16>
    %215 = vector.shape_cast %214 : vector<1x128x128xbf16> to vector<128x128xbf16>
    %cst_189 = arith.constant dense<0.000000e+00> : vector<4x128xf32>
    %216 = tpu.matmul %213, %215, %cst_189 {dimension_numbers = #tpu.dot_dimension_numbers<[1], [0], [0], [1], [0, 0, 1, 1], [], []>} : vector<4x128xbf16>, vector<128x128xbf16>, vector<4x128xf32> -> vector<4x128xf32>
    %217 = arith.addf %211, %216 : vector<4x128xf32>
    %c1_190 = arith.constant 1 : index
    %c1_191 = arith.constant 1 : index
    %c0_192 = arith.constant 0 : index
    %218 = vector.load %arg14[%c1_190, %c1_191, %c0_192] : memref<6x6x128xbf16, #tpu.memory_space<vmem>>, vector<1x4x128xbf16>
    %219 = vector.shape_cast %218 : vector<1x4x128xbf16> to vector<4x128xbf16>
    %c1_193 = arith.constant 1 : index
    %c0_194 = arith.constant 0 : index
    %c0_195 = arith.constant 0 : index
    %220 = vector.load %arg6[%c1_193, %c0_194, %c0_195] : memref<9x128x128xbf16, #tpu.memory_space<vmem>>, vector<1x128x128xbf16>
    %221 = vector.shape_cast %220 : vector<1x128x128xbf16> to vector<128x128xbf16>
    %cst_196 = arith.constant dense<0.000000e+00> : vector<4x128xf32>
    %222 = tpu.matmul %219, %221, %cst_196 {dimension_numbers = #tpu.dot_dimension_numbers<[1], [0], [0], [1], [0, 0, 1, 1], [], []>} : vector<4x128xbf16>, vector<128x128xbf16>, vector<4x128xf32> -> vector<4x128xf32>
    %223 = arith.addf %217, %222 : vector<4x128xf32>
    %c1_197 = arith.constant 1 : index
    %c2_198 = arith.constant 2 : index
    %c0_199 = arith.constant 0 : index
    %224 = vector.load %arg14[%c1_197, %c2_198, %c0_199] : memref<6x6x128xbf16, #tpu.memory_space<vmem>>, vector<1x4x128xbf16>
    %225 = vector.shape_cast %224 : vector<1x4x128xbf16> to vector<4x128xbf16>
    %c2_200 = arith.constant 2 : index
    %c0_201 = arith.constant 0 : index
    %c0_202 = arith.constant 0 : index
    %226 = vector.load %arg6[%c2_200, %c0_201, %c0_202] : memref<9x128x128xbf16, #tpu.memory_space<vmem>>, vector<1x128x128xbf16>
    %227 = vector.shape_cast %226 : vector<1x128x128xbf16> to vector<128x128xbf16>
    %cst_203 = arith.constant dense<0.000000e+00> : vector<4x128xf32>
    %228 = tpu.matmul %225, %227, %cst_203 {dimension_numbers = #tpu.dot_dimension_numbers<[1], [0], [0], [1], [0, 0, 1, 1], [], []>} : vector<4x128xbf16>, vector<128x128xbf16>, vector<4x128xf32> -> vector<4x128xf32>
    %229 = arith.addf %223, %228 : vector<4x128xf32>
    %c2_204 = arith.constant 2 : index
    %c0_205 = arith.constant 0 : index
    %c0_206 = arith.constant 0 : index
    %230 = vector.load %arg14[%c2_204, %c0_205, %c0_206] : memref<6x6x128xbf16, #tpu.memory_space<vmem>>, vector<1x4x128xbf16>
    %231 = vector.shape_cast %230 : vector<1x4x128xbf16> to vector<4x128xbf16>
    %c3_207 = arith.constant 3 : index
    %c0_208 = arith.constant 0 : index
    %c0_209 = arith.constant 0 : index
    %232 = vector.load %arg6[%c3_207, %c0_208, %c0_209] : memref<9x128x128xbf16, #tpu.memory_space<vmem>>, vector<1x128x128xbf16>
    %233 = vector.shape_cast %232 : vector<1x128x128xbf16> to vector<128x128xbf16>
    %cst_210 = arith.constant dense<0.000000e+00> : vector<4x128xf32>
    %234 = tpu.matmul %231, %233, %cst_210 {dimension_numbers = #tpu.dot_dimension_numbers<[1], [0], [0], [1], [0, 0, 1, 1], [], []>} : vector<4x128xbf16>, vector<128x128xbf16>, vector<4x128xf32> -> vector<4x128xf32>
    %235 = arith.addf %229, %234 : vector<4x128xf32>
    %c2_211 = arith.constant 2 : index
    %c1_212 = arith.constant 1 : index
    %c0_213 = arith.constant 0 : index
    %236 = vector.load %arg14[%c2_211, %c1_212, %c0_213] : memref<6x6x128xbf16, #tpu.memory_space<vmem>>, vector<1x4x128xbf16>
    %237 = vector.shape_cast %236 : vector<1x4x128xbf16> to vector<4x128xbf16>
    %c4_214 = arith.constant 4 : index
    %c0_215 = arith.constant 0 : index
    %c0_216 = arith.constant 0 : index
    %238 = vector.load %arg6[%c4_214, %c0_215, %c0_216] : memref<9x128x128xbf16, #tpu.memory_space<vmem>>, vector<1x128x128xbf16>
    %239 = vector.shape_cast %238 : vector<1x128x128xbf16> to vector<128x128xbf16>
    %cst_217 = arith.constant dense<0.000000e+00> : vector<4x128xf32>
    %240 = tpu.matmul %237, %239, %cst_217 {dimension_numbers = #tpu.dot_dimension_numbers<[1], [0], [0], [1], [0, 0, 1, 1], [], []>} : vector<4x128xbf16>, vector<128x128xbf16>, vector<4x128xf32> -> vector<4x128xf32>
    %241 = arith.addf %235, %240 : vector<4x128xf32>
    %c2_218 = arith.constant 2 : index
    %c2_219 = arith.constant 2 : index
    %c0_220 = arith.constant 0 : index
    %242 = vector.load %arg14[%c2_218, %c2_219, %c0_220] : memref<6x6x128xbf16, #tpu.memory_space<vmem>>, vector<1x4x128xbf16>
    %243 = vector.shape_cast %242 : vector<1x4x128xbf16> to vector<4x128xbf16>
    %c5_221 = arith.constant 5 : index
    %c0_222 = arith.constant 0 : index
    %c0_223 = arith.constant 0 : index
    %244 = vector.load %arg6[%c5_221, %c0_222, %c0_223] : memref<9x128x128xbf16, #tpu.memory_space<vmem>>, vector<1x128x128xbf16>
    %245 = vector.shape_cast %244 : vector<1x128x128xbf16> to vector<128x128xbf16>
    %cst_224 = arith.constant dense<0.000000e+00> : vector<4x128xf32>
    %246 = tpu.matmul %243, %245, %cst_224 {dimension_numbers = #tpu.dot_dimension_numbers<[1], [0], [0], [1], [0, 0, 1, 1], [], []>} : vector<4x128xbf16>, vector<128x128xbf16>, vector<4x128xf32> -> vector<4x128xf32>
    %247 = arith.addf %241, %246 : vector<4x128xf32>
    %c3_225 = arith.constant 3 : index
    %c0_226 = arith.constant 0 : index
    %c0_227 = arith.constant 0 : index
    %248 = vector.load %arg14[%c3_225, %c0_226, %c0_227] : memref<6x6x128xbf16, #tpu.memory_space<vmem>>, vector<1x4x128xbf16>
    %249 = vector.shape_cast %248 : vector<1x4x128xbf16> to vector<4x128xbf16>
    %c6_228 = arith.constant 6 : index
    %c0_229 = arith.constant 0 : index
    %c0_230 = arith.constant 0 : index
    %250 = vector.load %arg6[%c6_228, %c0_229, %c0_230] : memref<9x128x128xbf16, #tpu.memory_space<vmem>>, vector<1x128x128xbf16>
    %251 = vector.shape_cast %250 : vector<1x128x128xbf16> to vector<128x128xbf16>
    %cst_231 = arith.constant dense<0.000000e+00> : vector<4x128xf32>
    %252 = tpu.matmul %249, %251, %cst_231 {dimension_numbers = #tpu.dot_dimension_numbers<[1], [0], [0], [1], [0, 0, 1, 1], [], []>} : vector<4x128xbf16>, vector<128x128xbf16>, vector<4x128xf32> -> vector<4x128xf32>
    %253 = arith.addf %247, %252 : vector<4x128xf32>
    %c3_232 = arith.constant 3 : index
    %c1_233 = arith.constant 1 : index
    %c0_234 = arith.constant 0 : index
    %254 = vector.load %arg14[%c3_232, %c1_233, %c0_234] : memref<6x6x128xbf16, #tpu.memory_space<vmem>>, vector<1x4x128xbf16>
    %255 = vector.shape_cast %254 : vector<1x4x128xbf16> to vector<4x128xbf16>
    %c7_235 = arith.constant 7 : index
    %c0_236 = arith.constant 0 : index
    %c0_237 = arith.constant 0 : index
    %256 = vector.load %arg6[%c7_235, %c0_236, %c0_237] : memref<9x128x128xbf16, #tpu.memory_space<vmem>>, vector<1x128x128xbf16>
    %257 = vector.shape_cast %256 : vector<1x128x128xbf16> to vector<128x128xbf16>
    %cst_238 = arith.constant dense<0.000000e+00> : vector<4x128xf32>
    %258 = tpu.matmul %255, %257, %cst_238 {dimension_numbers = #tpu.dot_dimension_numbers<[1], [0], [0], [1], [0, 0, 1, 1], [], []>} : vector<4x128xbf16>, vector<128x128xbf16>, vector<4x128xf32> -> vector<4x128xf32>
    %259 = arith.addf %253, %258 : vector<4x128xf32>
    %c3_239 = arith.constant 3 : index
    %c2_240 = arith.constant 2 : index
    %c0_241 = arith.constant 0 : index
    %260 = vector.load %arg14[%c3_239, %c2_240, %c0_241] : memref<6x6x128xbf16, #tpu.memory_space<vmem>>, vector<1x4x128xbf16>
    %261 = vector.shape_cast %260 : vector<1x4x128xbf16> to vector<4x128xbf16>
    %c8_242 = arith.constant 8 : index
    %c0_243 = arith.constant 0 : index
    %c0_244 = arith.constant 0 : index
    %262 = vector.load %arg6[%c8_242, %c0_243, %c0_244] : memref<9x128x128xbf16, #tpu.memory_space<vmem>>, vector<1x128x128xbf16>
    %263 = vector.shape_cast %262 : vector<1x128x128xbf16> to vector<128x128xbf16>
    %cst_245 = arith.constant dense<0.000000e+00> : vector<4x128xf32>
    %264 = tpu.matmul %261, %263, %cst_245 {dimension_numbers = #tpu.dot_dimension_numbers<[1], [0], [0], [1], [0, 0, 1, 1], [], []>} : vector<4x128xbf16>, vector<128x128xbf16>, vector<4x128xf32> -> vector<4x128xf32>
    %265 = arith.addf %259, %264 : vector<4x128xf32>
    %c0_246 = arith.constant 0 : index
    %c0_247 = arith.constant 0 : index
    %266 = vector.load %arg7[%c0_246, %c0_247] : memref<1x128xf32, #tpu.memory_space<vmem>>, vector<1x128xf32>
    %267 = vector.broadcast %266 : vector<1x128xf32> to vector<4x128xf32>
    %268 = arith.addf %265, %267 : vector<4x128xf32>
    %cst_248 = arith.constant 1.000000e-01 : f32
    %269 = vector.broadcast %cst_248 : f32 to vector<4x128xf32>
    %270 = arith.mulf %269, %268 : vector<4x128xf32>
    %271 = arith.maximumf %268, %270 : vector<4x128xf32>
    %c0_249 = arith.constant 0 : index
    %c4_250 = arith.constant 4 : index
    %c0_251 = arith.constant 0 : index
    %272 = vector.load %arg12[%c0_249, %c4_250, %c0_251] : memref<1x16x128xf32, #tpu.memory_space<vmem>>, vector<1x4x128xf32>
    %273 = vector.shape_cast %272 : vector<1x4x128xf32> to vector<4x128xf32>
    %274 = vector.shape_cast %271 : vector<4x128xf32> to vector<1x4x128xf32>
    tpu.vector_store %arg12[%c0_249, %c4_250, %c0_251], %274 {strides = array<i32>} : memref<1x16x128xf32, #tpu.memory_space<vmem>>, vector<1x4x128xf32>,
    %cst_252 = arith.constant dense<0.000000e+00> : vector<128xf32>
    %275 = vector.multi_reduction <add>, %271, %cst_252 [0] : vector<4x128xf32> to vector<128xf32>
    %276 = vector.shape_cast %275 : vector<128xf32> to vector<1x128xf32>
    %277 = arith.addf %210, %276 : vector<1x128xf32>
    %cst_253 = arith.constant 0.000000e+00 : f32
    %278 = vector.broadcast %cst_253 : f32 to vector<4x128xf32>
    %c2_254 = arith.constant 2 : index
    %c0_255 = arith.constant 0 : index
    %c0_256 = arith.constant 0 : index
    %279 = vector.load %arg14[%c2_254, %c0_255, %c0_256] : memref<6x6x128xbf16, #tpu.memory_space<vmem>>, vector<1x4x128xbf16>
    %280 = vector.shape_cast %279 : vector<1x4x128xbf16> to vector<4x128xbf16>
    %c0_257 = arith.constant 0 : index
    %c0_258 = arith.constant 0 : index
    %c0_259 = arith.constant 0 : index
    %281 = vector.load %arg6[%c0_257, %c0_258, %c0_259] : memref<9x128x128xbf16, #tpu.memory_space<vmem>>, vector<1x128x128xbf16>
    %282 = vector.shape_cast %281 : vector<1x128x128xbf16> to vector<128x128xbf16>
    %cst_260 = arith.constant dense<0.000000e+00> : vector<4x128xf32>
    %283 = tpu.matmul %280, %282, %cst_260 {dimension_numbers = #tpu.dot_dimension_numbers<[1], [0], [0], [1], [0, 0, 1, 1], [], []>} : vector<4x128xbf16>, vector<128x128xbf16>, vector<4x128xf32> -> vector<4x128xf32>
    %284 = arith.addf %278, %283 : vector<4x128xf32>
    %c2_261 = arith.constant 2 : index
    %c1_262 = arith.constant 1 : index
    %c0_263 = arith.constant 0 : index
    %285 = vector.load %arg14[%c2_261, %c1_262, %c0_263] : memref<6x6x128xbf16, #tpu.memory_space<vmem>>, vector<1x4x128xbf16>
    %286 = vector.shape_cast %285 : vector<1x4x128xbf16> to vector<4x128xbf16>
    %c1_264 = arith.constant 1 : index
    %c0_265 = arith.constant 0 : index
    %c0_266 = arith.constant 0 : index
    %287 = vector.load %arg6[%c1_264, %c0_265, %c0_266] : memref<9x128x128xbf16, #tpu.memory_space<vmem>>, vector<1x128x128xbf16>
    %288 = vector.shape_cast %287 : vector<1x128x128xbf16> to vector<128x128xbf16>
    %cst_267 = arith.constant dense<0.000000e+00> : vector<4x128xf32>
    %289 = tpu.matmul %286, %288, %cst_267 {dimension_numbers = #tpu.dot_dimension_numbers<[1], [0], [0], [1], [0, 0, 1, 1], [], []>} : vector<4x128xbf16>, vector<128x128xbf16>, vector<4x128xf32> -> vector<4x128xf32>
    %290 = arith.addf %284, %289 : vector<4x128xf32>
    %c2_268 = arith.constant 2 : index
    %c2_269 = arith.constant 2 : index
    %c0_270 = arith.constant 0 : index
    %291 = vector.load %arg14[%c2_268, %c2_269, %c0_270] : memref<6x6x128xbf16, #tpu.memory_space<vmem>>, vector<1x4x128xbf16>
    %292 = vector.shape_cast %291 : vector<1x4x128xbf16> to vector<4x128xbf16>
    %c2_271 = arith.constant 2 : index
    %c0_272 = arith.constant 0 : index
    %c0_273 = arith.constant 0 : index
    %293 = vector.load %arg6[%c2_271, %c0_272, %c0_273] : memref<9x128x128xbf16, #tpu.memory_space<vmem>>, vector<1x128x128xbf16>
    %294 = vector.shape_cast %293 : vector<1x128x128xbf16> to vector<128x128xbf16>
    %cst_274 = arith.constant dense<0.000000e+00> : vector<4x128xf32>
    %295 = tpu.matmul %292, %294, %cst_274 {dimension_numbers = #tpu.dot_dimension_numbers<[1], [0], [0], [1], [0, 0, 1, 1], [], []>} : vector<4x128xbf16>, vector<128x128xbf16>, vector<4x128xf32> -> vector<4x128xf32>
    %296 = arith.addf %290, %295 : vector<4x128xf32>
    %c3_275 = arith.constant 3 : index
    %c0_276 = arith.constant 0 : index
    %c0_277 = arith.constant 0 : index
    %297 = vector.load %arg14[%c3_275, %c0_276, %c0_277] : memref<6x6x128xbf16, #tpu.memory_space<vmem>>, vector<1x4x128xbf16>
    %298 = vector.shape_cast %297 : vector<1x4x128xbf16> to vector<4x128xbf16>
    %c3_278 = arith.constant 3 : index
    %c0_279 = arith.constant 0 : index
    %c0_280 = arith.constant 0 : index
    %299 = vector.load %arg6[%c3_278, %c0_279, %c0_280] : memref<9x128x128xbf16, #tpu.memory_space<vmem>>, vector<1x128x128xbf16>
    %300 = vector.shape_cast %299 : vector<1x128x128xbf16> to vector<128x128xbf16>
    %cst_281 = arith.constant dense<0.000000e+00> : vector<4x128xf32>
    %301 = tpu.matmul %298, %300, %cst_281 {dimension_numbers = #tpu.dot_dimension_numbers<[1], [0], [0], [1], [0, 0, 1, 1], [], []>} : vector<4x128xbf16>, vector<128x128xbf16>, vector<4x128xf32> -> vector<4x128xf32>
    %302 = arith.addf %296, %301 : vector<4x128xf32>
    %c3_282 = arith.constant 3 : index
    %c1_283 = arith.constant 1 : index
    %c0_284 = arith.constant 0 : index
    %303 = vector.load %arg14[%c3_282, %c1_283, %c0_284] : memref<6x6x128xbf16, #tpu.memory_space<vmem>>, vector<1x4x128xbf16>
    %304 = vector.shape_cast %303 : vector<1x4x128xbf16> to vector<4x128xbf16>
    %c4_285 = arith.constant 4 : index
    %c0_286 = arith.constant 0 : index
    %c0_287 = arith.constant 0 : index
    %305 = vector.load %arg6[%c4_285, %c0_286, %c0_287] : memref<9x128x128xbf16, #tpu.memory_space<vmem>>, vector<1x128x128xbf16>
    %306 = vector.shape_cast %305 : vector<1x128x128xbf16> to vector<128x128xbf16>
    %cst_288 = arith.constant dense<0.000000e+00> : vector<4x128xf32>
    %307 = tpu.matmul %304, %306, %cst_288 {dimension_numbers = #tpu.dot_dimension_numbers<[1], [0], [0], [1], [0, 0, 1, 1], [], []>} : vector<4x128xbf16>, vector<128x128xbf16>, vector<4x128xf32> -> vector<4x128xf32>
    %308 = arith.addf %302, %307 : vector<4x128xf32>
    %c3_289 = arith.constant 3 : index
    %c2_290 = arith.constant 2 : index
    %c0_291 = arith.constant 0 : index
    %309 = vector.load %arg14[%c3_289, %c2_290, %c0_291] : memref<6x6x128xbf16, #tpu.memory_space<vmem>>, vector<1x4x128xbf16>
    %310 = vector.shape_cast %309 : vector<1x4x128xbf16> to vector<4x128xbf16>
    %c5_292 = arith.constant 5 : index
    %c0_293 = arith.constant 0 : index
    %c0_294 = arith.constant 0 : index
    %311 = vector.load %arg6[%c5_292, %c0_293, %c0_294] : memref<9x128x128xbf16, #tpu.memory_space<vmem>>, vector<1x128x128xbf16>
    %312 = vector.shape_cast %311 : vector<1x128x128xbf16> to vector<128x128xbf16>
    %cst_295 = arith.constant dense<0.000000e+00> : vector<4x128xf32>
    %313 = tpu.matmul %310, %312, %cst_295 {dimension_numbers = #tpu.dot_dimension_numbers<[1], [0], [0], [1], [0, 0, 1, 1], [], []>} : vector<4x128xbf16>, vector<128x128xbf16>, vector<4x128xf32> -> vector<4x128xf32>
    %314 = arith.addf %308, %313 : vector<4x128xf32>
    %c4_296 = arith.constant 4 : index
    %c0_297 = arith.constant 0 : index
    %c0_298 = arith.constant 0 : index
    %315 = vector.load %arg14[%c4_296, %c0_297, %c0_298] : memref<6x6x128xbf16, #tpu.memory_space<vmem>>, vector<1x4x128xbf16>
    %316 = vector.shape_cast %315 : vector<1x4x128xbf16> to vector<4x128xbf16>
    %c6_299 = arith.constant 6 : index
    %c0_300 = arith.constant 0 : index
    %c0_301 = arith.constant 0 : index
    %317 = vector.load %arg6[%c6_299, %c0_300, %c0_301] : memref<9x128x128xbf16, #tpu.memory_space<vmem>>, vector<1x128x128xbf16>
    %318 = vector.shape_cast %317 : vector<1x128x128xbf16> to vector<128x128xbf16>
    %cst_302 = arith.constant dense<0.000000e+00> : vector<4x128xf32>
    %319 = tpu.matmul %316, %318, %cst_302 {dimension_numbers = #tpu.dot_dimension_numbers<[1], [0], [0], [1], [0, 0, 1, 1], [], []>} : vector<4x128xbf16>, vector<128x128xbf16>, vector<4x128xf32> -> vector<4x128xf32>
    %320 = arith.addf %314, %319 : vector<4x128xf32>
    %c4_303 = arith.constant 4 : index
    %c1_304 = arith.constant 1 : index
    %c0_305 = arith.constant 0 : index
    %321 = vector.load %arg14[%c4_303, %c1_304, %c0_305] : memref<6x6x128xbf16, #tpu.memory_space<vmem>>, vector<1x4x128xbf16>
    %322 = vector.shape_cast %321 : vector<1x4x128xbf16> to vector<4x128xbf16>
    %c7_306 = arith.constant 7 : index
    %c0_307 = arith.constant 0 : index
    %c0_308 = arith.constant 0 : index
    %323 = vector.load %arg6[%c7_306, %c0_307, %c0_308] : memref<9x128x128xbf16, #tpu.memory_space<vmem>>, vector<1x128x128xbf16>
    %324 = vector.shape_cast %323 : vector<1x128x128xbf16> to vector<128x128xbf16>
    %cst_309 = arith.constant dense<0.000000e+00> : vector<4x128xf32>
    %325 = tpu.matmul %322, %324, %cst_309 {dimension_numbers = #tpu.dot_dimension_numbers<[1], [0], [0], [1], [0, 0, 1, 1], [], []>} : vector<4x128xbf16>, vector<128x128xbf16>, vector<4x128xf32> -> vector<4x128xf32>
    %326 = arith.addf %320, %325 : vector<4x128xf32>
    %c4_310 = arith.constant 4 : index
    %c2_311 = arith.constant 2 : index
    %c0_312 = arith.constant 0 : index
    %327 = vector.load %arg14[%c4_310, %c2_311, %c0_312] : memref<6x6x128xbf16, #tpu.memory_space<vmem>>, vector<1x4x128xbf16>
    %328 = vector.shape_cast %327 : vector<1x4x128xbf16> to vector<4x128xbf16>
    %c8_313 = arith.constant 8 : index
    %c0_314 = arith.constant 0 : index
    %c0_315 = arith.constant 0 : index
    %329 = vector.load %arg6[%c8_313, %c0_314, %c0_315] : memref<9x128x128xbf16, #tpu.memory_space<vmem>>, vector<1x128x128xbf16>
    %330 = vector.shape_cast %329 : vector<1x128x128xbf16> to vector<128x128xbf16>
    %cst_316 = arith.constant dense<0.000000e+00> : vector<4x128xf32>
    %331 = tpu.matmul %328, %330, %cst_316 {dimension_numbers = #tpu.dot_dimension_numbers<[1], [0], [0], [1], [0, 0, 1, 1], [], []>} : vector<4x128xbf16>, vector<128x128xbf16>, vector<4x128xf32> -> vector<4x128xf32>
    %332 = arith.addf %326, %331 : vector<4x128xf32>
    %c0_317 = arith.constant 0 : index
    %c0_318 = arith.constant 0 : index
    %333 = vector.load %arg7[%c0_317, %c0_318] : memref<1x128xf32, #tpu.memory_space<vmem>>, vector<1x128xf32>
    %334 = vector.broadcast %333 : vector<1x128xf32> to vector<4x128xf32>
    %335 = arith.addf %332, %334 : vector<4x128xf32>
    %cst_319 = arith.constant 1.000000e-01 : f32
    %336 = vector.broadcast %cst_319 : f32 to vector<4x128xf32>
    %337 = arith.mulf %336, %335 : vector<4x128xf32>
    %338 = arith.maximumf %335, %337 : vector<4x128xf32>
    %c0_320 = arith.constant 0 : index
    %c8_321 = arith.constant 8 : index
    %c0_322 = arith.constant 0 : index
    %339 = vector.load %arg12[%c0_320, %c8_321, %c0_322] : memref<1x16x128xf32, #tpu.memory_space<vmem>>, vector<1x4x128xf32>
    %340 = vector.shape_cast %339 : vector<1x4x128xf32> to vector<4x128xf32>
    %341 = vector.shape_cast %338 : vector<4x128xf32> to vector<1x4x128xf32>
    tpu.vector_store %arg12[%c0_320, %c8_321, %c0_322], %341 {strides = array<i32>} : memref<1x16x128xf32, #tpu.memory_space<vmem>>, vector<1x4x128xf32>,
    %cst_323 = arith.constant dense<0.000000e+00> : vector<128xf32>
    %342 = vector.multi_reduction <add>, %338, %cst_323 [0] : vector<4x128xf32> to vector<128xf32>
    %343 = vector.shape_cast %342 : vector<128xf32> to vector<1x128xf32>
    %344 = arith.addf %277, %343 : vector<1x128xf32>
    %cst_324 = arith.constant 0.000000e+00 : f32
    %345 = vector.broadcast %cst_324 : f32 to vector<4x128xf32>
    %c3_325 = arith.constant 3 : index
    %c0_326 = arith.constant 0 : index
    %c0_327 = arith.constant 0 : index
    %346 = vector.load %arg14[%c3_325, %c0_326, %c0_327] : memref<6x6x128xbf16, #tpu.memory_space<vmem>>, vector<1x4x128xbf16>
    %347 = vector.shape_cast %346 : vector<1x4x128xbf16> to vector<4x128xbf16>
    %c0_328 = arith.constant 0 : index
    %c0_329 = arith.constant 0 : index
    %c0_330 = arith.constant 0 : index
    %348 = vector.load %arg6[%c0_328, %c0_329, %c0_330] : memref<9x128x128xbf16, #tpu.memory_space<vmem>>, vector<1x128x128xbf16>
    %349 = vector.shape_cast %348 : vector<1x128x128xbf16> to vector<128x128xbf16>
    %cst_331 = arith.constant dense<0.000000e+00> : vector<4x128xf32>
    %350 = tpu.matmul %347, %349, %cst_331 {dimension_numbers = #tpu.dot_dimension_numbers<[1], [0], [0], [1], [0, 0, 1, 1], [], []>} : vector<4x128xbf16>, vector<128x128xbf16>, vector<4x128xf32> -> vector<4x128xf32>
    %351 = arith.addf %345, %350 : vector<4x128xf32>
    %c3_332 = arith.constant 3 : index
    %c1_333 = arith.constant 1 : index
    %c0_334 = arith.constant 0 : index
    %352 = vector.load %arg14[%c3_332, %c1_333, %c0_334] : memref<6x6x128xbf16, #tpu.memory_space<vmem>>, vector<1x4x128xbf16>
    %353 = vector.shape_cast %352 : vector<1x4x128xbf16> to vector<4x128xbf16>
    %c1_335 = arith.constant 1 : index
    %c0_336 = arith.constant 0 : index
    %c0_337 = arith.constant 0 : index
    %354 = vector.load %arg6[%c1_335, %c0_336, %c0_337] : memref<9x128x128xbf16, #tpu.memory_space<vmem>>, vector<1x128x128xbf16>
    %355 = vector.shape_cast %354 : vector<1x128x128xbf16> to vector<128x128xbf16>
    %cst_338 = arith.constant dense<0.000000e+00> : vector<4x128xf32>
    %356 = tpu.matmul %353, %355, %cst_338 {dimension_numbers = #tpu.dot_dimension_numbers<[1], [0], [0], [1], [0, 0, 1, 1], [], []>} : vector<4x128xbf16>, vector<128x128xbf16>, vector<4x128xf32> -> vector<4x128xf32>
    %357 = arith.addf %351, %356 : vector<4x128xf32>
    %c3_339 = arith.constant 3 : index
    %c2_340 = arith.constant 2 : index
    %c0_341 = arith.constant 0 : index
    %358 = vector.load %arg14[%c3_339, %c2_340, %c0_341] : memref<6x6x128xbf16, #tpu.memory_space<vmem>>, vector<1x4x128xbf16>
    %359 = vector.shape_cast %358 : vector<1x4x128xbf16> to vector<4x128xbf16>
    %c2_342 = arith.constant 2 : index
    %c0_343 = arith.constant 0 : index
    %c0_344 = arith.constant 0 : index
    %360 = vector.load %arg6[%c2_342, %c0_343, %c0_344] : memref<9x128x128xbf16, #tpu.memory_space<vmem>>, vector<1x128x128xbf16>
    %361 = vector.shape_cast %360 : vector<1x128x128xbf16> to vector<128x128xbf16>
    %cst_345 = arith.constant dense<0.000000e+00> : vector<4x128xf32>
    %362 = tpu.matmul %359, %361, %cst_345 {dimension_numbers = #tpu.dot_dimension_numbers<[1], [0], [0], [1], [0, 0, 1, 1], [], []>} : vector<4x128xbf16>, vector<128x128xbf16>, vector<4x128xf32> -> vector<4x128xf32>
    %363 = arith.addf %357, %362 : vector<4x128xf32>
    %c4_346 = arith.constant 4 : index
    %c0_347 = arith.constant 0 : index
    %c0_348 = arith.constant 0 : index
    %364 = vector.load %arg14[%c4_346, %c0_347, %c0_348] : memref<6x6x128xbf16, #tpu.memory_space<vmem>>, vector<1x4x128xbf16>
    %365 = vector.shape_cast %364 : vector<1x4x128xbf16> to vector<4x128xbf16>
    %c3_349 = arith.constant 3 : index
    %c0_350 = arith.constant 0 : index
    %c0_351 = arith.constant 0 : index
    %366 = vector.load %arg6[%c3_349, %c0_350, %c0_351] : memref<9x128x128xbf16, #tpu.memory_space<vmem>>, vector<1x128x128xbf16>
    %367 = vector.shape_cast %366 : vector<1x128x128xbf16> to vector<128x128xbf16>
    %cst_352 = arith.constant dense<0.000000e+00> : vector<4x128xf32>
    %368 = tpu.matmul %365, %367, %cst_352 {dimension_numbers = #tpu.dot_dimension_numbers<[1], [0], [0], [1], [0, 0, 1, 1], [], []>} : vector<4x128xbf16>, vector<128x128xbf16>, vector<4x128xf32> -> vector<4x128xf32>
    %369 = arith.addf %363, %368 : vector<4x128xf32>
    %c4_353 = arith.constant 4 : index
    %c1_354 = arith.constant 1 : index
    %c0_355 = arith.constant 0 : index
    %370 = vector.load %arg14[%c4_353, %c1_354, %c0_355] : memref<6x6x128xbf16, #tpu.memory_space<vmem>>, vector<1x4x128xbf16>
    %371 = vector.shape_cast %370 : vector<1x4x128xbf16> to vector<4x128xbf16>
    %c4_356 = arith.constant 4 : index
    %c0_357 = arith.constant 0 : index
    %c0_358 = arith.constant 0 : index
    %372 = vector.load %arg6[%c4_356, %c0_357, %c0_358] : memref<9x128x128xbf16, #tpu.memory_space<vmem>>, vector<1x128x128xbf16>
    %373 = vector.shape_cast %372 : vector<1x128x128xbf16> to vector<128x128xbf16>
    %cst_359 = arith.constant dense<0.000000e+00> : vector<4x128xf32>
    %374 = tpu.matmul %371, %373, %cst_359 {dimension_numbers = #tpu.dot_dimension_numbers<[1], [0], [0], [1], [0, 0, 1, 1], [], []>} : vector<4x128xbf16>, vector<128x128xbf16>, vector<4x128xf32> -> vector<4x128xf32>
    %375 = arith.addf %369, %374 : vector<4x128xf32>
    %c4_360 = arith.constant 4 : index
    %c2_361 = arith.constant 2 : index
    %c0_362 = arith.constant 0 : index
    %376 = vector.load %arg14[%c4_360, %c2_361, %c0_362] : memref<6x6x128xbf16, #tpu.memory_space<vmem>>, vector<1x4x128xbf16>
    %377 = vector.shape_cast %376 : vector<1x4x128xbf16> to vector<4x128xbf16>
    %c5_363 = arith.constant 5 : index
    %c0_364 = arith.constant 0 : index
    %c0_365 = arith.constant 0 : index
    %378 = vector.load %arg6[%c5_363, %c0_364, %c0_365] : memref<9x128x128xbf16, #tpu.memory_space<vmem>>, vector<1x128x128xbf16>
    %379 = vector.shape_cast %378 : vector<1x128x128xbf16> to vector<128x128xbf16>
    %cst_366 = arith.constant dense<0.000000e+00> : vector<4x128xf32>
    %380 = tpu.matmul %377, %379, %cst_366 {dimension_numbers = #tpu.dot_dimension_numbers<[1], [0], [0], [1], [0, 0, 1, 1], [], []>} : vector<4x128xbf16>, vector<128x128xbf16>, vector<4x128xf32> -> vector<4x128xf32>
    %381 = arith.addf %375, %380 : vector<4x128xf32>
    %c5_367 = arith.constant 5 : index
    %c0_368 = arith.constant 0 : index
    %c0_369 = arith.constant 0 : index
    %382 = vector.load %arg14[%c5_367, %c0_368, %c0_369] : memref<6x6x128xbf16, #tpu.memory_space<vmem>>, vector<1x4x128xbf16>
    %383 = vector.shape_cast %382 : vector<1x4x128xbf16> to vector<4x128xbf16>
    %c6_370 = arith.constant 6 : index
    %c0_371 = arith.constant 0 : index
    %c0_372 = arith.constant 0 : index
    %384 = vector.load %arg6[%c6_370, %c0_371, %c0_372] : memref<9x128x128xbf16, #tpu.memory_space<vmem>>, vector<1x128x128xbf16>
    %385 = vector.shape_cast %384 : vector<1x128x128xbf16> to vector<128x128xbf16>
    %cst_373 = arith.constant dense<0.000000e+00> : vector<4x128xf32>
    %386 = tpu.matmul %383, %385, %cst_373 {dimension_numbers = #tpu.dot_dimension_numbers<[1], [0], [0], [1], [0, 0, 1, 1], [], []>} : vector<4x128xbf16>, vector<128x128xbf16>, vector<4x128xf32> -> vector<4x128xf32>
    %387 = arith.addf %381, %386 : vector<4x128xf32>
    %c5_374 = arith.constant 5 : index
    %c1_375 = arith.constant 1 : index
    %c0_376 = arith.constant 0 : index
    %388 = vector.load %arg14[%c5_374, %c1_375, %c0_376] : memref<6x6x128xbf16, #tpu.memory_space<vmem>>, vector<1x4x128xbf16>
    %389 = vector.shape_cast %388 : vector<1x4x128xbf16> to vector<4x128xbf16>
    %c7_377 = arith.constant 7 : index
    %c0_378 = arith.constant 0 : index
    %c0_379 = arith.constant 0 : index
    %390 = vector.load %arg6[%c7_377, %c0_378, %c0_379] : memref<9x128x128xbf16, #tpu.memory_space<vmem>>, vector<1x128x128xbf16>
    %391 = vector.shape_cast %390 : vector<1x128x128xbf16> to vector<128x128xbf16>
    %cst_380 = arith.constant dense<0.000000e+00> : vector<4x128xf32>
    %392 = tpu.matmul %389, %391, %cst_380 {dimension_numbers = #tpu.dot_dimension_numbers<[1], [0], [0], [1], [0, 0, 1, 1], [], []>} : vector<4x128xbf16>, vector<128x128xbf16>, vector<4x128xf32> -> vector<4x128xf32>
    %393 = arith.addf %387, %392 : vector<4x128xf32>
    %c5_381 = arith.constant 5 : index
    %c2_382 = arith.constant 2 : index
    %c0_383 = arith.constant 0 : index
    %394 = vector.load %arg14[%c5_381, %c2_382, %c0_383] : memref<6x6x128xbf16, #tpu.memory_space<vmem>>, vector<1x4x128xbf16>
    %395 = vector.shape_cast %394 : vector<1x4x128xbf16> to vector<4x128xbf16>
    %c8_384 = arith.constant 8 : index
    %c0_385 = arith.constant 0 : index
    %c0_386 = arith.constant 0 : index
    %396 = vector.load %arg6[%c8_384, %c0_385, %c0_386] : memref<9x128x128xbf16, #tpu.memory_space<vmem>>, vector<1x128x128xbf16>
    %397 = vector.shape_cast %396 : vector<1x128x128xbf16> to vector<128x128xbf16>
    %cst_387 = arith.constant dense<0.000000e+00> : vector<4x128xf32>
    %398 = tpu.matmul %395, %397, %cst_387 {dimension_numbers = #tpu.dot_dimension_numbers<[1], [0], [0], [1], [0, 0, 1, 1], [], []>} : vector<4x128xbf16>, vector<128x128xbf16>, vector<4x128xf32> -> vector<4x128xf32>
    %399 = arith.addf %393, %398 : vector<4x128xf32>
    %c0_388 = arith.constant 0 : index
    %c0_389 = arith.constant 0 : index
    %400 = vector.load %arg7[%c0_388, %c0_389] : memref<1x128xf32, #tpu.memory_space<vmem>>, vector<1x128xf32>
    %401 = vector.broadcast %400 : vector<1x128xf32> to vector<4x128xf32>
    %402 = arith.addf %399, %401 : vector<4x128xf32>
    %cst_390 = arith.constant 1.000000e-01 : f32
    %403 = vector.broadcast %cst_390 : f32 to vector<4x128xf32>
    %404 = arith.mulf %403, %402 : vector<4x128xf32>
    %405 = arith.maximumf %402, %404 : vector<4x128xf32>
    %c0_391 = arith.constant 0 : index
    %c12 = arith.constant 12 : index
    %c0_392 = arith.constant 0 : index
    %406 = vector.load %arg12[%c0_391, %c12, %c0_392] : memref<1x16x128xf32, #tpu.memory_space<vmem>>, vector<1x4x128xf32>
    %407 = vector.shape_cast %406 : vector<1x4x128xf32> to vector<4x128xf32>
    %408 = vector.shape_cast %405 : vector<4x128xf32> to vector<1x4x128xf32>
    tpu.vector_store %arg12[%c0_391, %c12, %c0_392], %408 {strides = array<i32>} : memref<1x16x128xf32, #tpu.memory_space<vmem>>, vector<1x4x128xf32>,
    %cst_393 = arith.constant dense<0.000000e+00> : vector<128xf32>
    %409 = vector.multi_reduction <add>, %405, %cst_393 [0] : vector<4x128xf32> to vector<128xf32>
    %410 = vector.shape_cast %409 : vector<128xf32> to vector<1x128xf32>
    %411 = arith.addf %344, %410 : vector<1x128xf32>
    %cst_394 = arith.constant 6.250000e-02 : f32
    %412 = vector.broadcast %cst_394 : f32 to vector<1x128xf32>
    %413 = arith.mulf %411, %412 : vector<1x128xf32>
    %c0_395 = arith.constant 0 : index
    %c0_396 = arith.constant 0 : index
    %c0_397 = arith.constant 0 : index
    %414 = vector.load %arg11[%c0_395, %c0_396, %c0_397] : memref<1x1x128xf32, #tpu.memory_space<vmem>>, vector<1x1x128xf32>
    %415 = vector.shape_cast %414 : vector<1x1x128xf32> to vector<1x128xf32>
    %416 = vector.shape_cast %413 : vector<1x128xf32> to vector<1x1x128xf32>
    tpu.vector_store %arg11[%c0_395, %c0_396, %c0_397], %416 {strides = array<i32>} : memref<1x1x128xf32, #tpu.memory_space<vmem>>, vector<1x1x128xf32>,
    %417 = arith.truncf %413 : vector<1x128xf32> to vector<1x128xbf16>
    %c0_398 = arith.constant 0 : index
    %c0_399 = arith.constant 0 : index
    %418 = vector.load %arg8[%c0_398, %c0_399] : memref<128x128xbf16, #tpu.memory_space<vmem>>, vector<128x128xbf16>
    %cst_400 = arith.constant dense<0.000000e+00> : vector<1x128xf32>
    %419 = tpu.matmul %417, %418, %cst_400 {dimension_numbers = #tpu.dot_dimension_numbers<[1], [0], [0], [1], [0, 0, 1, 1], [], []>} : vector<1x128xbf16>, vector<128x128xbf16>, vector<1x128xf32> -> vector<1x128xf32>
    %c0_401 = arith.constant 0 : index
    %c0_402 = arith.constant 0 : index
    %420 = vector.load %arg9[%c0_401, %c0_402] : memref<1x128xf32, #tpu.memory_space<vmem>>, vector<1x128xf32>
    %421 = arith.addf %419, %420 : vector<1x128xf32>
    %c0_403 = arith.constant 0 : index
    %c0_404 = arith.constant 0 : index
    %c0_405 = arith.constant 0 : index
    %422 = vector.load %arg10[%c0_403, %c0_404, %c0_405] : memref<1x1x128xf32, #tpu.memory_space<vmem>>, vector<1x1x128xf32>
    %423 = vector.shape_cast %422 : vector<1x1x128xf32> to vector<1x128xf32>
    %424 = vector.shape_cast %421 : vector<1x128xf32> to vector<1x1x128xf32>
    tpu.vector_store %arg10[%c0_403, %c0_404, %c0_405], %424 {strides = array<i32>} : memref<1x1x128xf32, #tpu.memory_space<vmem>>, vector<1x1x128xf32>,
    return
  }
  func.func @transform_0(%arg0: i32) -> (i32, i32, i32) {
    %c0_i32 = arith.constant 0 : i32
    %c0_i32_0 = arith.constant 0 : i32
    %c0_i32_1 = arith.constant 0 : i32
    return %arg0, %c0_i32, %c0_i32_0 : i32, i32, i32
  }
  func.func @transform_1(%arg0: i32) -> (i32, i32) {
    %c0_i32 = arith.constant 0 : i32
    %c0_i32_0 = arith.constant 0 : i32
    %c0_i32_1 = arith.constant 0 : i32
    return %c0_i32, %c0_i32_0 : i32, i32
  }
  func.func @transform_2(%arg0: i32) -> (i32, i32) {
    %c0_i32 = arith.constant 0 : i32
    %c0_i32_0 = arith.constant 0 : i32
    %c0_i32_1 = arith.constant 0 : i32
    return %c0_i32, %c0_i32_0 : i32, i32
  }
  func.func @transform_3(%arg0: i32) -> (i32, i32, i32) {
    %c0_i32 = arith.constant 0 : i32
    %c0_i32_0 = arith.constant 0 : i32
    %c0_i32_1 = arith.constant 0 : i32
    %c0_i32_2 = arith.constant 0 : i32
    return %c0_i32, %c0_i32_0, %c0_i32_1 : i32, i32, i32
  }
  func.func @transform_4(%arg0: i32) -> (i32, i32) {
    %c0_i32 = arith.constant 0 : i32
    %c0_i32_0 = arith.constant 0 : i32
    %c0_i32_1 = arith.constant 0 : i32
    return %c0_i32, %c0_i32_0 : i32, i32
  }
  func.func @transform_5(%arg0: i32) -> (i32, i32, i32) {
    %c0_i32 = arith.constant 0 : i32
    %c0_i32_0 = arith.constant 0 : i32
    %c0_i32_1 = arith.constant 0 : i32
    %c0_i32_2 = arith.constant 0 : i32
    return %c0_i32, %c0_i32_0, %c0_i32_1 : i32, i32, i32
  }
  func.func @transform_6(%arg0: i32) -> (i32, i32) {
    %c0_i32 = arith.constant 0 : i32
    %c0_i32_0 = arith.constant 0 : i32
    %c0_i32_1 = arith.constant 0 : i32
    return %c0_i32, %c0_i32_0 : i32, i32
  }
  func.func @transform_7(%arg0: i32) -> (i32, i32) {
    %c0_i32 = arith.constant 0 : i32
    %c0_i32_0 = arith.constant 0 : i32
    %c0_i32_1 = arith.constant 0 : i32
    return %c0_i32, %c0_i32_0 : i32, i32
  }
  func.func @transform_8(%arg0: i32) -> (i32, i32) {
    %c0_i32 = arith.constant 0 : i32
    %c0_i32_0 = arith.constant 0 : i32
    %c0_i32_1 = arith.constant 0 : i32
    return %c0_i32, %c0_i32_0 : i32, i32
  }
  func.func @transform_9(%arg0: i32) -> (i32, i32, i32) {
    %c0_i32 = arith.constant 0 : i32
    %c0_i32_0 = arith.constant 0 : i32
    %c0_i32_1 = arith.constant 0 : i32
    return %arg0, %c0_i32, %c0_i32_0 : i32, i32, i32
  }
  func.func @transform_10(%arg0: i32) -> (i32, i32, i32) {
    %c0_i32 = arith.constant 0 : i32
    %c0_i32_0 = arith.constant 0 : i32
    %c0_i32_1 = arith.constant 0 : i32
    return %arg0, %c0_i32, %c0_i32_0 : i32, i32, i32
  }
  func.func @transform_11(%arg0: i32) -> (i32, i32, i32) {
    %c0_i32 = arith.constant 0 : i32
    %c0_i32_0 = arith.constant 0 : i32
    %c0_i32_1 = arith.constant 0 : i32
    return %arg0, %c0_i32, %c0_i32_0 : i32, i32, i32
  }
}

</mosaic_0001>

<bundles_post_ra>
// kernel: tpu_custom_call.1
= control target key start
LH: loop header
LB: loop body
LE: loop exit
PB: predicated region body
PF: predicated region fallthrough
CT: control target
= control target key end

     0   :  { %s12237_s0 = inlined_call_operand.vmem [shape: bf16[2,256,27], index: 0, kind: input, shape index: {}]   ;;  %s12238_s1 = inlined_call_operand.vmem [shape: bf16[27,128], index: 1, kind: input, shape index: {}]   ;;  %s12239_s2 = inlined_call_operand.vmem [shape: f32[1,128], index: 2, kind: input, shape index: {}]   ;;  %s12240_s3 = inlined_call_operand.hbm [shape: bf16[9,128,128], index: 3, kind: input, shape index: {}]   ;;  %s12241_s4 = inlined_call_operand.vmem [shape: f32[1,128], index: 4, kind: input, shape index: {}]   ;;  %s12242_s5 = inlined_call_operand.hbm [shape: bf16[9,128,128], index: 5, kind: input, shape index: {}]   ;;  %s12243_s6 = inlined_call_operand.vmem [shape: f32[1,128], index: 6, kind: input, shape index: {}]   ;;  %s12244_s7 = inlined_call_operand.vmem [shape: bf16[128,128], index: 7, kind: input, shape index: {}]   ;;  %s12245_s8 = inlined_call_operand.vmem [shape: f32[1,128], index: 8, kind: input, shape index: {}]   ;;  %s12246_s9 = inlined_call_operand.hbm [shape: f32[2,1,128], index: 9, kind: output, shape index: {0}]   ;;  %s12247_s10 = inlined_call_operand.hbm [shape: f32[2,1,128], index: 10, kind: output, shape index: {1}]   ;;  %s12248_s11 = inlined_call_operand.hbm [shape: f32[2,16,128], index: 11, kind: output, shape index: {2}]  }
   0x1   :  { %12259 = sst [smem:[#allocation20_spill]] %s12237_s0 }
   0x2   :  { %12260 = sst [smem:[#allocation21_spill]] %s12238_s1 }
   0x3   :  { %12261 = sst [smem:[#allocation22_spill]] %s12239_s2 }
   0x4   :  { %12262 = sst [smem:[#allocation23_spill]] %s12240_s3 }
   0x5   :  { %17 = vsyncpa [#allocation5], 0 }
   0x6   :  { %18 = vsyncpa [#allocation8], 0 }
   0x7   :  { %19 = vsyncpa [#allocation6], 0 }
   0x8   :  { %21 = vsyncpa [#allocation6 + $0x1], 0 }
   0x9   :  { %22 = vsyncpa [#allocation11], 0 }
   0xa   :  { %24 = vsyncpa [#allocation11 + $0x1], 0  ;;  %s10701_s17 = smov 0   ;;  %s10703_s18 = smov 0  }
   0xb   :  { %s10705_s19 = smov 0   ;;  %s10707_s20 = smov 0  }
   0xc LB: > { %s10722_s21 = sadd.s32 4294967295, %s10626_s20   ;;  %s12249_s22 = sadd.s32 4294967294, %s10626_s20   ;;  %s10626_s20 = sphi %s10707_s20, %s12325_s20   ;;  %s10622_s19 = sphi %s10705_s19, %s12324_s19   ;;  %s10618_s18 = sphi %s10703_s18, %s12323_s18   ;;  %s10614_s17 = sphi %s10701_s17, %s12322_s17  }
   0xd   : > { %s10726_s23 = sadd.s32 1, %s10626_s20   ;;  %s231_s24 = sadd.s32 1, %s10622_s19 }
   0xe   : > { %s228_s25 = ssub.s32 %s10626_s20, %s10726_s23  ;;  %p241_p0 = scmp.ne.s32.totalorder %s10622_s19, %s10618_s18 }
   0xf   : > { %p229_p1 = scmp.eq.s32.totalorder %s228_s25, 0  ;;  %p242_p2 = scmp.eq.s32.totalorder %s10722_s21, 1 }
  0x10   : > { %p247_p3 = scmp.ne.s32.totalorder %s10618_s18, %s10614_s17  ;;  %p248_p4 = scmp.eq.s32.totalorder %s12249_s22, 1 }
  0x11   : > { %s10739_s26 = scalar_select %p229_p1, %s10622_s19, %s231_s24  }
  0x12   : > { %p10741_p5 = por %p242_p2, %p241_p0  ;;  %p10745_p6 = por %p248_p4, %p247_p3 }
  0x13   : > { %12263 = sst [smem:[#allocation17_spill]] %s10739_s26  ;;  %p7913_p7 = scmp.ge.s32.totalorder %s10626_s20, 1 }
  0x14   : > { %s12265_s28 = scalar_select %p10745_p6, 1, 0 }
  0x15   : > { %p307_p8 = scmp.lt.s32.totalorder %s10626_s20, 3  ;;  %p12250_p9 = scmp.eq.s32.totalorder %s10722_s21, 0 }
  0x16   : > { %s10628_s30 = smov [#allocation4]   ;;  %s10629_s14 = smov [#allocation7]  }
  0x17   : > { %p10752_p10 = pnand %p7913_p7, %p307_p8  ;;  %s325_s12 = sshll.u32 %s10628_s30, 4  ;;  %s326_s12 = int_to_ptr.vmem [resolvable:$true] %s325_s12 }
  0x18   : > { %s341_s15 = sshll.u32 %s10629_s14, 4  ;;  %s10461_s16 = scalar_lea.vmem %s326_s12, 9216  ;;  %s342_s15 = int_to_ptr.vmem [resolvable:$true] %s341_s15 }
  0x19   : > { %p9961_p11 = pneg %p10752_p10  ;;  %p10462_p0 = scmp.ne.s32.totalorder %s326_s12, %s10461_s16 }
  0x1a   : > { %p10469_p3 = scmp.lt.s32.totalorder %s326_s12, %s326_s12  ;;  %p10470_p4 = scmp.lt.s32.totalorder %s10461_s16, %s10461_s16 }
  0x1b   : > { %p10760_p12 = pnand %p12250_p9, %p9961_p11 }
  0x1c   : > { %p10471_p7 = por %p10470_p4, %p10469_p3 }
  0x1d   : > { %p10452_p13 = pneg %p10760_p12 }
  0x1f   : > { %p10464_p1 = pnand %p10462_p0, %p10452_p13 }
  0x21   : > { %p10465_p2 = pneg %p10464_p1 }
  0x23   : > { %p10472_p8 = pnand %p10471_p7, %p10465_p2 }
  0x25   : > { %10475 = shalt.err (!%p10472_p8)
}
  0x26   : > { %s10630_s24 = smov 64   ;;  %s10631_s25 = smov 4  }
  0x27   : > { %s12268_s3 = sld [smem:[#allocation23_spill]]  ;;  %s10487_s22 = scalar_lea.vmem %s342_s15, 9216 }
  0x28   : > { %p10488_p11 = scmp.ne.s32.totalorder %s342_s15, %s10487_s22  ;;  %p10495_p9 = scmp.lt.s32.totalorder %s342_s15, %s342_s15 }
  0x29   : > { %p10496_p6 = scmp.lt.s32.totalorder %s10487_s22, %s10487_s22 }
  0x2a   : > { %p10490_p0 = pnand %p10488_p11, %p10452_p13 }
  0x2b   : > { %p10497_p3 = por %p10496_p6, %p10495_p9 }
  0x2c   : > { %p10491_p1 = pneg %p10490_p0 }
  0x2d   : > { %9964 = dma.hbm_to_vmem [thread:$0]  (!%p10760_p12), %s12268_s3, 9216, %s326_s12, [#allocation5], %s10630_s24, %s10630_s24, %s10631_s25  }
  0x2e   : > { %p10498_p2 = pnand %p10497_p3, %p10491_p1 }
  0x30   : > { %10501 = shalt.err (!%p10498_p2)
}
  0x31   : > { %9967 = dma.hbm_to_vmem [thread:$0]  (!%p10760_p12), %s12242_s5, 9216, %s342_s15, [#allocation8], %s10630_s24, %s10630_s24, %s10631_s25  }
  0x32   : > { %374 = sbr.rel (%p10752_p10) target bundleno = 1678 (0x68e), region = 56 }
  0x37   : > { %p12269_p4 = scmp.eq.s32.totalorder %s10722_s21, 0 }
  0x39   : > { %10597 = dma.done.wait (%p12269_p4), [#allocation5], 9216   ;;  %p12270_p13 = pmov %p12269_p4 }
  0x3a   : > { %p12271_p7 = pmov %p12269_p4 }
  0x3b   : > { %10599 = vsyncadd (%p12270_p13), [#allocation5], 4294958080 }
  0x3c   : > { %10601 = dma.done.wait (%p12271_p7), [#allocation8], 9216   ;;  %p12272_p6 = pmov %p12269_p4 }
  0x3d   : > { %vm615_vm0 = vcmask 1044480   ;;  %p426_p9 = scmp.lt.s32.totalorder %s10722_s21, 1  ;;  %vm616_vm1 = vcmask 1045504   ;;  %v10632_v0 = vmov 65535   ;;  %s12273_s0 = sld [smem:[#allocation20_spill]]  ;;  %vm566_vm2 = vcmask 220160  }
  0x3e   : > { %10603 = vsyncadd (%p12272_p6), [#allocation8], 4294958080  ;;  %v617_v1 = vsel %vm615_vm0, 4294967295, %v10632_v0  ;;  %s12274_s1 = sld [smem:[#allocation21_spill]]  ;;  %v10633_v22 = vmov 0   ;;  %v10043_v23 = vld [vmem:[#allocation4 + $0xb8] sm:$0xff]  }
  0x3f   : > { %s427_s22 = scalar_select %p426_p9, %s10722_s21, 1  ;;  %v618_v2 = vsel %vm616_vm1, %v617_v1, 0  ;;  %865 = vst [vmem:[#allocation2 + $0x8] sm:$0xf] %v10633_v22  ;;  %863 = vst [vmem:[#allocation2] sm:$0xf] %v10633_v22 }
  0x40   : > { %864 = vst [vmem:[#allocation2 + $0x4] sm:$0x1] %v10633_v22  ;;  %866 = vst [vmem:[#allocation2 + $0xc] sm:$0x1] %v10633_v22  ;;  %v10044_v24 = vld [vmem:[#allocation4 + $0xb0] sm:$0xff]   ;;  %v10045_v25 = vld [vmem:[#allocation4 + $0x78] sm:$0xff]  }
  0x41   : > { %s8474_s26 = sshll.u32 %s427_s22, 7  ;;  %867 = vst [vmem:[#allocation2 + $0x10] sm:$0xf] %v10633_v22  ;;  %868 = vst [vmem:[#allocation2 + $0x14] sm:$0x1] %v10633_v22  ;;  %8991 = vmatprep.subr.bf16.mxu1 %v10045_v25  ;;  %v10046_v26 = vld [vmem:[#allocation4 + $0xa8] sm:$0xff]  }
  0x42   : > { %869 = vst [vmem:[#allocation2 + $0x18] sm:$0xf] %v10633_v22  ;;  %870 = vst [vmem:[#allocation2 + $0x1c] sm:$0x1] %v10633_v22  ;;  %8992 = vmatpush3.bf16.msra.mxu1 %v10045_v25  ;;  %v10047_v27 = vld [vmem:[#allocation4 + $0x70] sm:$0xff]   ;;  %v10048_v28 = vld [vmem:[#allocation4 + $0xa0] sm:$0xff]  }
  0x43   : > { %s10797_s13 = scalar_lea.vmem %s12273_s0, %s8474_s26  ;;  %871 = vst [vmem:[#allocation2 + $0x20] sm:$0xf] %v10633_v22  ;;  %872 = vst [vmem:[#allocation2 + $0x24] sm:$0x1] %v10633_v22  ;;  %8993 = vmatprep.subr.bf16.mxu1 %v10047_v27  ;;  %v10049_v29 = vld [vmem:[#allocation4 + $0x68] sm:$0xff]   ;;  %v10050_v30 = vld [vmem:[#allocation4 + $0x98] sm:$0xff]  }
  0x44   : > { %v10025_v3 = vld [vmem:[%s12274_s1 + $0x8] sm:$0x3f]   ;;  %v10026_v4 = vld [vmem:[%s12274_s1] sm:$0xff]   ;;  %v10029_v8 = vld [vmem:[%s10797_s13 + $0x10] sm:$0xff]   ;;  %873 = vst [vmem:[#allocation2 + $0x28] sm:$0xf] %v10633_v22 }
  0x45   : > { %v620_v5 = vand.u32 %v10025_v3, %v618_v2  ;;  %v10027_v6 = vld [vmem:[%s10797_s13] sm:$0xff]   ;;  %v10028_v7 = vld [vmem:[%s10797_s13 + $0x8] sm:$0xff]   ;;  %v10030_v9 = vld [vmem:[%s10797_s13 + $0x18] sm:$0xff]   ;;  %874 = vst [vmem:[#allocation2 + $0x2c] sm:$0x1] %v10633_v22  ;;  %s12275_s2 = sld [smem:[#allocation22_spill]] }
  0x46   : > { %8959 = vmatprep.mubr.msk.bf16.mxu0 %vm566_vm2, %v10027_v6  ;;  %v10031_v10 = vld [vmem:[%s10797_s13 + $0x20] sm:$0xff]   ;;  %v10032_v11 = vld [vmem:[%s10797_s13 + $0x28] sm:$0xff]   ;;  %v10033_v12 = vld [vmem:[%s10797_s13 + $0x30] sm:$0xff]   ;;  %875 = vst [vmem:[#allocation2 + $0x30] sm:$0xf] %v10633_v22  ;;  %8994 = vmatpush3.bf16.msra.mxu1 %v10047_v27  ;;  %vm1007_vm3 = vcmask 1041409  }
  0x47   : > { %8955 = vmatprep.subr.bf16.mxu0 %v620_v5  ;;  %v10034_v13 = vld [vmem:[%s10797_s13 + $0x38] sm:$0xff]   ;;  %v10035_v14 = vld [vmem:[%s10797_s13 + $0x40] sm:$0xff]   ;;  %v10036_v15 = vld [vmem:[%s10797_s13 + $0x48] sm:$0xff]   ;;  %876 = vst [vmem:[#allocation2 + $0x34] sm:$0x1] %v10633_v22  ;;  %8995 = vmatprep.subr.bf16.mxu1 %v10049_v29  ;;  %vm980_vm5 = vcmask 1040384  }
  0x48   : > { %8956 = vmatpush3.bf16.msra.mxu0 %v620_v5  ;;  %v10037_v16 = vld [vmem:[%s10797_s13 + $0x50] sm:$0xff]   ;;  %v10038_v17 = vld [vmem:[%s10797_s13 + $0x58] sm:$0xff]   ;;  %v10039_v18 = vld [vmem:[%s10797_s13 + $0x60] sm:$0xff]   ;;  %877 = vst [vmem:[#allocation2 + $0x38] sm:$0xf] %v10633_v22  ;;  %vm1108_vm7 = vcmask 1042434  }
  0x49   : > { %8957 = vmatprep.subr.bf16.mxu0 %v10026_v4  ;;  %v10040_v19 = vld [vmem:[%s10797_s13 + $0x68] sm:$0xff]   ;;  %v10041_v20 = vld [vmem:[%s10797_s13 + $0x70] sm:$0xff]   ;;  %v10042_v21 = vld [vmem:[%s10797_s13 + $0x78] sm:$0xff]   ;;  %878 = vst [vmem:[#allocation2 + $0x3c] sm:$0x1] %v10633_v22  ;;  %vm12251_vm9 = vcmask 1043459  }
  0x4a   : > { %879 = vst [vmem:[#allocation2 + $0x40] sm:$0xf] %v10633_v22  ;;  %880 = vst [vmem:[#allocation2 + $0x44] sm:$0x1] %v10633_v22  ;;  %8996 = vmatpush3.bf16.msra.mxu1 %v10049_v29  ;;  %v10051_v31 = vld [vmem:[#allocation4 + $0x60] sm:$0xff]   ;;  %v10052_v32 = vld [vmem:[#allocation4 + $0x90] sm:$0xff]  }
  0x4b   : > { %881 = vst [vmem:[#allocation2 + $0x48] sm:$0xf] %v10633_v22  ;;  %882 = vst [vmem:[#allocation2 + $0x4c] sm:$0x1] %v10633_v22  ;;  %8997 = vmatprep.subr.bf16.mxu1 %v10051_v31  ;;  %v10053_v33 = vld [vmem:[#allocation4 + $0x58] sm:$0xff]   ;;  %v10054_v34 = vld [vmem:[#allocation4 + $0x88] sm:$0xff]  }
  0x4c   : > { %8958 = vmatpush3.bf16.msra.mxu0 %v10026_v4  ;;  %3402 = vst [vmem:[#allocation3] sm:$0x7] %v10633_v22  ;;  %3403 = vst [vmem:[#allocation3 + $0x4] sm:$0x7] %v10633_v22  ;;  %v10055_v35 = vld [vmem:[#allocation4 + $0x50] sm:$0xff]   ;;  %v10056_v36 = vld [vmem:[#allocation4 + $0x80] sm:$0xff]  }
  0x4d   : > { %3404 = vst [vmem:[#allocation3 + $0x8] sm:$0x7] %v10633_v22  ;;  %3405 = vst [vmem:[#allocation3 + $0xc] sm:$0x7] %v10633_v22  ;;  %9039 = vmatprep.subr.bf16.mxu0 %v10043_v23  ;;  %v10057_v37 = vld [vmem:[#allocation4 + $0x48] sm:$0xff]   ;;  %v10058_v38 = vld [vmem:[#allocation4 + $0x40] sm:$0xff]  }
  0x4e   : > { %3406 = vst [vmem:[#allocation3 + $0x10] sm:$0x7] %v10633_v22  ;;  %3407 = vst [vmem:[#allocation3 + $0x14] sm:$0x7] %v10633_v22  ;;  %8998 = vmatpush3.bf16.msra.mxu1 %v10051_v31  ;;  %v10059_v39 = vld [vmem:[#allocation4 + $0x138] sm:$0xff]   ;;  %vm1853_vm14 = vcmask 1042432  }
  0x4f   : > { %8960 = vmatmul.mubr.msk.bf16.vlgmr.msra.gmra.mxu0 %vm566_vm2, %v10028_v7  ;;  %8999 = vmatprep.subr.bf16.mxu1 %v10053_v33  ;;  %v10061_v40 = vld [vmem:[#allocation4 + $0x38] sm:$0xff]   ;;  %vm1008_vm4 = vsmask.f32 1280  ;;  %vm981_vm6 = vsmask.f32 7938  ;;  %vm1854_vm15 = vcmask 1046532  }
  0x50   : > { %8963 = vmatprep.mubr.msk.bf16.mxu0 %vm566_vm2, %v10029_v8  ;;  %9040 = vmatpush3.bf16.msra.mxu0 %v10043_v23  ;;  %v1400_v41 = vld [vmem:[#allocation2] sm:$0xf]  ;;  %v10842_v45 = vld [vmem:[#allocation2 + $0x4] sm:$0x1]  ;;  %vm1109_vm8 = vsmask.f32 2304  ;;  %vm10859_vm13 = vmand %vm1007_vm3, %vm1008_vm4 }
  0x51   : > { %9041 = vmatprep.subr.bf16.mxu0 %v10044_v24  ;;  %v1435_v42 = vshrl.u32 %v1400_v41, 16  ;;  %v1438_v43 = vshll.u32 %v1400_v41, 16  ;;  %v10840_v44 = vld [vmem:[%s12275_s2] ss:$0 sm:$0xff]  ;;  %v10844_v46 = vld [vmem:[#allocation2] sm:$0xe]  ;;  %vm10868_vm1 = vmand %vm980_vm5, %vm981_vm6 }
  0x52   : > { %9000 = vmatpush3.bf16.msra.mxu1 %v10053_v33  ;;  %v8022_v54 = vrot.slane %v10844_v46, 9  ;;  %v1858_v55 = vrot.slane %v10842_v45, 5  ;;  %v1444_v60 = vshll.u32 %v10842_v45, 16  ;;  %vm1282_vm10 = vsmask.f32 3328  ;;  %v10067_v45 = vld [vmem:[#allocation4 + $0x20] sm:$0xff]  }
  0x53   : > { %9001 = vmatprep.subr.bf16.mxu1 %v10055_v35  ;;  %v1437_v48 = vrot.slane %v1435_v42, 4  ;;  %v1440_v49 = vrot.slane %v1438_v43, 5  ;;  %vm1374_vm11 = vsmask.f32 256  ;;  %vm1058_vm12 = vsmask.f32 7942  ;;  %vm10883_vm6 = vmand %vm12251_vm9, %vm1282_vm10 }
  0x54   : > { %9042 = vmatpush3.bf16.msra.mxu0 %v10044_v24  ;;  %vm1239_vm0 = vsmask.f32 7946  ;;  %v12280_v29 = vmov 0  ;;  %vm1432_vm4 = vsmask.f32 7440  ;;  %vm10894_vm9 = vmand %vm980_vm5, %vm1374_vm11  ;;  %s11896_s29 = sand.u32 1, %s10618_s18  }
  0x55   : > { %9043 = vmatprep.subr.bf16.mxu0 %v10046_v26  ;;  %v1441_v59 = vor.u32 %v1440_v49, %v1437_v48  ;;  %v1376_v49 = vld [vmem:[#allocation2 + $0xc] sm:$0x1]  ;;  %vm10904_vm5 = vmand %vm1007_vm3, %vm1058_vm12  ;;  %s7920_s15 = sshll.u32 %s11896_s29, 4  ;;  %s418_s25 = scalar_lea.vmem [#allocation10], %s11896_s29 }
  0x56   : > { %9002 = vmatpush3.bf16.msra.mxu1 %v10055_v35  ;;  %vm10914_vm3 = vmor %vm1853_vm14, %vm1854_vm15  ;;  %s11913_s24 = scalar_lea.vmem [#allocation12], %s7920_s15  ;;  %s7731_s30 = sand.u32 1, %s10722_s21  }
  0x57   : > { %8964 = vmatmul.mubr.msk.bf16.gmra.mxu0 %vm566_vm2, %v10030_v9  ;;  %9003 = vmatprep.subr.bf16.mxu1 %v10057_v37  ;;  %v10854_v6 = vrot.slane %v1441_v59, 4  ;;  %vm10920_vm11 = vmand %vm1108_vm7, %vm1239_vm0  ;;  %s12258_s14 = sshll.u32 %s10722_s21, 4  ;;  %s7775_s12 = sshll.u32 %s11913_s24, 4  ;;  %s12155_s12 = int_to_ptr.vmem [resolvable:$true] %s7775_s12 }
  0x58   : > { %8967 = vmatprep.mubr.msk.bf16.mxu0 %vm566_vm2, %v10031_v10  ;;  %9044 = vmatpush3.bf16.msra.mxu0 %v10046_v26  ;;  %s12131_s26 = scalar_lea.hbm %s12247_s10, %s12258_s14  ;;  %s7762_s13 = sshll.u32 %s418_s25, 4  ;;  %s7763_s13 = int_to_ptr.vmem [resolvable:$true] %s7762_s13 }
  0x59   : > { %9045 = vmatprep.subr.bf16.mxu0 %v10048_v28  ;;  %s12134_s15 = scalar_lea.sflag [#allocation11], %s7731_s30  ;;  %s10502_s0 = scalar_lea.vmem %s7763_s13, 16 }
  0x5a   : > { %9004 = vmatpush3.bf16.msra.mxu1 %v10057_v37  ;;  %p10503_p10 = scmp.ne.s32.totalorder %s7763_s13, %s10502_s0  ;;  %s10636_s1 = smov [#allocation10]  }
  0x5b   : > { %9005 = vmatprep.subr.bf16.mxu1 %v10058_v38  ;;  %s10506_s2 = sshll.u32 %s10636_s1, 4  ;;  %s10507_s2 = int_to_ptr.vmem [resolvable:$false] %s10506_s2 }
  0x5c   : > { %9046 = vmatpush3.bf16.msra.mxu0 %v10048_v28  ;;  %p10504_p12 = pnand %p10503_p10, %p10741_p5  ;;  %s10508_s3 = scalar_lea.vmem %s10507_s2, 32 }
  0x5d   : > { %9047 = vmatprep.subr.bf16.mxu0 %v10050_v30  ;;  %p10509_p11 = scmp.lt.s32.totalorder %s7763_s13, %s10507_s2  ;;  %p10510_p0 = scmp.lt.s32.totalorder %s10508_s3, %s10502_s0 }
  0x5e   : > { %9006 = vmatpush3.bf16.msra.mxu1 %v10058_v38  ;;  %v1284_v38 = vld [vmem:[#allocation2 + $0x8] sm:$0x8]  ;;  %p10505_p8 = pneg %p10504_p12 }
  0x5f   : > { %8968 = vmatmul.mubr.msk.bf16.gmra.mxu0 %vm566_vm2, %v10032_v11  ;;  %9015 = vmatprep.subr.bf16.mxu1 %v10061_v40  ;;  %p10511_p1 = por %p10510_p0, %p10509_p11 }
  0x60   : > { %8971 = vmatprep.mubr.msk.bf16.mxu0 %vm566_vm2, %v10033_v12  ;;  %9048 = vmatpush3.bf16.msra.mxu0 %v10050_v30 }
  0x61   : > { %9049 = vmatprep.subr.bf16.mxu0 %v10052_v32  ;;  %p10512_p3 = pnand %p10511_p1, %p10505_p8 }
  0x64   : > { %9050 = vmatpush3.bf16.msra.mxu0 %v10052_v32 }
  0x65   : > { %9051 = vmatprep.subr.bf16.mxu0 %v10054_v34 }
  0x67   : > { %8972 = vmatmul.mubr.msk.bf16.gmra.mxu0 %vm566_vm2, %v10034_v13  ;;  %v1010_v13 = vld [vmem:[#allocation2 + $0x8] sm:$0x2] }
  0x68   : > { %8975 = vmatprep.mubr.msk.bf16.mxu0 %vm566_vm2, %v10035_v14  ;;  %9052 = vmatpush3.bf16.msra.mxu0 %v10054_v34 }
  0x69   : > { %9053 = vmatprep.subr.bf16.mxu0 %v10056_v36 }
  0x6c   : > { %9054 = vmatpush3.bf16.msra.mxu0 %v10056_v36 }
  0x6d   : > { %9087 = vmatprep.subr.bf16.mxu0 %v10059_v39 }
  0x6f   : > { %8976 = vmatmul.mubr.msk.bf16.gmra.mxu0 %vm566_vm2, %v10036_v15 }
  0x70   : > { %8979 = vmatprep.mubr.msk.bf16.mxu0 %vm566_vm2, %v10037_v16 }
  0x77   : > { %8980 = vmatmul.mubr.msk.bf16.gmra.mxu0 %vm566_vm2, %v10038_v17 }
  0x78   : > { %8983 = vmatprep.mubr.msk.bf16.mxu0 %vm566_vm2, %v10039_v18 }
  0x7f   : > { %8984 = vmatmul.mubr.msk.bf16.gmra.mxu0 %vm566_vm2, %v10040_v19  ;;  %v10863_v19 = vrot.slane %v1444_v60, 5 }
  0x80   : > { %8987 = vmatprep.mubr.msk.bf16.mxu0 %vm566_vm2, %v10041_v20  ;;  %v983_v20 = vld [vmem:[#allocation2 + $0x8] sm:$0x1] }
  0x87   : > { %8988 = vmatmul.mubr.msk.bf16.gmra.mxu0 %vm566_vm2, %v10042_v21  ;;  %v1111_v21 = vld [vmem:[#allocation2 + $0x8] sm:$0x4]  ;;  %vm10875_vm2 = vmand %vm1108_vm7, %vm1109_vm8  ;;  %vm1324_vm8 = vsmask.f32 7950 }
  0x88   : > { %v12281_v29 = vsel %vm10875_vm2, 4294967295, %v12280_v29  ;;  %vm10935_vm7 = vmor %vm1282_vm10, %vm1432_vm4  ;;  %vm12296_vm10 = vcmask 1043459  }
  0x89   : > { %12282 = vst [vmem:[#allocation18_spill] sm:$0xff] %v12281_v29  ;;  %vm10955_vm12 = vmand %vm12296_vm10, %vm1324_vm8 }
 0x10f   : > { %v8961_v47 = vpop.f32.mrf.mxu0 }
 0x110   : > { %v665_v50 = vadd.f32 %v8961_v47, %v10840_v44 }
 0x111   : > { %v656_v51 = vpop.f32.mrf.mxu0 }
 0x112   : > { %v785_v52 = vmul.f32 0.1, %v665_v50  ;;  %v657_v53 = vadd.f32 %v10840_v44, %v656_v51 }
 0x113   : > { %v8962_v56 = vpop.f32.mrf.mxu0 }
 0x114   : > { %v783_v57 = vmul.f32 0.1, %v657_v53  ;;  %v668_v58 = vadd.f32 %v8962_v56, %v10840_v44  ;;  %v817_v62 = vmax.f32 %v665_v50, %v785_v52 }
 0x115   : > { %v659_v61 = vpop.f32.mrf.mxu0 }
 0x116   : > { %v815_v63 = vmax.f32 %v657_v53, %v783_v57  ;;  %v786_v0 = vmul.f32 0.1, %v668_v58  ;;  %v660_v1 = vadd.f32 %v10840_v44, %v659_v61 }
 0x117   : > { %v8965_v2 = vpop.f32.mrf.mxu0 }
 0x118   : > { %v847_v3 = vmax.f32 %v815_v63, %v817_v62  ;;  %v784_v4 = vmul.f32 0.1, %v660_v1  ;;  %v681_v5 = vadd.f32 %v8965_v2, %v10840_v44  ;;  %v818_v7 = vmax.f32 %v668_v58, %v786_v0  ;;  %v1013_v62 = vld [vmem:[#allocation2 + $0x10] sm:$0x2] }
 0x119   : > { %v672_v8 = vpop.f32.mrf.mxu0 }
 0x11a   : > { %v891_v9 = vrot.slane %v847_v3, 1  ;;  %v816_v10 = vmax.f32 %v660_v1, %v784_v4  ;;  %v789_v11 = vmul.f32 0.1, %v681_v5  ;;  %v673_v12 = vadd.f32 %v10840_v44, %v672_v8 }
 0x11b   : > { %v8966_v14 = vpop.f32.mrf.mxu0 }
 0x11c   : > { %v907_v15 = vmax.f32 %v847_v3, %v891_v9  ;;  %v848_v17 = vmax.f32 %v816_v10, %v818_v7  ;;  %v787_v18 = vmul.f32 0.1, %v673_v12  ;;  %v684_v22 = vadd.f32 %v8966_v14, %v10840_v44  ;;  %v986_v10 = vld [vmem:[#allocation2 + $0x10] sm:$0x1] }
 0x11d   : > { %v675_v23 = vpop.f32.mrf.mxu0  ;;  %v821_v30 = vmax.f32 %v681_v5, %v789_v11  ;;  %v12287_v5 = vmov 0 }
 0x11e   : > { %v915_v24 = vpack.c.bf16 %v907_v15, %v907_v15  ;;  %v1143_v26 = vrot.slane %v848_v17, 1  ;;  %v819_v27 = vmax.f32 %v673_v12, %v787_v18  ;;  %v676_v28 = vadd.f32 %v10840_v44, %v675_v23 }
 0x11f   : > { %v790_v31 = vmul.f32 0.1, %v684_v22  ;;  %v8969_v32 = vpop.f32.mrf.mxu0  ;;  %v12288_v5 = vsel %vm10904_vm5, 4294967295, %v12287_v5 }
 0x120   : > { %v948_v33 = vshll.u32 %v915_v24, 16  ;;  %v1011_v34 = vsel %vm10859_vm13, %v915_v24, %v1010_v13  ;;  %v7974_v35 = vrot.slane %v915_v24, 9  ;;  %v1159_v36 = vmax.f32 %v848_v17, %v1143_v26  ;;  %12289 = vst [vmem:[#allocation19_spill] sm:$0xff] %v12288_v5  ;;  %v1114_v13 = vld [vmem:[#allocation2 + $0x10] sm:$0x4] }
 0x121   : > { %1012 = vst [vmem:[#allocation2 + $0x8] sm:$0x2] %v1011_v34  ;;  %v849_v39 = vmax.f32 %v819_v27, %v821_v30  ;;  %v788_v40 = vmul.f32 0.1, %v676_v28  ;;  %v697_v41 = vadd.f32 %v8969_v32, %v10840_v44  ;;  %v688_v42 = vpop.f32.mrf.mxu0  ;;  %v822_v50 = vmax.f32 %v684_v22, %v790_v31  ;;  %v10131_v34 = vld [vmem:[#allocation7 + $0x58] sm:$0xff]  }
 0x122   : > { %v984_v43 = vsel %vm10868_vm1, %v948_v33, %v983_v20  ;;  %v1112_v47 = vsel %vm10875_vm2, %v7974_v35, %v1111_v21  ;;  %v8483_v48 = vpack.c.bf16 %v1159_v36, %v1159_v36  ;;  %v689_v57 = vadd.f32 %v10840_v44, %v688_v42  ;;  %v10449_v21 = vld [vmem:[#allocation4 + $0x38] sm:$0xff]  }
 0x123   : > { %985 = vst [vmem:[#allocation2 + $0x8] sm:$0x1] %v984_v43  ;;  %1113 = vst [vmem:[#allocation2 + $0x8] sm:$0x4] %v1112_v47  ;;  %v892_v52 = vrot.slane %v849_v39, 1  ;;  %v820_v53 = vmax.f32 %v676_v28, %v788_v40  ;;  %v8970_v58 = vpop.f32.mrf.mxu0  ;;  %v7966_v4 = vrot.slane %v948_v33, 9 }
 0x124   : > { %v793_v56 = vmul.f32 0.1, %v697_v41  ;;  %v1200_v59 = vshll.u32 %v8483_v48, 16  ;;  %v1265_v60 = vrot.slane %v8483_v48, 6  ;;  %v7990_v61 = vrot.slane %v8483_v48, 11 }
 0x125   : > { %v10900_v63 = vadd.f32 %v8970_v58, %v10840_v44  ;;  %v908_v0 = vmax.f32 %v849_v39, %v892_v52  ;;  %v850_v1 = vmax.f32 %v820_v53, %v822_v50  ;;  %v791_v2 = vmul.f32 0.1, %v689_v57  ;;  %v691_v3 = vpop.f32.mrf.mxu0  ;;  %v1287_v47 = vld [vmem:[#allocation2 + $0x10] sm:$0x8]  ;;  %v1379_v48 = vld [vmem:[#allocation2 + $0x14] sm:$0x1] }
 0x126   : > { %v1202_v7 = vrot.slane %v1200_v59, 6  ;;  %v1285_v8 = vsel %vm10883_vm6, %v1265_v60, %v1284_v38  ;;  %v1377_v9 = vsel %vm10894_vm9, %v7990_v61, %v1376_v49  ;;  %v1308_v11 = vrot.slane %v1200_v59, 7 }
 0x127   : > { %1286 = vst [vmem:[#allocation2 + $0x8] sm:$0x8] %v1285_v8  ;;  %1378 = vst [vmem:[#allocation2 + $0xc] sm:$0x1] %v1377_v9  ;;  %v916_v12 = vpack.c.bf16 %v908_v0, %v908_v0  ;;  %v1144_v14 = vrot.slane %v850_v1, 1  ;;  %v823_v15 = vmax.f32 %v689_v57, %v791_v2  ;;  %v8973_v17 = vpop.f32.mrf.mxu0  ;;  %v825_v22 = vmax.f32 %v697_v41, %v793_v56 }
 0x128   : > { %v1060_v20 = vld [vmem:[#allocation2 + $0x8] sm:$0x2]  ;;  %v794_v23 = vmul.f32 0.1, %v10900_v63  ;;  %v692_v24 = vadd.f32 %v10840_v44, %v691_v3  ;;  %v10927_v26 = vadd.f32 %v8973_v17, %v10840_v44  ;;  %v10945_v39 = vsel %vm10914_vm3, %v8022_v54, %v1858_v55 }
 0x129   : > { %v1061_v27 = vsel %vm10904_vm5, %v7966_v4, %v1060_v20  ;;  %v951_v28 = vshll.u32 %v916_v12, 16  ;;  %v1014_v30 = vsel %vm10859_vm13, %v916_v12, %v1013_v62  ;;  %v7975_v31 = vrot.slane %v916_v12, 9  ;;  %v704_v32 = vpop.f32.mrf.mxu0 }
 0x12a   : > { %1062 = vst [vmem:[#allocation2 + $0x8] sm:$0x2] %v1061_v27  ;;  %v1241_v33 = vld [vmem:[#allocation2 + $0x8] sm:$0x4]  ;;  %1015 = vst [vmem:[#allocation2 + $0x10] sm:$0x2] %v1014_v30  ;;  %v1160_v35 = vmax.f32 %v850_v1, %v1144_v14  ;;  %v851_v36 = vmax.f32 %v823_v15, %v825_v22  ;;  %v826_v52 = vmax.f32 %v10900_v63, %v794_v23 }
 0x12b   : > { %v792_v38 = vmul.f32 0.1, %v692_v24  ;;  %v1242_v40 = vsel %vm10920_vm11, %v1202_v7, %v1241_v33  ;;  %v987_v41 = vsel %vm10868_vm1, %v951_v28, %v986_v10  ;;  %v7967_v42 = vrot.slane %v951_v28, 9  ;;  %v8974_v49 = vpop.f32.mrf.mxu0  ;;  %v1016_v63 = vld [vmem:[#allocation2 + $0x18] sm:$0x2] }
 0x12c   : > { %v1115_v43 = vsel %vm10875_vm2, %v7975_v31, %v1114_v13  ;;  %1243 = vst [vmem:[#allocation2 + $0x8] sm:$0x4] %v1242_v40  ;;  %988 = vst [vmem:[#allocation2 + $0x10] sm:$0x1] %v987_v41  ;;  %v8484_v46 = vpack.c.bf16 %v1160_v35, %v1160_v35  ;;  %v893_v54 = vrot.slane %v851_v36, 1  ;;  %v705_v53 = vadd.f32 %v10840_v44, %v704_v32 }
 0x12d   : > { %1116 = vst [vmem:[#allocation2 + $0x10] sm:$0x4] %v1115_v43  ;;  %v824_v55 = vmax.f32 %v692_v24, %v792_v38  ;;  %v797_v50 = vmul.f32 0.1, %v10927_v26  ;;  %v10963_v56 = vadd.f32 %v8974_v49, %v10840_v44  ;;  %v707_v57 = vpop.f32.mrf.mxu0  ;;  %v1447_v58 = vsel %vm10935_vm7, %v10854_v6, %v10863_v19  ;;  %v989_v13 = vld [vmem:[#allocation2 + $0x18] sm:$0x1] }
 0x12e   : > { %v1326_v59 = vld [vmem:[#allocation2 + $0x8] sm:$0x8]  ;;  %v1204_v60 = vshll.u32 %v8484_v46, 16  ;;  %v1266_v61 = vrot.slane %v8484_v46, 6  ;;  %v7991_v62 = vrot.slane %v8484_v46, 11  ;;  %v909_v0 = vmax.f32 %v851_v36, %v893_v54 }
 0x12f   : > { %v1327_v1 = vsel %vm10955_vm12, %v1308_v11, %v1326_v59  ;;  %v852_v2 = vmax.f32 %v824_v55, %v826_v52  ;;  %v829_v3 = vmax.f32 %v10927_v26, %v797_v50  ;;  %v795_v4 = vmul.f32 0.1, %v705_v53  ;;  %v8977_v7 = vpop.f32.mrf.mxu0  ;;  %v1117_v14 = vld [vmem:[#allocation2 + $0x18] sm:$0x4]  ;;  %v1290_v40 = vld [vmem:[#allocation2 + $0x18] sm:$0x8] }
 0x130   : > { %1328 = vst [vmem:[#allocation2 + $0x8] sm:$0x8] %v1327_v1  ;;  %v1206_v8 = vrot.slane %v1204_v60, 6  ;;  %v1288_v9 = vsel %vm10883_vm6, %v1266_v61, %v1287_v47  ;;  %v1309_v10 = vrot.slane %v1204_v60, 7  ;;  %v1380_v12 = vsel %vm10894_vm9, %v7991_v62, %v1379_v48  ;;  %v1382_v60 = vld [vmem:[#allocation2 + $0x1c] sm:$0x1] }
 0x131   : > { %v1063_v15 = vld [vmem:[#allocation2 + $0x10] sm:$0x2]  ;;  %1289 = vst [vmem:[#allocation2 + $0x10] sm:$0x8] %v1288_v9  ;;  %1381 = vst [vmem:[#allocation2 + $0x14] sm:$0x1] %v1380_v12  ;;  %v917_v11 = vpack.c.bf16 %v909_v0, %v909_v0  ;;  %v827_v20 = vmax.f32 %v705_v53, %v795_v4  ;;  %v720_v23 = vpop.f32.mrf.mxu0  ;;  %v708_v26 = vadd.f32 %v10840_v44, %v707_v57 }
 0x132   : > { %v1145_v17 = vrot.slane %v852_v2, 1  ;;  %v798_v22 = vmul.f32 0.1, %v10963_v56  ;;  %v1064_v24 = vsel %vm10904_vm5, %v7967_v42, %v1063_v15  ;;  %v729_v27 = vadd.f32 %v8977_v7, %v10840_v44  ;;  %v1019_v12 = vld [vmem:[#allocation2 + $0x20] sm:$0x2] }
 0x133   : > { %v721_v28 = vadd.f32 %v10840_v44, %v720_v23  ;;  %1065 = vst [vmem:[#allocation2 + $0x10] sm:$0x2] %v1064_v24  ;;  %v954_v31 = vshll.u32 %v917_v11, 16  ;;  %v1017_v32 = vsel %vm10859_vm13, %v917_v11, %v1016_v63  ;;  %v7976_v33 = vrot.slane %v917_v11, 9  ;;  %v8978_v36 = vpop.f32.mrf.mxu0  ;;  %v992_v11 = vld [vmem:[#allocation2 + $0x20] sm:$0x1] }
 0x134   : > { %v1244_v30 = vld [vmem:[#allocation2 + $0x10] sm:$0x4]  ;;  %v1161_v35 = vmax.f32 %v852_v2, %v1145_v17  ;;  %1018 = vst [vmem:[#allocation2 + $0x18] sm:$0x2] %v1017_v32  ;;  %v853_v41 = vmax.f32 %v827_v20, %v829_v3  ;;  %v830_v42 = vmax.f32 %v10963_v56, %v798_v22  ;;  %v796_v43 = vmul.f32 0.1, %v708_v26 }
 0x135   : > { %v1245_v38 = vsel %vm10920_vm11, %v1206_v8, %v1244_v30  ;;  %v990_v47 = vsel %vm10868_vm1, %v954_v31, %v989_v13  ;;  %v7968_v48 = vrot.slane %v954_v31, 9  ;;  %v1118_v49 = vsel %vm10875_vm2, %v7976_v33, %v1117_v14  ;;  %v723_v54 = vpop.f32.mrf.mxu0  ;;  %v1120_v23 = vld [vmem:[#allocation2 + $0x20] sm:$0x4] }
 0x136   : > { %1246 = vst [vmem:[#allocation2 + $0x10] sm:$0x4] %v1245_v38  ;;  %v8485_v46 = vpack.c.bf16 %v1161_v35, %v1161_v35  ;;  %991 = vst [vmem:[#allocation2 + $0x18] sm:$0x1] %v990_v47  ;;  %v894_v55 = vrot.slane %v853_v41, 1  ;;  %v828_v50 = vmax.f32 %v708_v26, %v796_v43  ;;  %v10992_v61 = vadd.f32 %v8978_v36, %v10840_v44 }
 0x137   : > { %1119 = vst [vmem:[#allocation2 + $0x18] sm:$0x4] %v1118_v49  ;;  %v801_v52 = vmul.f32 0.1, %v729_v27  ;;  %v799_v53 = vmul.f32 0.1, %v721_v28  ;;  %v8981_v62 = vpop.f32.mrf.mxu0  ;;  %v724_v24 = vadd.f32 %v10840_v44, %v723_v54 }
 0x138   : > { %v1208_v57 = vshll.u32 %v8485_v46, 16  ;;  %v1267_v59 = vrot.slane %v8485_v46, 6  ;;  %v7992_v56 = vrot.slane %v8485_v46, 11  ;;  %v1329_v0 = vld [vmem:[#allocation2 + $0x10] sm:$0x8]  ;;  %v910_v1 = vmax.f32 %v853_v41, %v894_v55 }
 0x139   : > { %v854_v63 = vmax.f32 %v828_v50, %v830_v42  ;;  %v833_v2 = vmax.f32 %v729_v27, %v801_v52  ;;  %v831_v3 = vmax.f32 %v721_v28, %v799_v53  ;;  %v1330_v4 = vsel %vm10955_vm12, %v1309_v10, %v1329_v0  ;;  %v736_v13 = vpop.f32.mrf.mxu0  ;;  %v11012_v35 = vld [vmem:[#allocation2 + $0x8] sm:$0xe]  ;;  %v1293_v54 = vld [vmem:[#allocation2 + $0x20] sm:$0x8]  ;;  %v1385_v55 = vld [vmem:[#allocation2 + $0x24] sm:$0x1] }
 0x13a   : > { %v1210_v7 = vrot.slane %v1208_v57, 6  ;;  %v1291_v8 = vsel %vm10883_vm6, %v1267_v59, %v1290_v40  ;;  %v1310_v9 = vrot.slane %v1208_v57, 7  ;;  %1331 = vst [vmem:[#allocation2 + $0x10] sm:$0x8] %v1330_v4  ;;  %v1383_v14 = vsel %vm10894_vm9, %v7992_v56, %v1382_v60  ;;  %v1022_v53 = vld [vmem:[#allocation2 + $0x28] sm:$0x2] }
 0x13b   : > { %1292 = vst [vmem:[#allocation2 + $0x18] sm:$0x8] %v1291_v8  ;;  %v918_v15 = vpack.c.bf16 %v910_v1, %v910_v1  ;;  %v1146_v17 = vrot.slane %v854_v63, 1  ;;  %v855_v20 = vmax.f32 %v831_v3, %v833_v2  ;;  %v1066_v22 = vld [vmem:[#allocation2 + $0x18] sm:$0x2]  ;;  %v11003_v26 = vadd.f32 %v8981_v62, %v10840_v44  ;;  %v8982_v28 = vpop.f32.mrf.mxu0 }
 0x13c   : > { %1384 = vst [vmem:[#allocation2 + $0x1c] sm:$0x1] %v1383_v14  ;;  %v802_v10 = vmul.f32 0.1, %v10992_v61  ;;  %v11006_v27 = vadd.f32 %v10840_v44, %v736_v13  ;;  %v1067_v30 = vsel %vm10904_vm5, %v7968_v48, %v1066_v22  ;;  %v800_v42 = vmul.f32 0.1, %v724_v24 }
 0x13d   : > { %v957_v31 = vshll.u32 %v918_v15, 16  ;;  %v1020_v32 = vsel %vm10859_vm13, %v918_v15, %v1019_v12  ;;  %v7977_v33 = vrot.slane %v918_v15, 9  ;;  %1068 = vst [vmem:[#allocation2 + $0x18] sm:$0x2] %v1067_v30  ;;  %v1162_v38 = vmax.f32 %v854_v63, %v1146_v17  ;;  %v739_v43 = vpop.f32.mrf.mxu0  ;;  %v995_v12 = vld [vmem:[#allocation2 + $0x28] sm:$0x1] }
 0x13e   : > { %v1247_v36 = vld [vmem:[#allocation2 + $0x18] sm:$0x4]  ;;  %1021 = vst [vmem:[#allocation2 + $0x20] sm:$0x2] %v1020_v32  ;;  %v895_v40 = vrot.slane %v855_v20, 1  ;;  %v834_v41 = vmax.f32 %v10992_v61, %v802_v10  ;;  %v832_v57 = vmax.f32 %v724_v24, %v800_v42  ;;  %v748_v61 = vadd.f32 %v8982_v28, %v10840_v44 }
 0x13f   : > { %v1248_v47 = vsel %vm10920_vm11, %v1210_v7, %v1247_v36  ;;  %v993_v48 = vsel %vm10868_vm1, %v957_v31, %v992_v11  ;;  %v7969_v49 = vrot.slane %v957_v31, 9  ;;  %v1121_v46 = vsel %vm10875_vm2, %v7977_v33, %v1120_v23  ;;  %v8985_v56 = vpop.f32.mrf.mxu0  ;;  %v1123_v23 = vld [vmem:[#allocation2 + $0x28] sm:$0x4]  ;;  %v11034_v10 = vld [vmem:[#allocation2 + $0xc] sm:$0x1] }
 0x140   : > { %1249 = vst [vmem:[#allocation2 + $0x18] sm:$0x4] %v1248_v47  ;;  %994 = vst [vmem:[#allocation2 + $0x20] sm:$0x1] %v993_v48  ;;  %v8486_v50 = vpack.c.bf16 %v1162_v38, %v1162_v38  ;;  %v911_v52 = vmax.f32 %v855_v20, %v895_v40  ;;  %v805_v59 = vmul.f32 0.1, %v11003_v26  ;;  %v740_v62 = vadd.f32 %v10840_v44, %v739_v43 }
 0x141   : > { %1122 = vst [vmem:[#allocation2 + $0x20] sm:$0x4] %v1121_v46  ;;  %v803_v60 = vmul.f32 0.1, %v11006_v27  ;;  %v8023_v0 = vrot.slane %v11012_v35, 9  ;;  %v752_v7 = vpop.f32.mrf.mxu0  ;;  %v856_v13 = vmax.f32 %v832_v57, %v834_v41  ;;  %v11052_v57 = vadd.f32 %v8985_v56, %v10840_v44 }
 0x142   : > { %v1332_v1 = vld [vmem:[#allocation2 + $0x18] sm:$0x8]  ;;  %v1212_v63 = vshll.u32 %v8486_v50, 16  ;;  %v1268_v2 = vrot.slane %v8486_v50, 6  ;;  %v7993_v3 = vrot.slane %v8486_v50, 11  ;;  %v919_v4 = vpack.c.bf16 %v911_v52, %v911_v52 }
 0x143   : > { %v1333_v8 = vsel %vm10955_vm12, %v1310_v9, %v1332_v1  ;;  %v837_v14 = vmax.f32 %v11003_v26, %v805_v59  ;;  %v835_v15 = vmax.f32 %v11006_v27, %v803_v60  ;;  %v8986_v24 = vpop.f32.mrf.mxu0  ;;  %v1147_v30 = vrot.slane %v856_v13, 1  ;;  %v11038_v31 = vld [vmem:[#allocation2 + $0x8] sm:$0xf]  ;;  %v1388_v1 = vld [vmem:[#allocation2 + $0x2c] sm:$0x1] }
 0x144   : > { %1334 = vst [vmem:[#allocation2 + $0x18] sm:$0x8] %v1333_v8  ;;  %v1214_v11 = vrot.slane %v1212_v63, 6  ;;  %v1294_v17 = vsel %vm10883_vm6, %v1268_v2, %v1293_v54  ;;  %v1311_v20 = vrot.slane %v1212_v63, 7  ;;  %v1386_v22 = vsel %vm10894_vm9, %v7993_v3, %v1385_v55  ;;  %v1296_v52 = vld [vmem:[#allocation2 + $0x28] sm:$0x8] }
 0x145   : > { %v1069_v9 = vld [vmem:[#allocation2 + $0x20] sm:$0x2]  ;;  %1295 = vst [vmem:[#allocation2 + $0x20] sm:$0x8] %v1294_v17  ;;  %1387 = vst [vmem:[#allocation2 + $0x24] sm:$0x1] %v1386_v22  ;;  %v1023_v26 = vsel %vm10859_vm13, %v919_v4, %v1022_v53  ;;  %v857_v33 = vmax.f32 %v835_v15, %v837_v14  ;;  %v11042_v40 = vpop.f32.mrf.mxu0  ;;  %v1163_v48 = vmax.f32 %v856_v13, %v1147_v30 }
 0x146   : > { %v960_v28 = vshll.u32 %v919_v4, 16  ;;  %v7978_v27 = vrot.slane %v919_v4, 9  ;;  %v1070_v32 = vsel %vm10904_vm5, %v7969_v49, %v1069_v9  ;;  %1024 = vst [vmem:[#allocation2 + $0x28] sm:$0x2] %v1023_v26  ;;  %v806_v36 = vmul.f32 0.1, %v748_v61 }
 0x147   : > { %v804_v38 = vmul.f32 0.1, %v740_v62  ;;  %1071 = vst [vmem:[#allocation2 + $0x20] sm:$0x2] %v1070_v32  ;;  %v896_v49 = vrot.slane %v857_v33, 1  ;;  %v8487_v50 = vpack.c.bf16 %v1163_v48, %v1163_v48  ;;  %v1862_v53 = vrot.slane %v11034_v10, 5  ;;  %v11055_v60 = vpop.f32.mrf.mxu0 }
 0x148   : > { %v1250_v41 = vld [vmem:[#allocation2 + $0x20] sm:$0x4]  ;;  %v996_v42 = vsel %vm10868_vm1, %v960_v28, %v995_v12  ;;  %v7970_v43 = vrot.slane %v960_v28, 9  ;;  %v1124_v47 = vsel %vm10875_vm2, %v7978_v27, %v1123_v23  ;;  %v838_v54 = vmax.f32 %v748_v61, %v806_v36  ;;  %v1025_v12 = vld [vmem:[#allocation2 + $0x30] sm:$0x2] }
 0x149   : > { %v1251_v46 = vsel %vm10920_vm11, %v1214_v11, %v1250_v41  ;;  %997 = vst [vmem:[#allocation2 + $0x28] sm:$0x1] %v996_v42  ;;  %1125 = vst [vmem:[#allocation2 + $0x28] sm:$0x4] %v1124_v47  ;;  %v836_v55 = vmax.f32 %v740_v62, %v804_v38  ;;  %v753_v59 = vadd.f32 %v10840_v44, %v752_v7  ;;  %v1449_v61 = vshrl.u32 %v11038_v31, 16  ;;  %v768_v28 = vpop.f32.mrf.mxu0 }
 0x14a   : > { %1252 = vst [vmem:[#allocation2 + $0x20] sm:$0x4] %v1251_v46  ;;  %v912_v63 = vmax.f32 %v857_v33, %v896_v49  ;;  %v11058_v3 = vadd.f32 %v8986_v24, %v10840_v44  ;;  %v1216_v62 = vshll.u32 %v8487_v50, 16  ;;  %v1269_v4 = vrot.slane %v8487_v50, 6  ;;  %v998_v35 = vld [vmem:[#allocation2 + $0x30] sm:$0x1] }
 0x14b   : > { %v858_v2 = vmax.f32 %v836_v55, %v838_v54  ;;  %v7994_v8 = vrot.slane %v8487_v50, 11  ;;  %v1863_v56 = vsel %vm10914_vm3, %v8023_v0, %v1862_v53  ;;  %v809_v11 = vmul.f32 0.1, %v11052_v57  ;;  %v1126_v27 = vld [vmem:[#allocation2 + $0x30] sm:$0x4]  ;;  %v8990_v50 = vpop.f32.mrf.mxu0 }
 0x14c   : > { %v1335_v7 = vld [vmem:[#allocation2 + $0x20] sm:$0x8]  ;;  %v920_v13 = vpack.c.bf16 %v912_v63, %v912_v63  ;;  %v8030_v15 = vcombine.low %v10945_v39, %v1863_v56  ;;  %v1218_v23 = vrot.slane %v1216_v62, 6  ;;  %v1297_v24 = vsel %vm10883_vm6, %v1269_v4, %v1296_v52  ;;  %v1299_v49 = vld [vmem:[#allocation2 + $0x30] sm:$0x8] }
 0x14d   : > { %v1148_v14 = vrot.slane %v858_v2, 1  ;;  %v1336_v17 = vsel %vm10955_vm12, %v1311_v20, %v1335_v7  ;;  %v1072_v22 = vld [vmem:[#allocation2 + $0x28] sm:$0x2]  ;;  %v1312_v9 = vrot.slane %v1216_v62, 7  ;;  %1298 = vst [vmem:[#allocation2 + $0x28] sm:$0x8] %v1297_v24  ;;  %v1389_v39 = vsel %vm10894_vm9, %v7994_v8, %v1388_v1 }
 0x14e   : > { %1337 = vst [vmem:[#allocation2 + $0x20] sm:$0x8] %v1336_v17  ;;  %v1073_v0 = vsel %vm10904_vm5, %v7970_v43, %v1072_v22  ;;  %v963_v26 = vshll.u32 %v920_v13, 16  ;;  %v1026_v20 = vsel %vm10859_vm13, %v920_v13, %v1025_v12  ;;  %9055 = vmatprep.mubr.bf16.mxu0 %v8030_v15  ;;  %1390 = vst [vmem:[#allocation2 + $0x2c] sm:$0x1] %v1389_v39  ;;  %v7979_v32 = vrot.slane %v920_v13, 9 }
 0x14f   : > { %1074 = vst [vmem:[#allocation2 + $0x28] sm:$0x2] %v1073_v0  ;;  %1027 = vst [vmem:[#allocation2 + $0x30] sm:$0x2] %v1026_v20  ;;  %v1164_v33 = vmax.f32 %v858_v2, %v1148_v14  ;;  %v841_v36 = vmax.f32 %v11052_v57, %v809_v11  ;;  %v807_v38 = vmul.f32 0.1, %v753_v59  ;;  %v756_v63 = vadd.f32 %v10840_v44, %v11042_v40  ;;  %v771_v40 = vpop.f32.mrf.mxu0 }
 0x150   : > { %v1253_v30 = vld [vmem:[#allocation2 + $0x28] sm:$0x4]  ;;  %v999_v42 = vsel %vm10868_vm1, %v963_v26, %v998_v35  ;;  %v7971_v43 = vrot.slane %v963_v26, 9  ;;  %v810_v47 = vmul.f32 0.1, %v11058_v3  ;;  %v1127_v48 = vsel %vm10875_vm2, %v7979_v32, %v1126_v27 }
 0x151   : > { %v1254_v41 = vsel %vm10920_vm11, %v1218_v23, %v1253_v30  ;;  %1000 = vst [vmem:[#allocation2 + $0x30] sm:$0x1] %v999_v42  ;;  %v8488_v46 = vpack.c.bf16 %v1164_v33, %v1164_v33  ;;  %v839_v54 = vmax.f32 %v753_v59, %v807_v38  ;;  %v1451_v55 = vrot.slane %v1449_v61, 4  ;;  %1128 = vst [vmem:[#allocation2 + $0x30] sm:$0x4] %v1127_v48 }
 0x152   : > { %1255 = vst [vmem:[#allocation2 + $0x28] sm:$0x4] %v1254_v41  ;;  %v1391_v52 = vld [vmem:[#allocation2 + $0x34] sm:$0x1]  ;;  %v842_v53 = vmax.f32 %v11058_v3, %v810_v47  ;;  %v1452_v57 = vshll.u32 %v11038_v31, 16  ;;  %v1458_v1 = vshll.u32 %v11034_v10, 16  ;;  %v777_v61 = vadd.f32 %v11055_v60, %v10840_v44 }
 0x153   : > { %v1220_v2 = vshll.u32 %v8488_v46, 16  ;;  %v1270_v62 = vrot.slane %v8488_v46, 6  ;;  %v7995_v4 = vrot.slane %v8488_v46, 11  ;;  %v859_v8 = vmax.f32 %v839_v54, %v841_v36  ;;  %v1028_v24 = vld [vmem:[#allocation2 + $0x38] sm:$0x2] }
 0x154   : > { %v1454_v12 = vrot.slane %v1452_v57, 5  ;;  %v1460_v56 = vrot.slane %v1458_v1, 5  ;;  %v808_v59 = vmul.f32 0.1, %v756_v63  ;;  %v1338_v7 = vld [vmem:[#allocation2 + $0x28] sm:$0x8]  ;;  %v769_v0 = vadd.f32 %v10840_v44, %v768_v28 }
 0x155   : > { %v1222_v13 = vrot.slane %v1220_v2, 6  ;;  %v1300_v3 = vsel %vm10883_vm6, %v1270_v62, %v1299_v49  ;;  %v1313_v14 = vrot.slane %v1220_v2, 7  ;;  %v1392_v10 = vsel %vm10894_vm9, %v7995_v4, %v1391_v52  ;;  %v11103_v30 = vld [vmem:[#allocation2 + $0x14] sm:$0x1]  ;;  %v1831_v47 = vld [vmem:[#allocation2 + $0x10] sm:$0xe] }
 0x156   : > { %v1339_v15 = vsel %vm10955_vm12, %v1312_v9, %v1338_v7  ;;  %v1075_v11 = vld [vmem:[#allocation2 + $0x30] sm:$0x2]  ;;  %1301 = vst [vmem:[#allocation2 + $0x30] sm:$0x8] %v1300_v3  ;;  %1393 = vst [vmem:[#allocation2 + $0x34] sm:$0x1] %v1392_v10  ;;  %v1455_v22 = vor.u32 %v1454_v12, %v1451_v55  ;;  %v840_v23 = vmax.f32 %v756_v63, %v808_v59 }
 0x157   : > { %v897_v17 = vrot.slane %v859_v8, 1  ;;  %1340 = vst [vmem:[#allocation2 + $0x28] sm:$0x8] %v1339_v15  ;;  %v1076_v60 = vsel %vm10904_vm5, %v7971_v43, %v1075_v11  ;;  %v813_v35 = vmul.f32 0.1, %v777_v61  ;;  %v780_v39 = vadd.f32 %v8990_v50, %v10840_v44 }
 0x158   : > { %1077 = vst [vmem:[#allocation2 + $0x30] sm:$0x2] %v1076_v60  ;;  %v1456_v20 = vrot.slane %v1455_v22, 4  ;;  %v860_v9 = vmax.f32 %v840_v23, %v842_v53  ;;  %v772_v27 = vadd.f32 %v10840_v44, %v771_v40  ;;  %v1256_v32 = vld [vmem:[#allocation2 + $0x30] sm:$0x4]  ;;  %v8024_v19 = vrot.slane %v1831_v47, 9 }
 0x159   : > { %v913_v26 = vmax.f32 %v859_v8, %v897_v17  ;;  %v845_v33 = vmax.f32 %v777_v61, %v813_v35  ;;  %v811_v36 = vmul.f32 0.1, %v769_v0  ;;  %v814_v38 = vmul.f32 0.1, %v780_v39  ;;  %v1001_v48 = vld [vmem:[#allocation2 + $0x38] sm:$0x1] }
 0x15a   : > { %v1257_v41 = vsel %vm10920_vm11, %v1222_v13, %v1256_v32  ;;  %v1461_v28 = vsel %vm10935_vm7, %v1456_v20, %v1460_v56  ;;  %v1149_v43 = vrot.slane %v860_v9, 1  ;;  %v1129_v46 = vld [vmem:[#allocation2 + $0x38] sm:$0x4]  ;;  %v812_v55 = vmul.f32 0.1, %v772_v27 }
 0x15b   : > { %v921_v42 = vpack.c.bf16 %v913_v26, %v913_v26  ;;  %1258 = vst [vmem:[#allocation2 + $0x30] sm:$0x4] %v1257_v41  ;;  %v7998_v44 = vcombine.low %v1447_v58, %v1461_v28  ;;  %v843_v49 = vmax.f32 %v769_v0, %v811_v36  ;;  %v846_v54 = vmax.f32 %v780_v39, %v814_v38  ;;  %v11116_v1 = vld [vmem:[#allocation2 + $0x1c] sm:$0x1]  ;;  %v11118_v63 = vld [vmem:[#allocation2 + $0x10] sm:$0xf] }
 0x15c   : > { %v1165_v57 = vmax.f32 %v860_v9, %v1149_v43  ;;  %v844_v4 = vmax.f32 %v772_v27, %v812_v55  ;;  %v1832_v6 = vld [vmem:[#allocation2 + $0x18] sm:$0xe]  ;;  %v1866_v58 = vrot.slane %v11103_v30, 5  ;;  %v1394_v13 = vld [vmem:[#allocation2 + $0x3c] sm:$0x1]  ;;  %v1463_v11 = vshrl.u32 %v11118_v63, 16 }
 0x15d   : > { %v966_v50 = vshll.u32 %v921_v42, 16  ;;  %v1029_v52 = vsel %vm10859_vm13, %v921_v42, %v1028_v24  ;;  %v7980_v53 = vrot.slane %v921_v42, 9  ;;  %v1341_v2 = vld [vmem:[#allocation2 + $0x30] sm:$0x8]  ;;  %9007 = vmatprep.mubr.bf16.mxu1 %v7998_v44  ;;  %v861_v62 = vmax.f32 %v843_v49, %v845_v33  ;;  %v1302_v7 = vld [vmem:[#allocation2 + $0x38] sm:$0x8] }
 0x15e   : > { %1030 = vst [vmem:[#allocation2 + $0x38] sm:$0x2] %v1029_v52  ;;  %v1342_v8 = vsel %vm10955_vm12, %v1313_v14, %v1341_v2  ;;  %v8489_v61 = vpack.c.bf16 %v1165_v57, %v1165_v57  ;;  %v862_v10 = vmax.f32 %v844_v4, %v846_v54  ;;  %v1867_v40 = vsel %vm10914_vm3, %v8024_v19, %v1866_v58  ;;  %v11132_v35 = vld [vmem:[#allocation2 + $0x18] sm:$0xf]  ;;  %v1031_v36 = vld [vmem:[#allocation2 + $0x40] sm:$0x2] }
 0x15f   : > { %v1002_v12 = vsel %vm10868_vm1, %v966_v50, %v1001_v48  ;;  %v7972_v56 = vrot.slane %v966_v50, 9  ;;  %v1130_v59 = vsel %vm10875_vm2, %v7980_v53, %v1129_v46  ;;  %1343 = vst [vmem:[#allocation2 + $0x30] sm:$0x8] %v1342_v8  ;;  %v898_v3 = vrot.slane %v861_v62, 1  ;;  %v1004_v42 = vld [vmem:[#allocation2 + $0x40] sm:$0x1] }
 0x160   : > { %1003 = vst [vmem:[#allocation2 + $0x38] sm:$0x1] %v1002_v12  ;;  %1131 = vst [vmem:[#allocation2 + $0x38] sm:$0x4] %v1130_v59  ;;  %v8025_v15 = vrot.slane %v1832_v6, 9  ;;  %v1870_v14 = vrot.slane %v11116_v1, 5 }
 0x161   : > { %v1466_v17 = vshll.u32 %v11118_v63, 16  ;;  %v1224_v22 = vshll.u32 %v8489_v61, 16  ;;  %v1271_v23 = vrot.slane %v8489_v61, 6  ;;  %v7996_v60 = vrot.slane %v8489_v61, 11  ;;  %v10060_v48 = vld [vmem:[#allocation4 + $0x130] sm:$0xff]   ;;  %v10062_v59 = vld [vmem:[#allocation4 + $0x128] sm:$0xff]  }
 0x162   : > { %v914_v24 = vmax.f32 %v861_v62, %v898_v3  ;;  %v1150_v0 = vrot.slane %v862_v10, 1  ;;  %v1871_v39 = vsel %vm10914_vm3, %v8025_v15, %v1870_v14  ;;  %v1465_v26 = vrot.slane %v1463_v11, 4  ;;  %v1132_v44 = vld [vmem:[#allocation2 + $0x40] sm:$0x4]  ;;  %v1305_v62 = vld [vmem:[#allocation2 + $0x40] sm:$0x8] }
 0x163   : > { %v1468_v20 = vrot.slane %v1466_v17, 5  ;;  %v1226_v9 = vrot.slane %v1224_v22, 6  ;;  %v1303_v27 = vsel %vm10883_vm6, %v1271_v23, %v1302_v7  ;;  %v11138_v32 = vrot.slane %v1224_v22, 7  ;;  %v1397_v4 = vld [vmem:[#allocation2 + $0x44] sm:$0x1] }
 0x164   : > { %v1395_v33 = vsel %vm10894_vm9, %v7996_v60, %v1394_v13  ;;  %1304 = vst [vmem:[#allocation2 + $0x38] sm:$0x8] %v1303_v27  ;;  %v922_v41 = vpack.c.bf16 %v914_v24, %v914_v24  ;;  %v1166_v28 = vmax.f32 %v862_v10, %v1150_v0  ;;  %v8031_v43 = vcombine.low %v1867_v40, %v1871_v39  ;;  %v11149_v6 = vld [vmem:[#allocation2 + $0x24] sm:$0x1]  ;;  %v1833_v19 = vld [vmem:[#allocation2 + $0x20] sm:$0xe] }
 0x165   : > { %v1078_v38 = vld [vmem:[#allocation2 + $0x38] sm:$0x2]  ;;  %1396 = vst [vmem:[#allocation2 + $0x3c] sm:$0x1] %v1395_v33  ;;  %v1469_v47 = vor.u32 %v1468_v20, %v1465_v26  ;;  %v1472_v49 = vshll.u32 %v11103_v30, 16  ;;  %v1477_v54 = vshrl.u32 %v11132_v35, 16 }
 0x166   : > { %v1079_v46 = vsel %vm10904_vm5, %v7972_v56, %v1078_v38  ;;  %v1480_v55 = vshll.u32 %v11132_v35, 16  ;;  %v969_v52 = vshll.u32 %v922_v41, 16  ;;  %v1032_v53 = vsel %vm10859_vm13, %v922_v41, %v1031_v36  ;;  %9056 = vmatmul.mubr.bf16.vlgmr.msra.gmra.mxu0 %v8031_v43  ;;  %v10447_v56 = vld [vmem:[#allocation4 + $0x138] sm:$0xff]   ;;  %v11157_v61 = vld [vmem:[#allocation2 + $0x2c] sm:$0x1] }
 0x167   : > { %1080 = vst [vmem:[#allocation2 + $0x38] sm:$0x2] %v1079_v46  ;;  %v1259_v50 = vld [vmem:[#allocation2 + $0x38] sm:$0x4]  ;;  %v7981_v57 = vrot.slane %v922_v41, 9  ;;  %v8490_v2 = vpack.c.bf16 %v1166_v28, %v1166_v28  ;;  %v11153_v58 = vrot.slane %v1469_v47, 4  ;;  %9088 = vmatpush3.bf16.msra.mxu0 %v10447_v56 }
 0x168   : > { %v1260_v30 = vsel %vm10920_vm11, %v1226_v9, %v1259_v50  ;;  %1033 = vst [vmem:[#allocation2 + $0x40] sm:$0x2] %v1032_v53  ;;  %v11155_v8 = vrot.slane %v1472_v49, 5  ;;  %v1479_v12 = vrot.slane %v1477_v54, 4  ;;  %v1005_v7 = vsel %vm10868_vm1, %v969_v52, %v1004_v42  ;;  %9089 = vmatprep.subr.bf16.mxu0 %v10060_v48  ;;  %v1834_v40 = vld [vmem:[#allocation2 + $0x28] sm:$0xe] }
 0x169   : > { %1261 = vst [vmem:[#allocation2 + $0x38] sm:$0x4] %v1260_v30  ;;  %v7973_v13 = vrot.slane %v969_v52, 9  ;;  %v1133_v3 = vsel %vm10875_vm2, %v7981_v57, %v1132_v44  ;;  %v1228_v10 = vshll.u32 %v8490_v2, 16  ;;  %1006 = vst [vmem:[#allocation2 + $0x40] sm:$0x1] %v1005_v7 }
 0x16a   : > { %1134 = vst [vmem:[#allocation2 + $0x40] sm:$0x4] %v1133_v3  ;;  %v1272_v15 = vrot.slane %v8490_v2, 6  ;;  %v7997_v14 = vrot.slane %v8490_v2, 11  ;;  %v1475_v11 = vsel %vm10935_vm7, %v11153_v58, %v11155_v8  ;;  %v1482_v17 = vrot.slane %v1480_v55, 5  ;;  %v10064_v41 = vld [vmem:[#allocation4 + $0x120] sm:$0xff]  }
 0x16b   : > { %v1230_v22 = vrot.slane %v1228_v10, 6  ;;  %v11167_v23 = vrot.slane %v1228_v10, 7  ;;  %v1486_v60 = vshll.u32 %v11116_v1, 16  ;;  %v8026_v24 = vrot.slane %v1833_v19, 9  ;;  %v11170_v0 = vld [vmem:[#allocation2 + $0x20] sm:$0xf]  ;;  %9090 = vmatpush3.bf16.msra.mxu0 %v10060_v48 }
 0x16c   : > { %v1344_v39 = vld [vmem:[#allocation2 + $0x38] sm:$0x8]  ;;  %v1306_v26 = vsel %vm10883_vm6, %v1272_v15, %v1305_v62  ;;  %v1398_v20 = vsel %vm10894_vm9, %v7997_v14, %v1397_v4  ;;  %v1483_v9 = vor.u32 %v1482_v17, %v1479_v12  ;;  %v1874_v27 = vrot.slane %v11149_v6, 5  ;;  %v11177_v33 = vld [vmem:[#allocation2 + $0x28] sm:$0xf]  ;;  %9091 = vmatprep.subr.bf16.mxu0 %v10062_v59  ;;  %v10066_v57 = vld [vmem:[#allocation4 + $0x118] sm:$0xff]  }
 0x16d   : > { %v1345_v1 = vsel %vm10955_vm12, %v11138_v32, %v1344_v39  ;;  %1307 = vst [vmem:[#allocation2 + $0x40] sm:$0x8] %v1306_v26  ;;  %1399 = vst [vmem:[#allocation2 + $0x44] sm:$0x1] %v1398_v20  ;;  %v1488_v36 = vrot.slane %v1486_v60, 5  ;;  %v8027_v38 = vrot.slane %v1834_v40, 9 }
 0x16e   : > { %v1878_v37 = vrot.slane %v11157_v61, 5  ;;  %1346 = vst [vmem:[#allocation2 + $0x38] sm:$0x8] %v1345_v1  ;;  %v1484_v51 = vrot.slane %v1483_v9, 4  ;;  %v1875_v42 = vsel %vm10914_vm3, %v8026_v24, %v1874_v27  ;;  %v1491_v28 = vshrl.u32 %v11170_v0, 16  ;;  %v10063_v46 = vld [vmem:[#allocation4 + $0x30] sm:$0xff]  }
 0x16f   : > { %v1494_v43 = vshll.u32 %v11170_v0, 16  ;;  %v1835_v47 = vld [vmem:[#allocation2 + $0x30] sm:$0xe]  ;;  %v1081_v48 = vld [vmem:[#allocation2 + $0x40] sm:$0x2]  ;;  %v1500_v44 = vshll.u32 %v11149_v6, 16  ;;  %9092 = vmatpush3.bf16.msra.mxu0 %v10062_v59 }
 0x170   : > { %v1879_v32 = vsel %vm10914_vm3, %v8027_v38, %v1878_v37  ;;  %v1505_v49 = vshrl.u32 %v11177_v33, 16  ;;  %v1508_v54 = vshll.u32 %v11177_v33, 16  ;;  %v1082_v55 = vsel %vm10904_vm5, %v7973_v13, %v1081_v48  ;;  %v11196_v2 = vld [vmem:[#allocation2 + $0x34] sm:$0x1]  ;;  %v2212_v62 = vld [vmem:[#allocation2 + $0x8] sm:$0xf]  ;;  %9093 = vmatprep.subr.bf16.mxu0 %v10064_v41 }
 0x171   : > { %v1489_v50 = vsel %vm10935_vm7, %v1484_v51, %v1488_v36  ;;  %v8032_v52 = vcombine.low %v1875_v42, %v1879_v32  ;;  %v1493_v53 = vrot.slane %v1491_v28, 4  ;;  %v11198_v4 = vld [vmem:[#allocation2 + $0xc] sm:$0x1]  ;;  %1083 = vst [vmem:[#allocation2 + $0x40] sm:$0x2] %v1082_v55  ;;  %v1496_v30 = vrot.slane %v1494_v43, 5 }
 0x172   : > { %v1262_v6 = vld [vmem:[#allocation2 + $0x40] sm:$0x4]  ;;  %v7999_v19 = vcombine.low %v1475_v11, %v1489_v50  ;;  %v1507_v58 = vrot.slane %v1505_v49, 4  ;;  %v11200_v8 = vld [vmem:[#allocation2 + $0x3c] sm:$0x1]  ;;  %v1510_v7 = vrot.slane %v1508_v54, 5 }
 0x173   : > { %v11202_v12 = vld [vmem:[#allocation2] sm:$0xf]  ;;  %v1263_v59 = vsel %vm10920_vm11, %v1230_v22, %v1262_v6  ;;  %9059 = vmatprep.mubr.bf16.mxu0 %v8032_v52  ;;  %v1514_v13 = vshll.u32 %v11157_v61, 16  ;;  %v8028_v3 = vrot.slane %v1835_v47, 9  ;;  %v2214_v10 = vld [vmem:[#allocation2 + $0x10] sm:$0xf]  ;;  %v1497_v15 = vor.u32 %v1496_v30, %v1493_v53  ;;  %9094 = vmatpush3.bf16.msra.mxu0 %v10064_v41 }
 0x174   : > { %v8010_v56 = vcombine.low %v11202_v12, %v11038_v31  ;;  %v11209_v40 = vld [vmem:[#allocation2 + $0x14] sm:$0x1]  ;;  %1264 = vst [vmem:[#allocation2 + $0x40] sm:$0x4] %v1263_v59  ;;  %9008 = vmatmul.mubr.bf16.vlgmr.msra.gmra.mxu1 %v7999_v19  ;;  %v1502_v14 = vrot.slane %v1500_v44, 5  ;;  %v1882_v11 = vrot.slane %v11196_v2, 5  ;;  %v1511_v39 = vor.u32 %v1510_v7, %v1507_v58  ;;  %9095 = vmatprep.subr.bf16.mxu0 %v10066_v57 }
 0x175   : > { %v2229_v17 = vshrl.u32 %v2212_v62, 16  ;;  %v11212_v60 = vld [vmem:[#allocation2 + $0x30] sm:$0xf]  ;;  %v1347_v24 = vld [vmem:[#allocation2 + $0x40] sm:$0x8]  ;;  %9016 = vmatpush3.bf16.msra.mxu1 %v10449_v21  ;;  %v1516_v61 = vrot.slane %v1514_v13, 5 }
 0x176   : > { %v10065_v22 = vld [vmem:[#allocation4 + $0x28] sm:$0xff]   ;;  %v1886_v26 = vrot.slane %v11200_v8, 5  ;;  %v2232_v20 = vshll.u32 %v2212_v62, 16  ;;  %v1348_v9 = vsel %vm10955_vm12, %v11167_v23, %v1347_v24  ;;  %9017 = vmatprep.subr.bf16.mxu1 %v10063_v46  ;;  %v1498_v27 = vrot.slane %v1497_v15, 4  ;;  %v10068_v1 = vld [vmem:[#allocation4 + $0x110] sm:$0xff]   ;;  %v10069_v59 = vld [vmem:[#allocation4 + $0x18] sm:$0xff]  }
 0x177   : > { %v1836_v36 = vld [vmem:[#allocation2 + $0x38] sm:$0xe]  ;;  %v2231_v38 = vrot.slane %v2229_v17, 4  ;;  %v2238_v37 = vshll.u32 %v11198_v4, 16  ;;  %1349 = vst [vmem:[#allocation2 + $0x40] sm:$0x8] %v1348_v9  ;;  %v1883_v51 = vsel %vm10914_vm3, %v8028_v3, %v1882_v11  ;;  %9096 = vmatpush3.bf16.msra.mxu0 %v10066_v57 }
 0x178   : > { %v1512_v41 = vrot.slane %v1511_v39, 4  ;;  %v8029_v42 = vrot.slane %v1836_v36, 9  ;;  %v2234_v28 = vrot.slane %v2232_v20, 5  ;;  %v1503_v43 = vsel %vm10935_vm7, %v1498_v27, %v1502_v14  ;;  %v10070_v44 = vld [vmem:[#allocation4 + $0x108] sm:$0xff]   ;;  %v11228_v55 = vld [vmem:[#allocation2 + $0x38] sm:$0xf]  ;;  %9097 = vmatprep.subr.bf16.mxu0 %v10068_v1 }
 0x179   : > { %v2243_v23 = vshrl.u32 %v2214_v10, 16  ;;  %v2246_v47 = vshll.u32 %v2214_v10, 16  ;;  %v2252_v48 = vshll.u32 %v11209_v40, 16  ;;  %9018 = vmatpush3.bf16.msra.mxu1 %v10063_v46  ;;  %v1519_v50 = vshrl.u32 %v11212_v60, 16  ;;  %v2216_v46 = vld [vmem:[#allocation2 + $0x18] sm:$0xf] }
 0x17a   : > { %v1517_v32 = vsel %vm10935_vm7, %v1512_v41, %v1516_v61  ;;  %v1887_v49 = vsel %vm10914_vm3, %v8029_v42, %v1886_v26  ;;  %v2235_v54 = vor.u32 %v2234_v28, %v2231_v38  ;;  %9019 = vmatprep.subr.bf16.mxu1 %v10065_v22  ;;  %v2240_v30 = vrot.slane %v2238_v37, 5  ;;  %v11235_v15 = vld [vmem:[#allocation2 + $0x1c] sm:$0x1]  ;;  %v10072_v17 = vld [vmem:[#allocation4 + $0x100] sm:$0xff]   ;;  %v2218_v21 = vld [vmem:[#allocation2 + $0x20] sm:$0xf] }
 0x17b   : > { %v8000_v52 = vcombine.low %v1503_v43, %v1517_v32  ;;  %v8033_v53 = vcombine.low %v1883_v51, %v1887_v49  ;;  %v2245_v62 = vrot.slane %v2243_v23, 4  ;;  %v2248_v6 = vrot.slane %v2246_v47, 5  ;;  %9098 = vmatpush3.bf16.msra.mxu0 %v10068_v1  ;;  %v11240_v9 = vld [vmem:[#allocation2 + $0x24] sm:$0x1]  ;;  %v2220_v42 = vld [vmem:[#allocation2 + $0x28] sm:$0xf] }
 0x17c   : > { %v2236_v19 = vrot.slane %v2235_v54, 4  ;;  %v1521_v58 = vrot.slane %v1519_v50, 4  ;;  %v1522_v57 = vshll.u32 %v11212_v60, 16  ;;  %v1528_v13 = vshll.u32 %v11196_v2, 16  ;;  %9099 = vmatprep.subr.bf16.mxu0 %v10070_v44  ;;  %v10071_v28 = vld [vmem:[#allocation4 + $0x10] sm:$0xff]  }
 0x17d   : > { %9011 = vmatprep.mubr.bf16.mxu1 %v8000_v52  ;;  %9060 = vmatmul.mubr.bf16.gmra.mxu0 %v8033_v53  ;;  %v2249_v7 = vor.u32 %v2248_v6, %v2245_v62  ;;  %v1533_v3 = vshrl.u32 %v11228_v55, 16  ;;  %v1536_v10 = vshll.u32 %v11228_v55, 16  ;;  %v2254_v11 = vrot.slane %v2252_v48, 5  ;;  %v11248_v52 = vld [vmem:[#allocation2 + $0x2c] sm:$0x1] }
 0x17e   : > { %9020 = vmatpush3.bf16.msra.mxu1 %v10065_v22  ;;  %v2241_v14 = vsel %vm10935_vm7, %v2236_v19, %v2240_v30  ;;  %v1524_v24 = vrot.slane %v1522_v57, 5  ;;  %v2257_v39 = vshrl.u32 %v2216_v46, 16  ;;  %v1542_v20 = vshll.u32 %v11200_v8, 16  ;;  %v11245_v8 = vld [vmem:[#allocation4 + $0x1b8] sm:$0xff]   ;;  %v2222_v62 = vld [vmem:[#allocation2 + $0x30] sm:$0xf] }
 0x17f   : > { %9021 = vmatprep.subr.bf16.mxu1 %v10067_v45  ;;  %v2250_v61 = vrot.slane %v2249_v7, 4  ;;  %v1535_v2 = vrot.slane %v1533_v3, 4  ;;  %v1538_v26 = vrot.slane %v1536_v10, 5  ;;  %v1530_v22 = vrot.slane %v1528_v13, 5  ;;  %9100 = vmatpush3.bf16.msra.mxu0 %v10070_v44  ;;  %v11254_v57 = vld [vmem:[#allocation2 + $0x34] sm:$0x1] }
 0x180   : > { %v1525_v27 = vor.u32 %v1524_v24, %v1521_v58  ;;  %v2259_v1 = vrot.slane %v2257_v39, 4  ;;  %v2260_v36 = vshll.u32 %v2216_v46, 16  ;;  %v2266_v41 = vshll.u32 %v11235_v15, 16  ;;  %9101 = vmatprep.subr.bf16.mxu0 %v10072_v17  ;;  %v10073_v46 = vld [vmem:[#allocation4 + $0x8] sm:$0xff]  }
 0x181   : > { %v2255_v38 = vsel %vm10935_vm7, %v2250_v61, %v2254_v11  ;;  %v1539_v37 = vor.u32 %v1538_v26, %v1535_v2  ;;  %v2271_v51 = vshrl.u32 %v2218_v21, 16  ;;  %v2274_v48 = vshll.u32 %v2218_v21, 16  ;;  %v2224_v11 = vld [vmem:[#allocation2 + $0x38] sm:$0xf]  ;;  %v2226_v2 = vld [vmem:[#allocation2 + $0x40] sm:$0xf] }
 0x182   : > { %9022 = vmatpush3.bf16.msra.mxu1 %v10067_v45  ;;  %v8054_v43 = vcombine.low %v2241_v14, %v2255_v38  ;;  %v1526_v23 = vrot.slane %v1525_v27, 4  ;;  %v2262_v47 = vrot.slane %v2260_v36, 5  ;;  %v1544_v49 = vrot.slane %v1542_v20, 5  ;;  %v10077_v36 = vld [vmem:[#allocation4 + $0x1b0] sm:$0xff]  }
 0x183   : > { %9023 = vmatprep.subr.bf16.mxu1 %v10069_v59  ;;  %v1540_v32 = vrot.slane %v1539_v37, 4  ;;  %v2273_v54 = vrot.slane %v2271_v51, 4  ;;  %v2280_v50 = vshll.u32 %v11240_v9, 16  ;;  %v2268_v45 = vrot.slane %v2266_v41, 5  ;;  %9102 = vmatpush3.bf16.msra.mxu0 %v10072_v17  ;;  %v10076_v17 = vld [vmem:[#allocation4] sm:$0xff]  }
 0x184   : > { %9103 = vmatprep.mubr.bf16.mxu0 %v8054_v43  ;;  %v2263_v53 = vor.u32 %v2262_v47, %v2259_v1  ;;  %v2276_v44 = vrot.slane %v2274_v48, 5  ;;  %v2285_v6 = vshrl.u32 %v2220_v42, 16  ;;  %v1531_v19 = vsel %vm10935_vm7, %v1526_v23, %v1530_v22  ;;  %9135 = vmatprep.subr.bf16.mxu0 %v11245_v8  ;;  %v11268_v41 = vld [vmem:[#allocation2 + $0x44] sm:$0x1] }
 0x185   : > { %v1545_v30 = vsel %vm10935_vm7, %v1540_v32, %v1544_v49  ;;  %v2282_v58 = vrot.slane %v2280_v50, 5  ;;  %v2288_v7 = vshll.u32 %v2220_v42, 16  ;;  %v2294_v21 = vshll.u32 %v11248_v52, 16 }
 0x186   : > { %9024 = vmatpush3.bf16.msra.mxu1 %v10069_v59  ;;  %v8001_v13 = vcombine.low %v1531_v19, %v1545_v30  ;;  %v2264_v3 = vrot.slane %v2263_v53, 4  ;;  %v2277_v10 = vor.u32 %v2276_v44, %v2273_v54  ;;  %v2287_v14 = vrot.slane %v2285_v6, 4  ;;  %v11259_v59 = vld [vmem:[#allocation2 + $0x3c] sm:$0x1]  ;;  %v10078_v19 = vld [vmem:[#allocation4 + $0xf8] sm:$0xff]   ;;  %v10081_v30 = vld [vmem:[#allocation4 + $0x1a8] sm:$0xff]  }
 0x187   : > { %9025 = vmatprep.subr.bf16.mxu1 %v10071_v28  ;;  %v2290_v24 = vrot.slane %v2288_v7, 5  ;;  %v2299_v39 = vshrl.u32 %v2222_v62, 16  ;;  %v2302_v61 = vshll.u32 %v2222_v62, 16  ;;  %v2308_v20 = vshll.u32 %v11254_v57, 16 }
 0x188   : > { %9012 = vmatmul.mubr.bf16.gmra.mxu1 %v8001_v13  ;;  %v2278_v26 = vrot.slane %v2277_v10, 4  ;;  %v2269_v38 = vsel %vm10935_vm7, %v2264_v3, %v2268_v45  ;;  %v2313_v51 = vshrl.u32 %v2224_v11, 16  ;;  %v2316_v42 = vshll.u32 %v2224_v11, 16  ;;  %v10082_v10 = vld [vmem:[#allocation4 + $0xf0] sm:$0xff]   ;;  %v10084_v11 = vld [vmem:[#allocation4 + $0x1a0] sm:$0xff]  }
 0x189   : > { %9031 = vmatprep.mubr.bf16.mxu1 %v8010_v56  ;;  %v2291_v27 = vor.u32 %v2290_v24, %v2287_v14  ;;  %v2301_v22 = vrot.slane %v2299_v39, 4  ;;  %v2304_v1 = vrot.slane %v2302_v61, 5  ;;  %v2296_v12 = vrot.slane %v2294_v21, 5  ;;  %v2496_v24 = vld [vmem:[#allocation2 + $0x18] sm:$0xe] }
 0x18a   : > { %9026 = vmatpush3.bf16.msra.mxu1 %v10071_v28  ;;  %v2283_v37 = vsel %vm10935_vm7, %v2278_v26, %v2282_v58  ;;  %v2315_v23 = vrot.slane %v2313_v51, 4  ;;  %v2318_v47 = vrot.slane %v2316_v42, 5  ;;  %v2327_v48 = vshrl.u32 %v2226_v2, 16  ;;  %v10089_v42 = vld [vmem:[#allocation4 + $0xe0] sm:$0xff]  }
 0x18b   : > { %9027 = vmatprep.subr.bf16.mxu1 %v10073_v46  ;;  %v8055_v43 = vcombine.low %v2269_v38, %v2283_v37  ;;  %v2292_v31 = vrot.slane %v2291_v27, 4  ;;  %v2305_v56 = vor.u32 %v2304_v1, %v2301_v22  ;;  %v2330_v32 = vshll.u32 %v2226_v2, 16  ;;  %v2497_v2 = vld [vmem:[#allocation2 + $0x20] sm:$0xe]  ;;  %v2500_v22 = vld [vmem:[#allocation2 + $0x38] sm:$0xe] }
 0x18c   : > { %v2310_v49 = vrot.slane %v2308_v20, 5  ;;  %v2322_v54 = vshll.u32 %v11259_v59, 16  ;;  %v2336_v50 = vshll.u32 %v11268_v41, 16  ;;  %v2319_v53 = vor.u32 %v2318_v47, %v2315_v23  ;;  %v10083_v20 = vld [vmem:[#allocation2 + $0x10] ss:$8 sps:$4 sm:$0xff]   ;;  %v10088_v38 = vld [vmem:[#allocation4 + $0x198] sm:$0xff]  }
 0x18d   : > { %9104 = vmatmul.mubr.bf16.vlgmr.msra.gmra.mxu0 %v8055_v43  ;;  %v2306_v28 = vrot.slane %v2305_v56, 4  ;;  %v2329_v45 = vrot.slane %v2327_v48, 4  ;;  %v2332_v44 = vrot.slane %v2330_v32, 5  ;;  %v2297_v62 = vsel %vm10935_vm7, %v2292_v31, %v2296_v12  ;;  %v10090_v56 = vld [vmem:[#allocation4 + $0x190] sm:$0xff]   ;;  %v10087_v47 = vld [vmem:[#allocation2 + $0x8] ss:$8 sps:$4 sm:$0xff]  }
 0x18e   : > { %9028 = vmatpush3.bf16.msra.mxu1 %v10073_v46  ;;  %9136 = vmatpush3.bf16.msra.mxu0 %v11245_v8  ;;  %v2320_v7 = vrot.slane %v2319_v53, 4  ;;  %v2338_v3 = vrot.slane %v2336_v50, 5  ;;  %v2324_v8 = vrot.slane %v2322_v54, 5  ;;  %v8011_v14 = vcombine.low %v11118_v63, %v11132_v35  ;;  %v2499_v63 = vld [vmem:[#allocation2 + $0x30] sm:$0xe] }
 0x18f   : > { %9029 = vmatprep.subr.bf16.mxu1 %v10076_v17  ;;  %v2311_v6 = vsel %vm10935_vm7, %v2306_v28, %v2310_v49  ;;  %9137 = vmatprep.subr.bf16.mxu0 %v10077_v36  ;;  %v2333_v13 = vor.u32 %v2332_v44, %v2329_v45  ;;  %v8012_v21 = vcombine.low %v11170_v0, %v11177_v33  ;;  %v10085_v35 = vld [vmem:[#allocation4 + $0xe8] sm:$0xff]   ;;  %v8068_v27 = vrot.slane %v2496_v24, 9  ;;  %v10091_v49 = vld [vmem:[#allocation4 + $0xd8] sm:$0xff]   ;;  %v10093_v44 = vld [vmem:[#allocation4 + $0xd0] sm:$0xff]  }
 0x190   : > { %v8056_v58 = vcombine.low %v2297_v62, %v2311_v6  ;;  %v2325_v39 = vsel %vm10935_vm7, %v2320_v7, %v2324_v8  ;;  %v2528_v0 = vrot.slane %v11235_v15, 5  ;;  %v8069_v33 = vrot.slane %v2497_v2, 9  ;;  %v10092_v54 = vld [vmem:[#allocation4 + $0x188] sm:$0xff]   ;;  %v11325_v62 = vld [vmem:[#allocation2 + $0x1c] sm:$0x1]  ;;  %v10094_v7 = vld [vmem:[#allocation4 + $0x180] sm:$0xff]  }
 0x191   : > { %v2334_v46 = vrot.slane %v2333_v13, 4  ;;  %v2532_v1 = vrot.slane %v11240_v9, 5  ;;  %v2536_v15 = vrot.slane %v11248_v52, 5  ;;  %v8071_v31 = vrot.slane %v2499_v63, 9  ;;  %v11321_v53 = vld [vmem:[#allocation2 + $0x14] sm:$0x1] }
 0x192   : > { %9107 = vmatprep.mubr.bf16.mxu0 %v8056_v58  ;;  %9030 = vmatpush3.bf16.msra.mxu1 %v10076_v17  ;;  %v2498_v17 = vld [vmem:[#allocation2 + $0x28] sm:$0xe]  ;;  %v11289_v37 = vsel %vm10914_vm3, %v8068_v27, %v2528_v0  ;;  %v2540_v12 = vrot.slane %v11254_v57, 5  ;;  %v8013_v9 = vcombine.low %v11212_v60, %v11228_v55  ;;  %v8072_v32 = vrot.slane %v2500_v22, 9  ;;  %v11327_v6 = vld [vmem:[#allocation2 + $0x10] sm:$0xe] }
 0x193   : > { %9138 = vmatpush3.bf16.msra.mxu0 %v10077_v36  ;;  %9063 = vmatprep.subr.bf16.mxu1 %v10078_v19  ;;  %v2339_v61 = vsel %vm10935_vm7, %v2334_v46, %v2338_v3  ;;  %v2501_v36 = vld [vmem:[#allocation2 + $0x40] sm:$0xe]  ;;  %v8070_v51 = vrot.slane %v2498_v17, 9  ;;  %v11293_v43 = vsel %vm10914_vm3, %v8069_v33, %v2532_v1  ;;  %v2544_v57 = vrot.slane %v11259_v59, 5  ;;  %v2877_v58 = vld [vmem:[#allocation2 + $0x18] sm:$0xf] }
 0x194   : > { %9139 = vmatprep.subr.bf16.mxu0 %v10081_v30  ;;  %v8057_v26 = vcombine.low %v2325_v39, %v2339_v61  ;;  %v11307_v52 = vsel %vm10914_vm3, %v8071_v31, %v2540_v12  ;;  %v8073_v55 = vrot.slane %v2501_v36, 9  ;;  %v2548_v28 = vrot.slane %v11268_v41, 5  ;;  %v2875_v41 = vld [vmem:[#allocation2 + $0x10] sm:$0xf]  ;;  %v11335_v3 = vld [vmem:[#allocation2 + $0x24] sm:$0x1] }
 0x195   : > { %9032 = vmatmul.mubr.bf16.vlgmr.msra.gmra.mxu1 %v8011_v14  ;;  %v11303_v48 = vsel %vm10914_vm3, %v8070_v51, %v2536_v15  ;;  %v11315_v50 = vsel %vm10914_vm3, %v8072_v32, %v2544_v57  ;;  %v11333_v13 = vld [vmem:[#allocation2 + $0x10] sm:$0xe]  ;;  %v2892_v8 = vshrl.u32 %v2875_v41, 16  ;;  %v2895_v46 = vshll.u32 %v2875_v41, 16  ;;  %v11339_v14 = vld [vmem:[#allocation2 + $0x20] sm:$0xe] }
 0x196   : > { %9064 = vmatpush3.bf16.msra.mxu1 %v10078_v19  ;;  %9035 = vmatprep.mubr.bf16.mxu1 %v8012_v21  ;;  %v11319_v59 = vsel %vm10914_vm3, %v8073_v55, %v2548_v28  ;;  %v11329_v19 = vld [vmem:[#allocation2 + $0x18] sm:$0xe]  ;;  %v10095_v24 = vld [vmem:[#allocation4 + $0xc8] sm:$0xff]   ;;  %v8110_v21 = vrot.slane %v11327_v6, 9  ;;  %v3183_v39 = vrot.slane %v11321_v53, 5  ;;  %v2906_v61 = vshrl.u32 %v2877_v58, 16 }
 0x197   : > { %9108 = vmatmul.mubr.bf16.gmra.mxu0 %v8057_v26  ;;  %9065 = vmatprep.subr.bf16.mxu1 %v10082_v10  ;;  %v2909_v2 = vshll.u32 %v2877_v58, 16  ;;  %v8111_v26 = vrot.slane %v11329_v19, 9  ;;  %v11347_v17 = vld [vmem:[#allocation2 + $0x34] sm:$0x1]  ;;  %v11349_v63 = vld [vmem:[#allocation2 + $0x30] sm:$0xe] }
 0x198   : > { %9140 = vmatpush3.bf16.msra.mxu0 %v10081_v30  ;;  %9151 = vmatprep.mubr.bf16.mxu0 %v10083_v20  ;;  %v11331_v30 = vld [vmem:[#allocation2 + $0x8] sm:$0xe]  ;;  %v3187_v20 = vrot.slane %v11325_v62, 5  ;;  %v10097_v27 = vld [vmem:[#allocation4 + $0x238] sm:$0xff]   ;;  %v11353_v22 = vld [vmem:[#allocation2 + $0x3c] sm:$0x1] }
 0x199   : > { %9141 = vmatprep.subr.bf16.mxu0 %v10084_v11  ;;  %v11355_v1 = vld [vmem:[#allocation2 + $0x38] sm:$0xe]  ;;  %v11357_v36 = vld [vmem:[#allocation2 + $0x40] sm:$0xe]  ;;  %v2897_v51 = vrot.slane %v2895_v46, 5  ;;  %v2524_v15 = vrot.slane %v11209_v40, 5 }
 0x19a   : > { %9066 = vmatpush3.bf16.msra.mxu1 %v10082_v10  ;;  %v11337_v10 = vld [vmem:[#allocation2 + $0x2c] sm:$0x1]  ;;  %v2908_v28 = vrot.slane %v2906_v61, 4  ;;  %v2901_v41 = vshll.u32 %v11321_v53, 16  ;;  %v2915_v58 = vshll.u32 %v11325_v62, 16  ;;  %v10100_v46 = vld [vmem:[#allocation4 + $0x230] sm:$0xff]   ;;  %v3184_v62 = vsel %vm10914_vm3, %v8110_v21, %v3183_v39 }
 0x19b   : > { %9067 = vmatprep.subr.bf16.mxu1 %v10085_v35  ;;  %v10099_v32 = vld [vmem:[#allocation4 + $0xc0] sm:$0xff]   ;;  %v11377_v12 = vld [vmem:[#allocation2 + $0x30] sm:$0xf]  ;;  %v10102_v0 = vld [vmem:[#allocation4 + $0x178] sm:$0xff]   ;;  %v12299_v21 = vrot.slane %v11198_v4, 5  ;;  %v12300_v39 = vrot.slane %v11331_v30, 9 }
 0x19c   : > { %9142 = vmatpush3.bf16.msra.mxu0 %v10084_v11  ;;  %v11341_v11 = vld [vmem:[#allocation2 + $0x28] sm:$0xe]  ;;  %v10098_v61 = vld [vmem:[#allocation2 + $0x30] ss:$8 sps:$4 sm:$0xff]   ;;  %v11385_v60 = vrot.slane %v2901_v41, 5  ;;  %v10113_v40 = vld [vmem:[#allocation4 + $0x158] sm:$0xff]  }
 0x19d   : > { %9036 = vmatmul.mubr.bf16.gmra.mxu1 %v8013_v9  ;;  %9143 = vmatprep.subr.bf16.mxu0 %v10088_v38  ;;  %v11363_v9 = vld [vmem:[#allocation2 + $0x44] sm:$0x1]  ;;  %v11395_v45 = vld [vmem:[#allocation2 + $0x38] sm:$0xf]  ;;  %v10111_v6 = vld [vmem:[#allocation4 + $0x160] sm:$0xff]   ;;  %vm10635_vm9 = vmmov 0  }
 0x19e   : > { %9068 = vmatpush3.bf16.msra.mxu1 %v10085_v35  ;;  %9079 = vmatprep.mubr.bf16.mxu1 %v10087_v47  ;;  %v2881_v35 = vld [vmem:[#allocation2 + $0x28] sm:$0xf]  ;;  %v10106_v41 = vld [vmem:[#allocation4 + $0x170] sm:$0xff]   ;;  %v10117_v30 = vld [vmem:[#allocation4 + $0x148] sm:$0xff]  }
 0x19f   : > { %9069 = vmatprep.subr.bf16.mxu1 %v10089_v42  ;;  %v11367_v47 = vld [vmem:[#allocation2 + $0x48] sm:$0xe]  ;;  %v2934_v31 = vshrl.u32 %v2881_v35, 16  ;;  %v2937_v55 = vshll.u32 %v2881_v35, 16  ;;  %v10105_v35 = vld [vmem:[#allocation4 + $0x228] sm:$0xff]  }
 0x1a0   : > { %9144 = vmatpush3.bf16.msra.mxu0 %v10088_v38  ;;  %v2894_v38 = vrot.slane %v2892_v8, 4  ;;  %v10096_v8 = vld [vmem:[#allocation2 + $0x20] ss:$8 sps:$4 sm:$0xff]  }
 0x1a1   : > { %9145 = vmatprep.subr.bf16.mxu0 %v10090_v56  ;;  %v11393_v33 = vrot.slane %v2934_v31, 4  ;;  %v10104_v31 = vld [vmem:[#allocation2 + $0x40] ss:$8 sps:$4 sm:$0xff]  }
 0x1a2   : > { %9070 = vmatpush3.bf16.msra.mxu1 %v10089_v42  ;;  %v8067_v42 = vrot.slane %v11333_v13, 9  ;;  %v2898_v23 = vor.u32 %v2897_v51, %v2894_v38  ;;  %v10114_v13 = vld [vmem:[#allocation4 + $0x208] sm:$0xff]   ;;  %v10116_v4 = vld [vmem:[#allocation4 + $0x200] sm:$0xff]  }
 0x1a3   : > { %9071 = vmatprep.subr.bf16.mxu1 %v10091_v49 }
 0x1a4   : > { %9146 = vmatpush3.bf16.msra.mxu0 %v10090_v56  ;;  %v11365_v56 = vld [vmem:[#allocation2 + $0x4c] sm:$0x1]  ;;  %v11391_v57 = vrot.slane %v2898_v23, 4  ;;  %v10103_v23 = vld [vmem:[#allocation2 + $0x28] ss:$8 sps:$4 sm:$0xff]   ;;  %v2525_v53 = vsel %vm10914_vm3, %v8067_v42, %v2524_v15  ;;  %v10115_v42 = vld [vmem:[#allocation4 + $0x150] sm:$0xff]  }
 0x1a5   : > { %9147 = vmatprep.subr.bf16.mxu0 %v10092_v54  ;;  %v3211_v38 = vrot.slane %v11365_v56, 5  ;;  %v10118_v15 = vld [vmem:[#allocation4 + $0x140] sm:$0xff]  }
 0x1a6   : > { %9072 = vmatpush3.bf16.msra.mxu1 %v10091_v49  ;;  %v2911_v49 = vrot.slane %v2909_v2, 5 }
 0x1a7   : > { %9073 = vmatprep.subr.bf16.mxu1 %v10093_v44 }
 0x1a8   : > { %9148 = vmatpush3.bf16.msra.mxu0 %v10092_v54  ;;  %v11371_v54 = vld [vmem:[#allocation2 + $0x20] sm:$0xf]  ;;  %v2912_v51 = vor.u32 %v2911_v49, %v2908_v28  ;;  %v2948_v28 = vshrl.u32 %v11377_v12, 16 }
 0x1a9   : > { %9149 = vmatprep.subr.bf16.mxu0 %v10094_v7  ;;  %v2920_v2 = vshrl.u32 %v11371_v54, 16  ;;  %v10101_v49 = vld [vmem:[#allocation2 + $0x18] ss:$8 sps:$4 sm:$0xff]  }
 0x1aa   : > { %9074 = vmatpush3.bf16.msra.mxu1 %v10093_v44  ;;  %v2923_v44 = vshll.u32 %v11371_v54, 16  ;;  %v2943_v54 = vshll.u32 %v11337_v10, 16 }
 0x1ab   : > { %9075 = vmatprep.subr.bf16.mxu1 %v10095_v24 }
 0x1ac   : > { %9150 = vmatpush3.bf16.msra.mxu0 %v10094_v7  ;;  %v11387_v7 = vrot.slane %v2915_v58, 5  ;;  %v11400_v58 = vrot.slane %v2912_v51, 4  ;;  %v2965_v51 = vshll.u32 %v11395_v45, 16 }
 0x1ad   : > { %9183 = vmatprep.subr.bf16.mxu0 %v10097_v27 }
 0x1ae   : > { %9076 = vmatpush3.bf16.msra.mxu1 %v10095_v24  ;;  %v11397_v24 = vrot.slane %v2937_v55, 5  ;;  %v10107_v55 = vld [vmem:[#allocation4 + $0x220] sm:$0xff]   ;;  %v2918_v18 = vsel %vm10935_vm7, %v11400_v58, %v11387_v7  ;;  %v2887_v7 = vld [vmem:[#allocation2 + $0x40] sm:$0xf] }
 0x1af   : > { %9152 = vmatmul.mubr.bf16.vlgmr.msra.gmra.mxu0 %v10096_v8  ;;  %9077 = vmatprep.subr.bf16.mxu1 %v10099_v32  ;;  %v2951_v8 = vshll.u32 %v11377_v12, 16 }
 0x1b0   : > { %9155 = vmatprep.mubr.bf16.mxu0 %v10098_v61  ;;  %9184 = vmatpush3.bf16.msra.mxu0 %v10097_v27  ;;  %v3188_v27 = vsel %vm10914_vm3, %v8111_v26, %v3187_v20  ;;  %v2962_v61 = vshrl.u32 %v11395_v45, 16  ;;  %v10110_v26 = vld [vmem:[#allocation4 + $0x218] sm:$0xff]  }
 0x1b1   : > { %9185 = vmatprep.subr.bf16.mxu0 %v10100_v46  ;;  %v8118_v19 = vcombine.low %v3184_v62, %v3188_v27  ;;  %v10108_v20 = vld [vmem:[#allocation2 + $0x38] ss:$8 sps:$4 sm:$0xff]   ;;  %v12304_v27 = vrot.slane %v11355_v1, 9  ;;  %v12305_v62 = vrot.slane %v11335_v3, 5  ;;  %v2953_v45 = vrot.slane %v2951_v8, 5 }
 0x1b2   : > { %9078 = vmatpush3.bf16.msra.mxu1 %v10099_v32  ;;  %v10109_v32 = vld [vmem:[#allocation4 + $0x168] sm:$0xff]   ;;  %v10119_v1 = vld [vmem:[#allocation4 + $0x1f8] sm:$0xff]   ;;  %v2964_v58 = vrot.slane %v2962_v61, 4  ;;  %v2976_v61 = vshrl.u32 %v2887_v7, 16 }
 0x1b3   : > { %9111 = vmatprep.subr.bf16.mxu1 %v10102_v0 }
 0x1b4   : > { %9186 = vmatpush3.bf16.msra.mxu0 %v10100_v46  ;;  %v10112_v46 = vld [vmem:[#allocation4 + $0x210] sm:$0xff]  }
 0x1b5   : > { %9080 = vmatmul.mubr.bf16.vlgmr.msra.gmra.mxu1 %v10101_v49  ;;  %9187 = vmatprep.subr.bf16.mxu0 %v10105_v35  ;;  %v12301_v49 = vrot.slane %v11337_v10, 5 }
 0x1b6   : > { %9083 = vmatprep.mubr.bf16.mxu1 %v10103_v23  ;;  %9112 = vmatpush3.bf16.msra.mxu1 %v10102_v0  ;;  %v2521_v0 = vsel %vm10914_vm3, %v12300_v39, %v12299_v21  ;;  %v10120_v21 = vld [vmem:[#allocation4 + $0x1f0] sm:$0xff]   ;;  %v12310_v39 = vrot.slane %v11357_v36, 9  ;;  %v12313_v36 = vcombine.low %v11303_v48, %v11307_v52  ;;  %v12314_v48 = vcombine.low %v11315_v50, %v11319_v59  ;;  %v10123_v52 = vld [vmem:[#allocation4 + $0x1d8] sm:$0xff]  }
 0x1b7   : > { %9156 = vmatmul.mubr.bf16.gmra.mxu0 %v10104_v31  ;;  %9113 = vmatprep.subr.bf16.mxu1 %v10106_v41  ;;  %v12303_v31 = vrot.slane %v11353_v22, 5  ;;  %v2922_v50 = vrot.slane %v2920_v2, 4  ;;  %v2925_v59 = vrot.slane %v2923_v44, 5  ;;  %v10126_v44 = vld [vmem:[#allocation4 + $0x1c0] sm:$0xff]  }
 0x1b8   : > { %9188 = vmatpush3.bf16.msra.mxu0 %v10105_v35  ;;  %9199 = vmatprep.mubr.bf16.mxu0 %v8118_v19  ;;  %v8074_v35 = vcombine.low %v2521_v0, %v2525_v53 }
 0x1b9   : > { %9189 = vmatprep.subr.bf16.mxu0 %v10107_v55  ;;  %v2926_v2 = vor.u32 %v2925_v59, %v2922_v50  ;;  %v10139_v59 = vld [vmem:[#allocation7 + $0x28] sm:$0xff]  }
 0x1ba   : > { %9114 = vmatpush3.bf16.msra.mxu1 %v10106_v41  ;;  %v12302_v41 = vrot.slane %v11341_v11, 9 }
 0x1bb   : > { %9115 = vmatprep.subr.bf16.mxu1 %v10109_v32 }
 0x1bc   : > { %9190 = vmatpush3.bf16.msra.mxu0 %v10107_v55  ;;  %v3196_v23 = vsel %vm10914_vm3, %v12302_v41, %v12301_v49  ;;  %v3204_v55 = vsel %vm10914_vm3, %v12304_v27, %v12303_v31  ;;  %v2978_v31 = vrot.slane %v2976_v61, 4  ;;  %v10143_v61 = vld [vmem:[#allocation7 + $0x18] sm:$0xff]  }
 0x1bd   : > { %9084 = vmatmul.mubr.bf16.gmra.mxu1 %v10108_v20  ;;  %9191 = vmatprep.subr.bf16.mxu0 %v10110_v26  ;;  %v12308_v20 = vrot.slane %v11349_v63, 9  ;;  %v12311_v63 = vrot.slane %v11367_v47, 9  ;;  %v10122_v47 = vld [vmem:[#allocation4 + $0x1e0] sm:$0xff]  }
 0x1be   : > { %9116 = vmatpush3.bf16.msra.mxu1 %v10109_v32  ;;  %9127 = vmatprep.mubr.bf16.mxu1 %v8074_v35  ;;  %v12306_v32 = vrot.slane %v11339_v14, 9  ;;  %v12309_v14 = vrot.slane %v11363_v9, 5  ;;  %v12312_v35 = vcombine.low %v11289_v37, %v11293_v43  ;;  %v2904_v37 = vsel %vm10935_vm7, %v11391_v57, %v11385_v60  ;;  %v2889_v60 = vld [vmem:[#allocation2 + $0x48] sm:$0xf]  ;;  %v10125_v57 = vld [vmem:[#allocation4 + $0x1c8] sm:$0xff]  }
 0x1bf   : > { %9117 = vmatprep.subr.bf16.mxu1 %v10111_v6  ;;  %v8098_v43 = vcombine.low %v2904_v37, %v2918_v18  ;;  %v2993_v49 = vshll.u32 %v2889_v60, 16  ;;  %v10127_v18 = vld [vmem:[#allocation7 + $0x78] sm:$0xff]   ;;  %v10129_v37 = vld [vmem:[#allocation7 + $0x68] sm:$0xff]  }
 0x1c0   : > { %9192 = vmatpush3.bf16.msra.mxu0 %v10110_v26  ;;  %v3192_v19 = vsel %vm10914_vm3, %v12306_v32, %v12305_v62  ;;  %v12307_v26 = vrot.slane %v11347_v17, 5  ;;  %v3208_v0 = vsel %vm10914_vm3, %v12310_v39, %v12309_v14  ;;  %v2927_v32 = vrot.slane %v2926_v2, 4  ;;  %v10144_v2 = vld [vmem:[#allocation7 + $0xa0] sm:$0xff]  }
 0x1c1   : > { %9193 = vmatprep.subr.bf16.mxu0 %v10112_v46  ;;  %v8119_v11 = vcombine.low %v3192_v19, %v3196_v23  ;;  %v2929_v23 = vshll.u32 %v11335_v3, 16  ;;  %v2995_v27 = vrot.slane %v2993_v49, 5  ;;  %v2945_v19 = vrot.slane %v2943_v54, 5  ;;  %v10142_v49 = vld [vmem:[#allocation7 + $0xa8] sm:$0xff]   ;;  %v10146_v54 = vld [vmem:[#allocation7 + $0x98] sm:$0xff]  }
 0x1c2   : > { %9118 = vmatpush3.bf16.msra.mxu1 %v10111_v6  ;;  %v3200_v53 = vsel %vm10914_vm3, %v12308_v20, %v12307_v26  ;;  %v2985_v3 = vshll.u32 %v11363_v9, 16 }
 0x1c3   : > { %9119 = vmatprep.subr.bf16.mxu1 %v10113_v40  ;;  %v8120_v6 = vcombine.low %v3200_v53, %v3204_v55  ;;  %v2957_v55 = vshll.u32 %v11347_v17, 16  ;;  %v2931_v10 = vrot.slane %v2929_v23, 5  ;;  %v10148_v23 = vld [vmem:[#allocation7 + $0x90] sm:$0xff]  }
 0x1c4   : > { %9194 = vmatpush3.bf16.msra.mxu0 %v10112_v46  ;;  %v3212_v46 = vsel %vm10914_vm3, %v12311_v63, %v3211_v38  ;;  %v10124_v38 = vld [vmem:[#allocation4 + $0x1d0] sm:$0xff]   ;;  %v2987_v9 = vrot.slane %v2985_v3, 5  ;;  %v10152_v3 = vld [vmem:[#allocation3] ss:$0 sps:$4 sm:$0x66]  }
 0x1c5   : > { %9195 = vmatprep.subr.bf16.mxu0 %v10114_v13 }
 0x1c6   : > { %9120 = vmatpush3.bf16.msra.mxu1 %v10113_v40  ;;  %v8121_v40 = vcombine.low %v3208_v0, %v3212_v46 }
 0x1c7   : > { %9121 = vmatprep.subr.bf16.mxu1 %v10115_v42 }
 0x1c8   : > { %9196 = vmatpush3.bf16.msra.mxu0 %v10114_v13  ;;  %v10121_v13 = vld [vmem:[#allocation4 + $0x1e8] sm:$0xff]  }
 0x1c9   : > { %9197 = vmatprep.subr.bf16.mxu0 %v10116_v4 }
 0x1ca   : > { %9122 = vmatpush3.bf16.msra.mxu1 %v10115_v42  ;;  %v2967_v42 = vrot.slane %v2965_v51, 5  ;;  %v2979_v51 = vshll.u32 %v2887_v7, 16  ;;  %v10135_v7 = vld [vmem:[#allocation7 + $0x40] sm:$0xff]  }
 0x1cb   : > { %9123 = vmatprep.subr.bf16.mxu1 %v10117_v30 }
 0x1cc   : > { %9198 = vmatpush3.bf16.msra.mxu0 %v10116_v4  ;;  %v2940_v4 = vor.u32 %v11397_v24, %v11393_v33  ;;  %v2968_v41 = vor.u32 %v2967_v42, %v2964_v58  ;;  %v2981_v12 = vrot.slane %v2979_v51, 5  ;;  %v10136_v58 = vld [vmem:[#allocation7 + $0x30] sm:$0xff]   ;;  %v10137_v42 = vld [vmem:[#allocation3] ss:$0 sps:$4 sm:$0x77]  }
 0x1cd   : > { %v3570_v50 = vshll.u32 %v10137_v42, 16  ;;  %v10140_v51 = vld [vmem:[#allocation7 + $0xb0] sm:$0xff]  }
 0x1ce   : > { %9124 = vmatpush3.bf16.msra.mxu1 %v10117_v30  ;;  %v2950_v30 = vrot.slane %v2948_v28, 4  ;;  %v2941_v33 = vrot.slane %v2940_v4, 4  ;;  %v2971_v28 = vshll.u32 %v11353_v22, 16  ;;  %v2969_v62 = vrot.slane %v2968_v41, 4  ;;  %v10141_v4 = vld [vmem:[#allocation7 + $0x20] sm:$0xff]   ;;  %v10147_v41 = vld [vmem:[#allocation7 + $0x8] sm:$0xff]  }
 0x1cf   : > { %9200 = vmatmul.mubr.bf16.vlgmr.msra.gmra.mxu0 %v8119_v11  ;;  %9125 = vmatprep.subr.bf16.mxu1 %v10118_v15  ;;  %v2982_v22 = vor.u32 %v2981_v12, %v2978_v31 }
 0x1d0   : > { %9203 = vmatprep.mubr.bf16.mxu0 %v8120_v6  ;;  %v2954_v24 = vor.u32 %v2953_v45, %v2950_v30  ;;  %v2973_v26 = vrot.slane %v2971_v28, 5  ;;  %v2946_v20 = vsel %vm10935_vm7, %v2941_v33, %v2945_v19  ;;  %v2959_v6 = vrot.slane %v2957_v55, 5  ;;  %v10138_v30 = vld [vmem:[#allocation7 + $0xb8] sm:$0xff]   ;;  %v10149_v33 = vld [vmem:[#allocation7] sm:$0xff]   ;;  %v3529_v19 = vld [vmem:[#allocation3] sm:$0x3] }
 0x1d1   : > { %v2983_v63 = vrot.slane %v2982_v22, 4 }
 0x1d2   : > { %9126 = vmatpush3.bf16.msra.mxu1 %v10118_v15  ;;  %v2990_v15 = vshrl.u32 %v2889_v60, 16  ;;  %v2955_v11 = vrot.slane %v2954_v24, 4  ;;  %v2974_v17 = vsel %vm10935_vm7, %v2969_v62, %v2973_v26  ;;  %v3568_v60 = vshrl.u32 %v10137_v42, 16  ;;  %v10151_v26 = vld [vmem:[#allocation7 + $0x80] sm:$0xff]   ;;  %v10166_v42 = vld [vmem:[#allocation7 + $0x110] sm:$0xff]  }
 0x1d3   : > { %9159 = vmatprep.subr.bf16.mxu1 %v10119_v1 }
 0x1d4   : > { %v2992_v8 = vrot.slane %v2990_v15, 4  ;;  %v2960_v39 = vsel %vm10935_vm7, %v2955_v11, %v2959_v6  ;;  %v10145_v15 = vld [vmem:[#allocation7 + $0x10] sm:$0xff]  }
 0x1d5   : > { %9128 = vmatmul.mubr.bf16.vlgmr.msra.gmra.mxu1 %v12312_v35  ;;  %v8100_v0 = vcombine.low %v2960_v39, %v2974_v17 }
 0x1d6   : > { %9131 = vmatprep.mubr.bf16.mxu1 %v12313_v36  ;;  %9160 = vmatpush3.bf16.msra.mxu1 %v10119_v1  ;;  %v2996_v53 = vor.u32 %v2995_v27, %v2992_v8  ;;  %v2999_v1 = vshll.u32 %v11365_v56, 16  ;;  %v2988_v56 = vsel %vm10935_vm7, %v2983_v63, %v2987_v9  ;;  %v12252_v36 = vmov 0.0   ;;  %v10156_v9 = vld [vmem:[#allocation7 + $0x138] sm:$0xff]   ;;  %v10158_v63 = vld [vmem:[#allocation7 + $0x130] sm:$0xff]  }
 0x1d7   : > { %9204 = vmatmul.mubr.bf16.gmra.mxu0 %v8121_v40  ;;  %9161 = vmatprep.subr.bf16.mxu1 %v10120_v21 }
 0x1d8   : > { %v2997_v46 = vrot.slane %v2996_v53, 4  ;;  %v3001_v35 = vrot.slane %v2999_v1, 5  ;;  %9227 = vmatprep.subr.bf16.mxu0 %v12252_v36  ;;  %9243 = vmatprep.mubr.msk.bf16.mxu0 %vm10635_vm9, %v12252_v36  ;;  %v3772_v53 = vrot.slane %v10152_v3, 1 }
 0x1da   : > { %9162 = vmatpush3.bf16.msra.mxu1 %v10120_v21  ;;  %v2932_v21 = vsel %vm10935_vm7, %v2927_v32, %v2931_v10  ;;  %v3002_v40 = vsel %vm10935_vm7, %v2997_v46, %v3001_v35  ;;  %v10150_v32 = vld [vmem:[#allocation7 + $0x88] sm:$0xff]  }
 0x1db   : > { %9163 = vmatprep.subr.bf16.mxu1 %v10121_v13  ;;  %v8099_v14 = vcombine.low %v2932_v21, %v2946_v20  ;;  %v10153_v20 = vld [vmem:[#allocation7 + $0xf8] sm:$0xff]  }
 0x1dd   : > { %9132 = vmatmul.mubr.bf16.gmra.mxu1 %v12314_v48  ;;  %v10132_v48 = vld [vmem:[#allocation7 + $0x50] sm:$0xff]  }
 0x1de   : > { %9164 = vmatpush3.bf16.msra.mxu1 %v10121_v13  ;;  %9175 = vmatprep.mubr.bf16.mxu1 %v8098_v43  ;;  %v8101_v13 = vcombine.low %v2988_v56, %v3002_v40  ;;  %v10130_v43 = vld [vmem:[#allocation7 + $0x60] sm:$0xff]   ;;  %v10160_v40 = vld [vmem:[#allocation7 + $0x128] sm:$0xff]  }
 0x1df   : > { %9165 = vmatprep.subr.bf16.mxu1 %v10122_v47  ;;  %v10157_v56 = vld [vmem:[#allocation7 + $0xe0] sm:$0xff]  }
 0x1e2   : > { %9166 = vmatpush3.bf16.msra.mxu1 %v10122_v47  ;;  %v10128_v47 = vld [vmem:[#allocation7 + $0x70] sm:$0xff]  }
 0x1e3   : > { %9167 = vmatprep.subr.bf16.mxu1 %v10123_v52 }
 0x1e6   : > { %9168 = vmatpush3.bf16.msra.mxu1 %v10123_v52  ;;  %v10133_v52 = vld [vmem:[#allocation7 + $0x48] sm:$0xff]  }
 0x1e7   : > { %9169 = vmatprep.subr.bf16.mxu1 %v10124_v38 }
 0x1ea   : > { %9170 = vmatpush3.bf16.msra.mxu1 %v10124_v38  ;;  %v10134_v38 = vld [vmem:[#allocation7 + $0x38] sm:$0xff]  }
 0x1eb   : > { %9171 = vmatprep.subr.bf16.mxu1 %v10125_v57  ;;  %9228 = vmatpush3.bf16.msra.mxu0 %v10134_v38 }
 0x1ec   : > { %9229 = vmatprep.subr.bf16.mxu0 %v12252_v36 }
 0x1ee   : > { %9172 = vmatpush3.bf16.msra.mxu1 %v10125_v57  ;;  %v3572_v57 = vrot.slane %v3570_v50, 1 }
 0x1ef   : > { %9173 = vmatprep.subr.bf16.mxu1 %v10126_v44  ;;  %9230 = vmatpush3.bf16.msra.mxu0 %v10136_v58  ;;  %v10163_v58 = vld [vmem:[#allocation7 + $0xc8] sm:$0xff]  }
 0x1f0   : > { %9231 = vmatprep.subr.bf16.mxu0 %v12252_v36  ;;  %v3573_v45 = vor.u32 %v3572_v57, %v3568_v60 }
 0x1f2   : > { %9174 = vmatpush3.bf16.msra.mxu1 %v10126_v44 }
 0x1f3   : > { %9207 = vmatprep.subr.bf16.mxu1 %v12252_v36  ;;  %9232 = vmatpush3.bf16.msra.mxu0 %v10139_v59  ;;  %v10165_v59 = vld [vmem:[#allocation7 + $0xc0] sm:$0xff]  }
 0x1f4   : > { %9233 = vmatprep.subr.bf16.mxu0 %v12252_v36 }
 0x1f5   : > { %9176 = vmatmul.mubr.bf16.vlgmr.msra.gmra.mxu1 %v8099_v14  ;;  %v10154_v14 = vld [vmem:[#allocation7 + $0xf0] sm:$0xff]  }
 0x1f6   : > { %9179 = vmatprep.mubr.bf16.mxu1 %v8100_v0  ;;  %9208 = vmatpush3.bf16.msra.mxu1 %v10127_v18  ;;  %v10155_v0 = vld [vmem:[#allocation7 + $0xe8] sm:$0xff]  }
 0x1f7   : > { %9209 = vmatprep.subr.bf16.mxu1 %v12252_v36  ;;  %9234 = vmatpush3.bf16.msra.mxu0 %v10141_v4  ;;  %v10167_v4 = vld [vmem:[#allocation7 + $0x108] sm:$0xff]  }
 0x1f8   : > { %9235 = vmatprep.subr.bf16.mxu0 %v12252_v36 }
 0x1fa   : > { %9210 = vmatpush3.bf16.msra.mxu1 %v10128_v47  ;;  %v10159_v47 = vld [vmem:[#allocation7 + $0xd8] sm:$0xff]  }
 0x1fb   : > { %9211 = vmatprep.subr.bf16.mxu1 %v12252_v36  ;;  %9236 = vmatpush3.bf16.msra.mxu0 %v10143_v61  ;;  %v10169_v61 = vld [vmem:[#allocation7 + $0x100] sm:$0xff]  }
 0x1fc   : > { %9237 = vmatprep.subr.bf16.mxu0 %v12252_v36 }
 0x1fd   : > { %9180 = vmatmul.mubr.bf16.gmra.mxu1 %v8101_v13 }
 0x1fe   : > { %9212 = vmatpush3.bf16.msra.mxu1 %v10129_v37  ;;  %9223 = vmatprep.mubr.msk.bf16.mxu1 %vm10635_vm9, %v12252_v36  ;;  %v10162_v37 = vld [vmem:[#allocation7 + $0x120] sm:$0xff]  }
 0x1ff   : > { %9213 = vmatprep.subr.bf16.mxu1 %v12252_v36  ;;  %9238 = vmatpush3.bf16.msra.mxu0 %v10145_v15 }
 0x200   : > { %9239 = vmatprep.subr.bf16.mxu0 %v12252_v36 }
 0x202   : > { %9214 = vmatpush3.bf16.msra.mxu1 %v10130_v43 }
 0x203   : > { %9215 = vmatprep.subr.bf16.mxu1 %v12252_v36  ;;  %9240 = vmatpush3.bf16.msra.mxu0 %v10147_v41 }
 0x204   : > { %9241 = vmatprep.subr.bf16.mxu0 %v12252_v36 }
 0x206   : > { %9216 = vmatpush3.bf16.msra.mxu1 %v10131_v34 }
 0x207   : > { %9217 = vmatprep.subr.bf16.mxu1 %v12252_v36  ;;  %9242 = vmatpush3.bf16.msra.mxu0 %v10149_v33 }
 0x208   : > { %9267 = vmatprep.subr.bf16.mxu0 %v12252_v36 }
 0x20a   : > { %9218 = vmatpush3.bf16.msra.mxu1 %v10132_v48  ;;  %9244 = vmatmul.mubr.bf16.vlgmr.msra.gmra.mxu0 %v3529_v19  ;;  %v10161_v48 = vld [vmem:[#allocation7 + $0xd0] sm:$0xff]  }
 0x20b   : > { %9219 = vmatprep.subr.bf16.mxu1 %v12252_v36  ;;  %9283 = vmatprep.mubr.msk.bf16.mxu0 %vm10635_vm9, %v12252_v36 }
 0x20c   : > { %9268 = vmatpush3.bf16.msra.mxu0 %v10153_v20 }
 0x20d   : > { %9269 = vmatprep.subr.bf16.mxu0 %v12252_v36 }
 0x20e   : > { %9220 = vmatpush3.bf16.msra.mxu1 %v10133_v52  ;;  %v10164_v52 = vld [vmem:[#allocation7 + $0x118] sm:$0xff]  }
 0x20f   : > { %9221 = vmatprep.subr.bf16.mxu1 %v12252_v36 }
 0x210   : > { %9270 = vmatpush3.bf16.msra.mxu0 %v10154_v14 }
 0x211   : > { %9271 = vmatprep.subr.bf16.mxu0 %v12252_v36 }
 0x212   : > { %9222 = vmatpush3.bf16.msra.mxu1 %v10135_v7 }
 0x213   : > { %9247 = vmatprep.subr.bf16.mxu1 %v12252_v36 }
 0x214   : > { %9272 = vmatpush3.bf16.msra.mxu0 %v10155_v0 }
 0x215   : > { %9224 = vmatmul.mubr.bf16.vlgmr.msra.gmra.mxu1 %v3573_v45  ;;  %9273 = vmatprep.subr.bf16.mxu0 %v12252_v36 }
 0x216   : > { %9248 = vmatpush3.bf16.msra.mxu1 %v10138_v30  ;;  %9263 = vmatprep.mubr.msk.bf16.mxu1 %vm10635_vm9, %v12252_v36 }
 0x217   : > { %9249 = vmatprep.subr.bf16.mxu1 %v12252_v36 }
 0x218   : > { %9274 = vmatpush3.bf16.msra.mxu0 %v10157_v56 }
 0x219   : > { %9275 = vmatprep.subr.bf16.mxu0 %v12252_v36 }
 0x21a   : > { %9250 = vmatpush3.bf16.msra.mxu1 %v10140_v51 }
 0x21b   : > { %9251 = vmatprep.subr.bf16.mxu1 %v12252_v36 }
 0x21c   : > { %9276 = vmatpush3.bf16.msra.mxu0 %v10159_v47 }
 0x21d   : > { %9277 = vmatprep.subr.bf16.mxu0 %v12252_v36 }
 0x21e   : > { %9252 = vmatpush3.bf16.msra.mxu1 %v10142_v49 }
 0x21f   : > { %9253 = vmatprep.subr.bf16.mxu1 %v12252_v36 }
 0x220   : > { %9278 = vmatpush3.bf16.msra.mxu0 %v10161_v48 }
 0x221   : > { %9279 = vmatprep.subr.bf16.mxu0 %v12252_v36 }
 0x222   : > { %9254 = vmatpush3.bf16.msra.mxu1 %v10144_v2 }
 0x223   : > { %9255 = vmatprep.subr.bf16.mxu1 %v12252_v36 }
 0x224   : > { %9280 = vmatpush3.bf16.msra.mxu0 %v10163_v58 }
 0x225   : > { %9281 = vmatprep.subr.bf16.mxu0 %v12252_v36 }
 0x226   : > { %9256 = vmatpush3.bf16.msra.mxu1 %v10146_v54  ;;  %v11556_v27 = vpop.f32.mrf.mxu0 }
 0x227   : > { %9257 = vmatprep.subr.bf16.mxu1 %v12252_v36 }
 0x228   : > { %v11560_v62 = vpop.f32.mrf.mxu0  ;;  %9282 = vmatpush3.bf16.msra.mxu0 %v10165_v59 }
 0x229   : > { %9307 = vmatprep.subr.bf16.mxu0 %v12252_v36 }
 0x22a   : > { %9258 = vmatpush3.bf16.msra.mxu1 %v10148_v23  ;;  %v11564_v11 = vpop.f32.mrf.mxu0 }
 0x22b   : > { %9259 = vmatprep.subr.bf16.mxu1 %v12252_v36 }
 0x22c   : > { %v11571_v1 = vpop.f32.mrf.mxu0 }
 0x22e   : > { %9260 = vmatpush3.bf16.msra.mxu1 %v10150_v32 }
 0x22f   : > { %9261 = vmatprep.subr.bf16.mxu1 %v12252_v36 }
 0x232   : > { %9262 = vmatpush3.bf16.msra.mxu1 %v10151_v26 }
 0x233   : > { %9287 = vmatprep.subr.bf16.mxu1 %v12252_v36 }
 0x234   : > { %v11542_v44 = vpop.f32.mrf.mxu1 }
 0x235   : > { %9264 = vmatmul.mubr.bf16.vlgmr.msra.gmra.mxu1 %v3772_v53 }
 0x236   : > { %v11544_v24 = vpop.f32.mrf.mxu1  ;;  %9303 = vmatprep.mubr.msk.bf16.mxu1 %vm10635_vm9, %v12252_v36  ;;  %9288 = vmatpush3.bf16.msra.mxu1 %v10156_v9 }
 0x237   : > { %9289 = vmatprep.subr.bf16.mxu1 %v12252_v36 }
 0x238   : > { %v11548_v28 = vpop.f32.mrf.mxu1 }
 0x23a   : > { %v11550_v31 = vpop.f32.mrf.mxu1  ;;  %9290 = vmatpush3.bf16.msra.mxu1 %v10158_v63 }
 0x23b   : > { %9291 = vmatprep.subr.bf16.mxu1 %v12252_v36 }
 0x23d   : > { %v11575_v6 = vpop.f32.mrf.mxu0 }
 0x23e   : > { %9292 = vmatpush3.bf16.msra.mxu1 %v10160_v40 }
 0x23f   : > { %v11581_v21 = vpop.f32.mrf.mxu0  ;;  %9293 = vmatprep.subr.bf16.mxu1 %v12252_v36 }
 0x241   : > { %v11586_v46 = vpop.f32.mrf.mxu0 }
 0x242   : > { %9294 = vmatpush3.bf16.msra.mxu1 %v10162_v37 }
 0x243   : > { %v11592_v13 = vpop.f32.mrf.mxu0  ;;  %9295 = vmatprep.subr.bf16.mxu1 %v12252_v36 }
 0x246   : > { %9296 = vmatpush3.bf16.msra.mxu1 %v10164_v52 }
 0x247   : > { %9297 = vmatprep.subr.bf16.mxu1 %v12252_v36 }
 0x248   : > { %v11552_v12 = vpop.f32.mrf.mxu1 }
 0x24a   : > { %v11554_v8 = vpop.f32.mrf.mxu1  ;;  %9298 = vmatpush3.bf16.msra.mxu1 %v10166_v42 }
 0x24b   : > { %9299 = vmatprep.subr.bf16.mxu1 %v12252_v36 }
 0x24c   : > { %v11558_v55 = vpop.f32.mrf.mxu1 }
 0x24d   : > { %v11598_v43 = vpop.f32.mrf.mxu0 }
 0x24e   : > { %v11562_v10 = vpop.f32.mrf.mxu1  ;;  %9300 = vmatpush3.bf16.msra.mxu1 %v10167_v4 }
 0x24f   : > { %v11604_v38 = vpop.f32.mrf.mxu0  ;;  %9301 = vmatprep.subr.bf16.mxu1 %v12252_v36 }
 0x251   : > { %v11610_v60 = vpop.f32.mrf.mxu0 }
 0x252   : > { %9302 = vmatpush3.bf16.msra.mxu1 %v10169_v61 }
 0x253   : > { %v11616_v30 = vpop.f32.mrf.mxu0  ;;  %9327 = vmatprep.subr.bf16.mxu1 %v12252_v36 }
 0x255   : > { %v11569_v22 = vpop.f32.mrf.mxu1 }
 0x256   : > { %v1807_v47 = vadd.f32 %v11569_v22, %v11542_v44 }
 0x257   : > { %v11577_v17 = vpop.f32.mrf.mxu1  ;;  %v11620_v51 = vpop.f32.mrf.mxu0 }
 0x258   : > { %v1799_v48 = vadd.f32 %v11577_v17, %v11544_v24  ;;  %v2036_v42 = vadd.f32 %v11556_v27, %v1807_v47 }
 0x259   : > { %v11583_v39 = vpop.f32.mrf.mxu1  ;;  %v11623_v49 = vpop.f32.mrf.mxu0 }
 0x25a   : > { %v1810_v58 = vadd.f32 %v11583_v39, %v11548_v28  ;;  %v2034_v36 = vadd.f32 %v11560_v62, %v1799_v48 }
 0x25b   : > { %v11589_v35 = vpop.f32.mrf.mxu1  ;;  %v11626_v2 = vpop.f32.mrf.mxu0 }
 0x25c   : > { %v1802_v4 = vadd.f32 %v11589_v35, %v11550_v31  ;;  %v2037_v29 = vadd.f32 %v11564_v11, %v1810_v58 }
 0x25d   : > { %v11595_v18 = vpop.f32.mrf.mxu1  ;;  %v11628_v23 = vpop.f32.mrf.mxu0 }
 0x25e   : > { %v1823_v24 = vadd.f32 %v11595_v18, %v11552_v12  ;;  %v2035_v28 = vadd.f32 %v11571_v1, %v1802_v4 }
 0x25f   : > { %v11601_v34 = vpop.f32.mrf.mxu1 }
 0x260   : > { %v1815_v27 = vadd.f32 %v11601_v34, %v11554_v8 }
 0x261   : > { %v11607_v7 = vpop.f32.mrf.mxu1 }
 0x262   : > { %v1826_v62 = vadd.f32 %v11607_v7, %v11558_v55  ;;  %v2038_v12 = vadd.f32 %v11581_v21, %v1815_v27 }
 0x263   : > { %v11613_v50 = vpop.f32.mrf.mxu1 }
 0x264   : > { %v2041_v34 = vadd.f32 %v11586_v46, %v1826_v62 }
 0x26f   : > { %v9153_v33 = vpop.f32.mrf.mxu0 }
 0x271   : > { %v2836_v19 = vpop.f32.mrf.mxu0 }
 0x273   : > { %v9154_v3 = vpop.f32.mrf.mxu0 }
 0x275   : > { %v9081_v57 = vpop.f32.mrf.mxu1  ;;  %v2839_v14 = vpop.f32.mrf.mxu0 }
 0x276   : > { %v2206_v61 = vadd.f32 %v9081_v57, %v2036_v42 }
 0x277   : > { %v2173_v45 = vpop.f32.mrf.mxu1  ;;  %v11630_v0 = vpop.f32.mrf.mxu0 }
 0x278   : > { %v2204_v5 = vadd.f32 %v2173_v45, %v2034_v36  ;;  %v2488_v31 = vadd.f32 %v11598_v43, %v2206_v61  ;;  %v2040_v45 = vadd.f32 %v11575_v6, %v1823_v24 }
 0x279   : > { %v9082_v15 = vpop.f32.mrf.mxu1  ;;  %v11632_v56 = vpop.f32.mrf.mxu0 }
 0x27a   : > { %v2207_v17 = vadd.f32 %v9082_v15, %v2037_v29  ;;  %v2486_v11 = vadd.f32 %v11604_v38, %v2204_v5  ;;  %v1818_v29 = vadd.f32 %v11613_v50, %v11562_v10  ;;  %v11670_v10 = vld [vmem:[%s12241_s4] ss:$0 sm:$0xff] }
 0x27b   : > { %v2176_v41 = vpop.f32.mrf.mxu1  ;;  %v11636_v37 = vpop.f32.mrf.mxu0 }
 0x27c   : > { %v2205_v35 = vadd.f32 %v2176_v41, %v2035_v28  ;;  %v2489_v8 = vadd.f32 %v11610_v60, %v2207_v17  ;;  %v2039_v60 = vadd.f32 %v11592_v13, %v1818_v29 }
 0x27d   : > { %v9085_v54 = vpop.f32.mrf.mxu1  ;;  %v11643_v59 = vpop.f32.mrf.mxu0 }
 0x27e   : > { %v2210_v43 = vadd.f32 %v9085_v54, %v2040_v45  ;;  %v2487_v55 = vadd.f32 %v11616_v30, %v2205_v35 }
 0x27f   : > { %v2189_v32 = vpop.f32.mrf.mxu1 }
 0x280   : > { %v2208_v15 = vadd.f32 %v2189_v32, %v2038_v12  ;;  %v2492_v48 = vadd.f32 %v11620_v51, %v2210_v43 }
 0x281   : > { %v9086_v26 = vpop.f32.mrf.mxu1 }
 0x282   : > { %v2211_v38 = vadd.f32 %v9086_v26, %v2041_v34  ;;  %v2490_v50 = vadd.f32 %v11623_v49, %v2208_v15 }
 0x283   : > { %v2192_v20 = vpop.f32.mrf.mxu1 }
 0x284   : > { %v2209_v32 = vadd.f32 %v2192_v20, %v2039_v60 }
 0x28f   : > { %v9201_v44 = vpop.f32.mrf.mxu0 }
 0x291   : > { %v3328_v39 = vpop.f32.mrf.mxu0 }
 0x293   : > { %v9202_v1 = vpop.f32.mrf.mxu0 }
 0x295   : > { %v9129_v53 = vpop.f32.mrf.mxu1  ;;  %v3331_v21 = vpop.f32.mrf.mxu0 }
 0x296   : > { %v2698_v36 = vadd.f32 %v9129_v53, %v2488_v31 }
 0x297   : > { %v2665_v9 = vpop.f32.mrf.mxu1  ;;  %v9205_v13 = vpop.f32.mrf.mxu0 }
 0x298   : > { %v2696_v18 = vadd.f32 %v2665_v9, %v2486_v11  ;;  %v2869_v5 = vadd.f32 %v9153_v33, %v2698_v36 }
 0x299   : > { %v9130_v63 = vpop.f32.mrf.mxu1  ;;  %v3344_v27 = vpop.f32.mrf.mxu0 }
 0x29a   : > { %v2699_v41 = vadd.f32 %v9130_v63, %v2489_v8  ;;  %v2867_v9 = vadd.f32 %v2836_v19, %v2696_v18  ;;  %v2493_v63 = vadd.f32 %v11626_v2, %v2211_v38 }
 0x29b   : > { %v2668_v40 = vpop.f32.mrf.mxu1 }
 0x29c   : > { %v2697_v6 = vadd.f32 %v2668_v40, %v2487_v55  ;;  %v2870_v33 = vadd.f32 %v9154_v3, %v2699_v41  ;;  %v2491_v3 = vadd.f32 %v11628_v23, %v2209_v32 }
 0x29d   : > { %v9133_v52 = vpop.f32.mrf.mxu1 }
 0x29e   : > { %v2702_v26 = vadd.f32 %v9133_v52, %v2492_v48  ;;  %v2868_v40 = vadd.f32 %v2839_v14, %v2697_v6 }
 0x29f   : > { %v2681_v22 = vpop.f32.mrf.mxu1 }
 0x2a0   : > { %v2700_v58 = vadd.f32 %v2681_v22, %v2490_v50  ;;  %v2873_v52 = vadd.f32 %v11630_v0, %v2702_v26 }
 0x2a1   : > { %v9134_v57 = vpop.f32.mrf.mxu1 }
 0x2a2   : > { %v2703_v61 = vadd.f32 %v9134_v57, %v2493_v63  ;;  %v2871_v17 = vadd.f32 %v11632_v56, %v2700_v58  ;;  %v3460_v63 = vld [vmem:[#allocation3 + $0x8] sm:$0x1] }
 0x2a3   : > { %v2684_v7 = vpop.f32.mrf.mxu1 }
 0x2a4   : > { %v2874_v35 = vadd.f32 %v11636_v37, %v2703_v61  ;;  %v3469_v61 = vld [vmem:[#allocation3 + $0x4] sm:$0x2] }
 0x2b5   : > { %v9177_v53 = vpop.f32.mrf.mxu1 }
 0x2b6   : > { %v3151_v47 = vadd.f32 %v9177_v53, %v2869_v5 }
 0x2b7   : > { %v3118_v46 = vpop.f32.mrf.mxu1 }
 0x2b8   : > { %v3361_v30 = vadd.f32 %v9201_v44, %v3151_v47  ;;  %v3149_v54 = vadd.f32 %v3118_v46, %v2867_v9 }
 0x2b9   : > { %v9178_v19 = vpop.f32.mrf.mxu1 }
 0x2ba   : > { %v3376_v51 = vadd.f32 %v11670_v10, %v3361_v30  ;;  %v3359_v42 = vadd.f32 %v3328_v39, %v3149_v54  ;;  %v3152_v4 = vadd.f32 %v9178_v19, %v2870_v33  ;;  %v2701_v39 = vadd.f32 %v2684_v7, %v2491_v3  ;;  %v3472_v30 = vld [vmem:[#allocation3 + $0x8] sm:$0x2]  ;;  %v3520_v19 = vld [vmem:[#allocation3 + $0x8] sm:$0x4] }
 0x2bb   : > { %v3121_v24 = vpop.f32.mrf.mxu1 }
 0x2bc   : > { %v3374_v28 = vadd.f32 %v11670_v10, %v3359_v42  ;;  %v3362_v49 = vadd.f32 %v9202_v1, %v3152_v4  ;;  %v3150_v44 = vadd.f32 %v3121_v24, %v2868_v40  ;;  %v3384_v20 = vmul.f32 0.1, %v3376_v51  ;;  %v9206_v1 = vpop.f32.mrf.mxu0  ;;  %v3457_v24 = vld [vmem:[#allocation3 + $0x4] sm:$0x1] }
 0x2bd   : > { %v9181_v2 = vpop.f32.mrf.mxu1  ;;  %v2872_v34 = vadd.f32 %v11643_v59, %v2701_v39 }
 0x2be   : > { %v3377_v14 = vadd.f32 %v11670_v10, %v3362_v49  ;;  %v3360_v22 = vadd.f32 %v3331_v21, %v3150_v44  ;;  %v3155_v31 = vadd.f32 %v9181_v2, %v2873_v52  ;;  %v3382_v57 = vmul.f32 0.1, %v3374_v28  ;;  %v3347_v6 = vpop.f32.mrf.mxu0  ;;  %v3517_v2 = vld [vmem:[#allocation3 + $0x4] sm:$0x4] }
 0x2bf   : > { %v3134_v62 = vpop.f32.mrf.mxu1  ;;  %v3392_v45 = vmax.f32 %v3376_v51, %v3384_v20 }
 0x2c0   : > { %v3385_v36 = vmul.f32 0.1, %v3377_v14  ;;  %v3375_v11 = vadd.f32 %v11670_v10, %v3360_v22  ;;  %v3153_v23 = vadd.f32 %v3134_v62, %v2871_v17  ;;  %v3365_v12 = vadd.f32 %v9205_v13, %v3155_v31 }
 0x2c1   : > { %v9182_v0 = vpop.f32.mrf.mxu1  ;;  %v3390_v7 = vmax.f32 %v3374_v28, %v3382_v57  ;;  %v3478_v57 = vld [vmem:[#allocation3 + $0x10] sm:$0x2] }
 0x2c2   : > { %v3393_v18 = vmax.f32 %v3377_v14, %v3385_v36  ;;  %v3383_v8 = vmul.f32 0.1, %v3375_v11  ;;  %v3363_v29 = vadd.f32 %v3344_v27, %v3153_v23  ;;  %v3156_v43 = vadd.f32 %v9182_v0, %v2874_v35  ;;  %v3526_v0 = vld [vmem:[#allocation3 + $0x10] sm:$0x4] }
 0x2c3   : > { %v3380_v56 = vadd.f32 %v11670_v10, %v3365_v12  ;;  %v3137_v55 = vpop.f32.mrf.mxu1  ;;  %v3466_v12 = vld [vmem:[#allocation3 + $0x10] sm:$0x1] }
 0x2c4   : > { %v3399_v37 = vmax.f32 %v3392_v45, %v3393_v18  ;;  %v3391_v15 = vmax.f32 %v3375_v11, %v3383_v8  ;;  %v3366_v41 = vadd.f32 %v9206_v1, %v3156_v43  ;;  %v3378_v5 = vadd.f32 %v11670_v10, %v3363_v29  ;;  %v10196_v1 = vld [vmem:[#allocation7 + $0x220] sm:$0xff]  }
 0x2c5   : > { %v3154_v38 = vadd.f32 %v3137_v55, %v2872_v34  ;;  %v3388_v9 = vmul.f32 0.1, %v3380_v56 }
 0x2c6   : > { %v3413_v53 = vrot.slane %v3399_v37, 1  ;;  %v3398_v21 = vmax.f32 %v3390_v7, %v3391_v15  ;;  %v3381_v47 = vadd.f32 %v11670_v10, %v3366_v41  ;;  %v3386_v59 = vmul.f32 0.1, %v3378_v5  ;;  %v3463_v41 = vld [vmem:[#allocation3 + $0xc] sm:$0x1] }
 0x2c7   : > { %v3364_v60 = vadd.f32 %v3347_v6, %v3154_v38  ;;  %v3396_v40 = vmax.f32 %v3380_v56, %v3388_v9  ;;  %v3475_v56 = vld [vmem:[#allocation3 + $0xc] sm:$0x2] }
 0x2c8   : > { %v3421_v48 = vmax.f32 %v3399_v37, %v3413_v53  ;;  %v3412_v46 = vrot.slane %v3398_v21, 1  ;;  %v3389_v50 = vmul.f32 0.1, %v3381_v47  ;;  %v3394_v28 = vmax.f32 %v3378_v5, %v3386_v59  ;;  %v3523_v5 = vld [vmem:[#allocation3 + $0xc] sm:$0x4] }
 0x2c9   : > { %v3379_v54 = vadd.f32 %v11670_v10, %v3364_v60 }
 0x2ca   : > { %v3425_v33 = vpack.c.bf16 %v3421_v48, %v3421_v48  ;;  %v3420_v32 = vmax.f32 %v3398_v21, %v3412_v46  ;;  %v3397_v26 = vmax.f32 %v3381_v47, %v3389_v50  ;;  %v10168_v50 = vld [vmem:[#allocation7 + $0x178] sm:$0xff]  }
 0x2cb   : > { %v3387_v13 = vmul.f32 0.1, %v3379_v54 }
 0x2cc   : > { %v3444_v58 = vshll.u32 %v3425_v33, 16  ;;  %v3473_v51 = vsel %vm10859_vm13, %v3425_v33, %v3472_v30  ;;  %v8140_v42 = vrot.slane %v3425_v33, 9  ;;  %v3424_v4 = vpack.c.bf16 %v3420_v32, %v3420_v32  ;;  %v10170_v33 = vld [vmem:[#allocation7 + $0x170] sm:$0xff]  }
 0x2cd   : > { %3474 = vst [vmem:[#allocation3 + $0x8] sm:$0x2] %v3473_v51  ;;  %v3401_v49 = vmax.f32 %v3396_v40, %v3397_v26  ;;  %v3395_v44 = vmax.f32 %v3379_v54, %v3387_v13  ;;  %v12317_v32 = vmov 0.0   ;;  %v10172_v40 = vld [vmem:[#allocation7 + $0x168] sm:$0xff]   ;;  %v10173_v13 = vld [vmem:[#allocation7 + $0x1b8] sm:$0xff]   ;;  %v10174_v51 = vld [vmem:[#allocation7 + $0x160] sm:$0xff]  }
 0x2ce   : > { %v3461_v10 = vsel %vm10868_vm1, %v3444_v58, %v3460_v63  ;;  %v3521_v20 = vsel %vm10875_vm2, %v8140_v42, %v3520_v19  ;;  %v3441_v52 = vshll.u32 %v3424_v4, 16  ;;  %v3470_v27 = vsel %vm10859_vm13, %v3424_v4, %v3469_v61  ;;  %v10175_v42 = vld [vmem:[#allocation7 + $0x1b0] sm:$0xff]   ;;  %v10177_v61 = vld [vmem:[#allocation7 + $0x1a8] sm:$0xff]  }
 0x2cf   : > { %3462 = vst [vmem:[#allocation3 + $0x8] sm:$0x1] %v3461_v10  ;;  %3522 = vst [vmem:[#allocation3 + $0x8] sm:$0x4] %v3521_v20  ;;  %v8139_v14 = vrot.slane %v3424_v4, 9  ;;  %v3415_v22 = vrot.slane %v3401_v49, 1  ;;  %v3400_v17 = vmax.f32 %v3394_v28, %v3395_v44 }
 0x2d0   : > { %v3458_v39 = vsel %vm10868_vm1, %v3441_v52, %v3457_v24  ;;  %3471 = vst [vmem:[#allocation3 + $0x4] sm:$0x2] %v3470_v27  ;;  %v8136_v36 = vrot.slane %v3444_v58, 9  ;;  %v8135_v34 = vrot.slane %v3441_v52, 9  ;;  %v10176_v4 = vld [vmem:[#allocation7 + $0x158] sm:$0xff]   ;;  %v10178_v24 = vld [vmem:[#allocation7 + $0x150] sm:$0xff]  }
 0x2d1   : > { %3459 = vst [vmem:[#allocation3 + $0x4] sm:$0x1] %v3458_v39  ;;  %v3518_v31 = vsel %vm10875_vm2, %v8139_v14, %v3517_v2  ;;  %v3423_v62 = vmax.f32 %v3401_v49, %v3415_v22  ;;  %v3414_v35 = vrot.slane %v3400_v17, 1  ;;  %v10179_v28 = vld [vmem:[#allocation7 + $0x1a0] sm:$0xff]   ;;  %v10180_v49 = vld [vmem:[#allocation7 + $0x148] sm:$0xff]   ;;  %v10181_v44 = vld [vmem:[#allocation7 + $0x198] sm:$0xff]  }
 0x2d2   : > { %3519 = vst [vmem:[#allocation3 + $0x4] sm:$0x4] %v3518_v31  ;;  %v10182_v20 = vld [vmem:[#allocation7 + $0x140] sm:$0xff]   ;;  %v10183_v52 = vld [vmem:[#allocation7 + $0x190] sm:$0xff]   ;;  %v10185_v22 = vld [vmem:[#allocation7 + $0x188] sm:$0xff]  }
 0x2d3   : > { %v3427_v11 = vpack.c.bf16 %v3423_v62, %v3423_v62  ;;  %v3422_v23 = vmax.f32 %v3400_v17, %v3414_v35  ;;  %v10184_v2 = vld [vmem:[#allocation3 + $0x4] ss:$0 sps:$4 sm:$0x66]   ;;  %v10186_v17 = vld [vmem:[#allocation7 + $0x1f8] sm:$0xff]   ;;  %v10187_v31 = vld [vmem:[#allocation7 + $0x180] sm:$0xff]  }
 0x2d4   : > { %v3496_v45 = vld [vmem:[#allocation3 + $0x8] sm:$0x2]  ;;  %v4109_v39 = vrot.slane %v10184_v2, 1  ;;  %v10189_v35 = vld [vmem:[#allocation7 + $0x1e8] sm:$0xff]  }
 0x2d5   : > { %v3497_v18 = vsel %vm10904_vm5, %v8136_v36, %v3496_v45  ;;  %v3450_v8 = vshll.u32 %v3427_v11, 16  ;;  %v3479_v29 = vsel %vm10859_vm13, %v3427_v11, %v3478_v57  ;;  %v8142_v43 = vrot.slane %v3427_v11, 9  ;;  %v3657_v10 = vpop.f32.mrf.mxu1  ;;  %v10188_v62 = vld [vmem:[#allocation7 + $0x1f0] sm:$0xff]   ;;  %v10190_v57 = vld [vmem:[#allocation7 + $0x238] sm:$0xff]   ;;  %v10191_v11 = vld [vmem:[#allocation7 + $0x1e0] sm:$0xff]  }
 0x2d6   : > { %3498 = vst [vmem:[#allocation3 + $0x8] sm:$0x2] %v3497_v18  ;;  %3480 = vst [vmem:[#allocation3 + $0x10] sm:$0x2] %v3479_v29  ;;  %v3426_v55 = vpack.c.bf16 %v3422_v23, %v3422_v23  ;;  %v10192_v23 = vld [vmem:[#allocation7 + $0x230] sm:$0xff]   ;;  %v10193_v45 = vld [vmem:[#allocation7 + $0x1d8] sm:$0xff]  }
 0x2d7   : > { %v3493_v7 = vld [vmem:[#allocation3 + $0x4] sm:$0x2]  ;;  %v3467_v37 = vsel %vm10868_vm1, %v3450_v8, %v3466_v12  ;;  %v3527_v15 = vsel %vm10875_vm2, %v8142_v43, %v3526_v0  ;;  %v8138_v60 = vrot.slane %v3450_v8, 9  ;;  %v9225_v3 = vpop.f32.mrf.mxu1  ;;  %v10195_v0 = vld [vmem:[#allocation7 + $0x1d0] sm:$0xff]   ;;  %v10198_v29 = vld [vmem:[#allocation7 + $0x218] sm:$0xff]  }
 0x2d8   : > { %v3494_v38 = vsel %vm10904_vm5, %v8135_v34, %v3493_v7  ;;  %3468 = vst [vmem:[#allocation3 + $0x10] sm:$0x1] %v3467_v37  ;;  %3528 = vst [vmem:[#allocation3 + $0x10] sm:$0x4] %v3527_v15  ;;  %v3447_v6 = vshll.u32 %v3426_v55, 16  ;;  %v3476_v53 = vsel %vm10859_vm13, %v3426_v55, %v3475_v56  ;;  %v8141_v21 = vrot.slane %v3426_v55, 9  ;;  %v3745_v56 = vpop.f32.mrf.mxu0 }
 0x2d9   : > { %3495 = vst [vmem:[#allocation3 + $0x4] sm:$0x2] %v3494_v38  ;;  %3477 = vst [vmem:[#allocation3 + $0xc] sm:$0x2] %v3476_v53  ;;  %v3660_v27 = vpop.f32.mrf.mxu1  ;;  %v10194_v12 = vld [vmem:[#allocation7 + $0x228] sm:$0xff]   ;;  %v3746_v34 = vadd.f32 %v3745_v56, %v3657_v10  ;;  %v10199_v7 = vld [vmem:[#allocation7 + $0x1c0] sm:$0xff]  }
 0x2da   : > { %v3464_v47 = vsel %vm10868_vm1, %v3447_v6, %v3463_v41  ;;  %v3524_v9 = vsel %vm10875_vm2, %v8141_v21, %v3523_v5  ;;  %v8137_v16 = vrot.slane %v3447_v6, 9  ;;  %v10171_v25 = vld [vmem:[#allocation3 + $0x4] ss:$0 sps:$4 sm:$0x77]   ;;  %v9245_v55 = vpop.f32.mrf.mxu0  ;;  %v10200_v37 = vld [vmem:[#allocation7 + $0x210] sm:$0xff]   ;;  %v10203_v53 = vld [vmem:[#allocation7 + $0x78] sm:$0xff]  }
 0x2db   : > { %3465 = vst [vmem:[#allocation3 + $0xc] sm:$0x1] %v3464_v47  ;;  %3525 = vst [vmem:[#allocation3 + $0xc] sm:$0x4] %v3524_v9  ;;  %v3994_v26 = vshll.u32 %v10171_v25, 16  ;;  %v3992_v63 = vshrl.u32 %v10171_v25, 16  ;;  %v9226_v14 = vpop.f32.mrf.mxu1 }
 0x2dc   : > { %v10201_v18 = vld [vmem:[#allocation3 + $0x8] ss:$0 sps:$4 sm:$0x77]   ;;  %v10197_v8 = vld [vmem:[#allocation7 + $0x1c8] sm:$0xff]   ;;  %v3748_v41 = vpop.f32.mrf.mxu0  ;;  %v10221_v10 = vld [vmem:[#allocation7 + $0xb8] sm:$0xff]   ;;  %vm4549_vm13 = vcmask 1043456  }
 0x2dd   : > { %v3502_v48 = vld [vmem:[#allocation3 + $0x10] sm:$0x2]  ;;  %v3996_v19 = vrot.slane %v3994_v26, 1  ;;  %v4201_v36 = vld [vmem:[#allocation3 + $0x8] sm:$0x3]  ;;  %v4332_v43 = vshll.u32 %v10201_v18, 16 }
 0x2de   : > { %v3503_v46 = vsel %vm10904_vm5, %v8138_v60, %v3502_v48  ;;  %v4330_v5 = vshrl.u32 %v10201_v18, 16  ;;  %v9246_v38 = vpop.f32.mrf.mxu0  ;;  %v10202_v6 = vld [vmem:[#allocation7 + $0x208] sm:$0xff]   ;;  %v10204_v48 = vld [vmem:[#allocation7 + $0x200] sm:$0xff]   ;;  %v10210_v26 = vld [vmem:[#allocation7 + $0x30] sm:$0xff]  }
 0x2df   : > { %3504 = vst [vmem:[#allocation3 + $0x10] sm:$0x2] %v3503_v46  ;;  %v3997_v58 = vor.u32 %v3996_v19, %v3992_v63  ;;  %v4334_v15 = vrot.slane %v4332_v43, 1  ;;  %v10205_v46 = vld [vmem:[#allocation7 + $0x70] sm:$0xff]   ;;  %v10211_v63 = vld [vmem:[#allocation7 + $0x58] sm:$0xff]   ;;  %v10212_v19 = vld [vmem:[#allocation7 + $0x28] sm:$0xff]  }
 0x2e0   : > { %v3499_v30 = vld [vmem:[#allocation3 + $0xc] sm:$0x2]  ;;  %v3863_v59 = vld [vmem:[#allocation3 + $0x4] sm:$0x3]  ;;  %v10225_v27 = vld [vmem:[#allocation7 + $0xf8] sm:$0xff]  }
 0x2e1   : > { %v3500_v54 = vsel %vm10904_vm5, %v8137_v16, %v3499_v30  ;;  %9284 = vmatmul.mubr.bf16.vlgmr.msra.gmra.mxu0 %v3863_v59  ;;  %9304 = vmatmul.mubr.bf16.vlgmr.msra.gmra.mxu1 %v3997_v58  ;;  %v4335_v21 = vor.u32 %v4334_v15, %v4330_v5  ;;  %v10207_v59 = vld [vmem:[#allocation7 + $0x68] sm:$0xff]   ;;  %v10239_v18 = vld [vmem:[#allocation7 + $0xc0] sm:$0xff]   ;;  %v10242_v43 = vld [vmem:[#allocation7 + $0x178] sm:$0xff]  }
 0x2e2   : > { %3501 = vst [vmem:[#allocation3 + $0xc] sm:$0x2] %v3500_v54  ;;  %9308 = vmatpush3.bf16.msra.mxu0 %v10168_v50  ;;  %9323 = vmatprep.mubr.msk.bf16.mxu0 %vm10635_vm9, %v12317_v32  ;;  %v10206_v50 = vld [vmem:[#allocation3 + $0x8] ss:$0 sps:$4 sm:$0x66]   ;;  %v10208_v54 = vld [vmem:[#allocation7 + $0x38] sm:$0xff]  }
 0x2e3   : > { %9309 = vmatprep.subr.bf16.mxu0 %v12317_v32  ;;  %9328 = vmatpush3.bf16.msra.mxu1 %v10173_v13  ;;  %v4447_v25 = vrot.slane %v10206_v50, 1  ;;  %v10214_v13 = vld [vmem:[#allocation7 + $0x20] sm:$0xff]   ;;  %v10219_v58 = vld [vmem:[#allocation3 + $0x4] ss:$0 sps:$4 sm:$0x77]   ;;  %v10244_v55 = vld [vmem:[#allocation7 + $0x170] sm:$0xff]  }
 0x2e4   : > { %9329 = vmatprep.subr.bf16.mxu1 %v12317_v32  ;;  %9343 = vmatprep.mubr.msk.bf16.mxu1 %vm10635_vm9, %v12317_v32  ;;  %v10224_v2 = vld [vmem:[#allocation7 + $0xa8] sm:$0xff]   ;;  %v4890_v56 = vld [vmem:[#allocation3 + $0x8] sm:$0x3]  ;;  %v10248_v41 = vld [vmem:[#allocation7 + $0x160] sm:$0xff]  }
 0x2e5   : > { %v4558_v14 = vld [vmem:[#allocation3 + $0x4] sm:$0x3]  ;;  %v10247_v15 = vld [vmem:[#allocation7 + $0x110] sm:$0xff]   ;;  %v10255_v50 = vld [vmem:[#allocation7 + $0x1b8] sm:$0xff]  }
 0x2e6   : > { %9310 = vmatpush3.bf16.msra.mxu0 %v10170_v33  ;;  %v10209_v33 = vld [vmem:[#allocation7 + $0x60] sm:$0xff]   ;;  %v10253_v5 = vld [vmem:[#allocation3 + $0x8] ss:$0 sps:$4 sm:$0x77]   ;;  %v10249_v38 = vld [vmem:[#allocation7 + $0x108] sm:$0xff]  }
 0x2e7   : > { %9311 = vmatprep.subr.bf16.mxu0 %v12317_v32  ;;  %9330 = vmatpush3.bf16.msra.mxu1 %v10175_v42  ;;  %v10216_v42 = vld [vmem:[#allocation7 + $0x18] sm:$0xff]  }
 0x2e8   : > { %9331 = vmatprep.subr.bf16.mxu1 %v12317_v32 }
 0x2ea   : > { %9312 = vmatpush3.bf16.msra.mxu0 %v10172_v40  ;;  %v10213_v40 = vld [vmem:[#allocation7 + $0x50] sm:$0xff]  }
 0x2eb   : > { %9313 = vmatprep.subr.bf16.mxu0 %v12317_v32  ;;  %9332 = vmatpush3.bf16.msra.mxu1 %v10177_v61  ;;  %v10217_v61 = vld [vmem:[#allocation7 + $0x40] sm:$0xff]  }
 0x2ec   : > { %9333 = vmatprep.subr.bf16.mxu1 %v12317_v32 }
 0x2ee   : > { %9314 = vmatpush3.bf16.msra.mxu0 %v10174_v51  ;;  %v10215_v51 = vld [vmem:[#allocation7 + $0x48] sm:$0xff]  }
 0x2ef   : > { %9315 = vmatprep.subr.bf16.mxu0 %v12317_v32  ;;  %9334 = vmatpush3.bf16.msra.mxu1 %v10179_v28 }
 0x2f0   : > { %9335 = vmatprep.subr.bf16.mxu1 %v12317_v32 }
 0x2f2   : > { %9316 = vmatpush3.bf16.msra.mxu0 %v10176_v4  ;;  %v4598_v4 = vshll.u32 %v10219_v58, 16 }
 0x2f3   : > { %9317 = vmatprep.subr.bf16.mxu0 %v12317_v32  ;;  %9336 = vmatpush3.bf16.msra.mxu1 %v10181_v44  ;;  %v10220_v44 = vld [vmem:[#allocation7 + $0x8] sm:$0xff]  }
 0x2f4   : > { %9337 = vmatprep.subr.bf16.mxu1 %v12317_v32  ;;  %v4600_v28 = vrot.slane %v4598_v4, 1  ;;  %v10268_v4 = vld [vmem:[#allocation7 + $0x1d8] sm:$0xff]  }
 0x2f5   : > { %v3856_v47 = vpop.f32.mrf.mxu1 }
 0x2f6   : > { %9318 = vmatpush3.bf16.msra.mxu0 %v10178_v24  ;;  %v11757_v9 = vadd.f32 %v3856_v47, %v3746_v34  ;;  %v10218_v24 = vld [vmem:[#allocation7 + $0x10] sm:$0xff]   ;;  %v10243_v34 = vld [vmem:[#allocation7 + $0x120] sm:$0xff]  }
 0x2f7   : > { %9319 = vmatprep.subr.bf16.mxu0 %v12317_v32  ;;  %9338 = vmatpush3.bf16.msra.mxu1 %v10183_v52  ;;  %v9265_v60 = vpop.f32.mrf.mxu1  ;;  %v10223_v52 = vld [vmem:[#allocation7 + $0xb0] sm:$0xff]  }
 0x2f8   : > { %9339 = vmatprep.subr.bf16.mxu1 %v12317_v32  ;;  %v10252_v47 = vld [vmem:[#allocation7 + $0x150] sm:$0xff]  }
 0x2f9   : > { %v3859_v16 = vpop.f32.mrf.mxu1 }
 0x2fa   : > { %9320 = vmatpush3.bf16.msra.mxu0 %v10180_v49  ;;  %v4596_v49 = vshrl.u32 %v10219_v58, 16  ;;  %v10265_v58 = vld [vmem:[#allocation7 + $0x190] sm:$0xff]  }
 0x2fb   : > { %9321 = vmatprep.subr.bf16.mxu0 %v12317_v32  ;;  %9340 = vmatpush3.bf16.msra.mxu1 %v10185_v22  ;;  %v9266_v30 = vpop.f32.mrf.mxu1  ;;  %v10226_v22 = vld [vmem:[#allocation7 + $0xa0] sm:$0xff]  }
 0x2fc   : > { %9341 = vmatprep.subr.bf16.mxu1 %v12317_v32  ;;  %v4601_v3 = vor.u32 %v4600_v28, %v4596_v49  ;;  %v10256_v30 = vld [vmem:[#allocation7 + $0x140] sm:$0xff]   ;;  %v10275_v28 = vld [vmem:[#allocation3 + $0xc] ss:$0 sps:$4 sm:$0x77]   ;;  %v10271_v49 = vld [vmem:[#allocation7 + $0x1c8] sm:$0xff]  }
 0x2fe   : > { %9322 = vmatpush3.bf16.msra.mxu0 %v10182_v20  ;;  %v10222_v20 = vld [vmem:[#allocation7] sm:$0xff]  }
 0x2ff   : > { %9347 = vmatprep.subr.bf16.mxu0 %v12317_v32  ;;  %9342 = vmatpush3.bf16.msra.mxu1 %v10187_v31  ;;  %v10229_v31 = vld [vmem:[#allocation7 + $0xe8] sm:$0xff]  }
 0x300   : > { %9367 = vmatprep.subr.bf16.mxu1 %v12317_v32 }
 0x301   : > { %9324 = vmatmul.mubr.bf16.vlgmr.msra.gmra.mxu0 %v4109_v39  ;;  %v10228_v39 = vld [vmem:[#allocation7 + $0x98] sm:$0xff]  }
 0x302   : > { %9348 = vmatpush3.bf16.msra.mxu0 %v10186_v17  ;;  %9363 = vmatprep.mubr.msk.bf16.mxu0 %vm10635_vm9, %v12317_v32  ;;  %v10227_v17 = vld [vmem:[#allocation7 + $0xf0] sm:$0xff]  }
 0x303   : > { %9349 = vmatprep.subr.bf16.mxu0 %v12317_v32  ;;  %9344 = vmatmul.mubr.bf16.vlgmr.msra.gmra.mxu1 %v4201_v36  ;;  %v10233_v36 = vld [vmem:[#allocation7 + $0xd8] sm:$0xff]  }
 0x304   : > { %9368 = vmatpush3.bf16.msra.mxu1 %v10190_v57  ;;  %9383 = vmatprep.mubr.msk.bf16.mxu1 %vm10635_vm9, %v12317_v32  ;;  %v10232_v57 = vld [vmem:[#allocation7 + $0x88] sm:$0xff]  }
 0x305   : > { %9369 = vmatprep.subr.bf16.mxu1 %v12317_v32 }
 0x306   : > { %9350 = vmatpush3.bf16.msra.mxu0 %v10188_v62  ;;  %v10230_v62 = vld [vmem:[#allocation7 + $0x90] sm:$0xff]  }
 0x307   : > { %9351 = vmatprep.subr.bf16.mxu0 %v12317_v32 }
 0x308   : > { %9370 = vmatpush3.bf16.msra.mxu1 %v10192_v23  ;;  %v10235_v23 = vld [vmem:[#allocation7 + $0xd0] sm:$0xff]  }
 0x309   : > { %9371 = vmatprep.subr.bf16.mxu1 %v12317_v32 }
 0x30a   : > { %9352 = vmatpush3.bf16.msra.mxu0 %v10189_v35  ;;  %v10231_v35 = vld [vmem:[#allocation7 + $0xe0] sm:$0xff]  }
 0x30b   : > { %9353 = vmatprep.subr.bf16.mxu0 %v12317_v32 }
 0x30c   : > { %9372 = vmatpush3.bf16.msra.mxu1 %v10194_v12  ;;  %v10237_v12 = vld [vmem:[#allocation7 + $0xc8] sm:$0xff]  }
 0x30d   : > { %9373 = vmatprep.subr.bf16.mxu1 %v12317_v32 }
 0x30e   : > { %9354 = vmatpush3.bf16.msra.mxu0 %v10191_v11  ;;  %v10234_v11 = vld [vmem:[#allocation7 + $0x80] sm:$0xff]  }
 0x30f   : > { %9355 = vmatprep.subr.bf16.mxu0 %v12317_v32 }
 0x310   : > { %9374 = vmatpush3.bf16.msra.mxu1 %v10196_v1 }
 0x311   : > { %9375 = vmatprep.subr.bf16.mxu1 %v12317_v32 }
 0x312   : > { %9356 = vmatpush3.bf16.msra.mxu0 %v10193_v45  ;;  %v10236_v45 = vld [vmem:[#allocation3 + $0x4] ss:$0 sps:$4 sm:$0x66]  }
 0x313   : > { %9357 = vmatprep.subr.bf16.mxu0 %v12317_v32  ;;  %v4799_v1 = vrot.slane %v10236_v45, 1 }
 0x314   : > { %9376 = vmatpush3.bf16.msra.mxu1 %v10198_v29  ;;  %v10241_v29 = vld [vmem:[#allocation7 + $0x128] sm:$0xff]  }
 0x315   : > { %9377 = vmatprep.subr.bf16.mxu1 %v12317_v32 }
 0x316   : > { %9358 = vmatpush3.bf16.msra.mxu0 %v10195_v0  ;;  %v10238_v0 = vld [vmem:[#allocation7 + $0x138] sm:$0xff]  }
 0x317   : > { %9359 = vmatprep.subr.bf16.mxu0 %v12317_v32 }
 0x318   : > { %9378 = vmatpush3.bf16.msra.mxu1 %v10200_v37  ;;  %v10246_v37 = vld [vmem:[#allocation7 + $0x168] sm:$0xff]  }
 0x319   : > { %9379 = vmatprep.subr.bf16.mxu1 %v12317_v32 }
 0x31a   : > { %9360 = vmatpush3.bf16.msra.mxu0 %v10197_v8  ;;  %v10240_v8 = vld [vmem:[#allocation7 + $0x130] sm:$0xff]  }
 0x31b   : > { %9361 = vmatprep.subr.bf16.mxu0 %v12317_v32 }
 0x31c   : > { %9380 = vmatpush3.bf16.msra.mxu1 %v10202_v6  ;;  %v10250_v6 = vld [vmem:[#allocation7 + $0x158] sm:$0xff]  }
 0x31d   : > { %9381 = vmatprep.subr.bf16.mxu1 %v12317_v32 }
 0x31e   : > { %9362 = vmatpush3.bf16.msra.mxu0 %v10199_v7  ;;  %v10245_v7 = vld [vmem:[#allocation7 + $0x118] sm:$0xff]  }
 0x31f   : > { %9387 = vmatprep.subr.bf16.mxu0 %v12317_v32 }
 0x320   : > { %9382 = vmatpush3.bf16.msra.mxu1 %v10204_v48  ;;  %v5017_v48 = vshrl.u32 %v10253_v5, 16 }
 0x321   : > { %9364 = vmatmul.mubr.bf16.vlgmr.msra.gmra.mxu0 %v4335_v21  ;;  %9407 = vmatprep.subr.bf16.mxu1 %v12317_v32  ;;  %v10251_v21 = vld [vmem:[#allocation7 + $0x100] sm:$0xff]  }
 0x322   : > { %9388 = vmatpush3.bf16.msra.mxu0 %v10203_v53  ;;  %9403 = vmatprep.mubr.msk.bf16.mxu0 %vm10635_vm9, %v12317_v32  ;;  %v5019_v53 = vshll.u32 %v10253_v5, 16 }
 0x323   : > { %9389 = vmatprep.subr.bf16.mxu0 %v12317_v32  ;;  %9384 = vmatmul.mubr.bf16.vlgmr.msra.gmra.mxu1 %v4447_v25  ;;  %v10259_v25 = vld [vmem:[#allocation7 + $0x1a8] sm:$0xff]  }
 0x324   : > { %9408 = vmatpush3.bf16.msra.mxu1 %v10208_v54  ;;  %9423 = vmatprep.mubr.msk.bf16.mxu1 %vm10635_vm9, %v12317_v32  ;;  %v5021_v60 = vrot.slane %v5019_v53, 1  ;;  %v10258_v54 = vld [vmem:[#allocation3 + $0x8] ss:$0 sps:$4 sm:$0x66]  }
 0x325   : > { %9409 = vmatprep.subr.bf16.mxu1 %v12317_v32  ;;  %v10292_v53 = vld [vmem:[#allocation7 + $0x30] sm:$0xff]  }
 0x326   : > { %9390 = vmatpush3.bf16.msra.mxu0 %v10205_v46  ;;  %v10254_v46 = vld [vmem:[#allocation7 + $0x148] sm:$0xff]   ;;  %v5022_v16 = vor.u32 %v5021_v60, %v5017_v48 }
 0x327   : > { %9391 = vmatprep.subr.bf16.mxu0 %v12317_v32 }
 0x328   : > { %9410 = vmatpush3.bf16.msra.mxu1 %v10210_v26  ;;  %v5133_v26 = vrot.slane %v10258_v54, 1  ;;  %v10296_v54 = vld [vmem:[#allocation7 + $0x20] sm:$0xff]  }
 0x329   : > { %9411 = vmatprep.subr.bf16.mxu1 %v12317_v32 }
 0x32a   : > { %9392 = vmatpush3.bf16.msra.mxu0 %v10207_v59  ;;  %v10257_v59 = vld [vmem:[#allocation7 + $0x1b0] sm:$0xff]  }
 0x32b   : > { %9393 = vmatprep.subr.bf16.mxu0 %v12317_v32 }
 0x32c   : > { %9412 = vmatpush3.bf16.msra.mxu1 %v10212_v19  ;;  %v10262_v19 = vld [vmem:[#allocation7 + $0x1f0] sm:$0xff]  }
 0x32d   : > { %9413 = vmatprep.subr.bf16.mxu1 %v12317_v32 }
 0x32e   : > { %9394 = vmatpush3.bf16.msra.mxu0 %v10209_v33  ;;  %v10260_v33 = vld [vmem:[#allocation7 + $0x1f8] sm:$0xff]  }
 0x32f   : > { %9395 = vmatprep.subr.bf16.mxu0 %v12317_v32 }
 0x330   : > { %9414 = vmatpush3.bf16.msra.mxu1 %v10214_v13  ;;  %v10264_v13 = vld [vmem:[#allocation7 + $0x1e8] sm:$0xff]  }
 0x331   : > { %9415 = vmatprep.subr.bf16.mxu1 %v12317_v32 }
 0x332   : > { %9396 = vmatpush3.bf16.msra.mxu0 %v10211_v63  ;;  %v10261_v63 = vld [vmem:[#allocation7 + $0x1a0] sm:$0xff]  }
 0x333   : > { %9397 = vmatprep.subr.bf16.mxu0 %v12317_v32 }
 0x334   : > { %9416 = vmatpush3.bf16.msra.mxu1 %v10216_v42  ;;  %v10267_v42 = vld [vmem:[#allocation7 + $0x188] sm:$0xff]  }
 0x335   : > { %9417 = vmatprep.subr.bf16.mxu1 %v12317_v32 }
 0x336   : > { %9398 = vmatpush3.bf16.msra.mxu0 %v10213_v40  ;;  %v10263_v40 = vld [vmem:[#allocation7 + $0x198] sm:$0xff]  }
 0x337   : > { %9399 = vmatprep.subr.bf16.mxu0 %v12317_v32 }
 0x338   : > { %9418 = vmatpush3.bf16.msra.mxu1 %v10218_v24  ;;  %v10270_v24 = vld [vmem:[#allocation7 + $0x1d0] sm:$0xff]  }
 0x339   : > { %9419 = vmatprep.subr.bf16.mxu1 %v12317_v32 }
 0x33a   : > { %9400 = vmatpush3.bf16.msra.mxu0 %v10215_v51  ;;  %v10266_v51 = vld [vmem:[#allocation7 + $0x1e0] sm:$0xff]  }
 0x33b   : > { %9401 = vmatprep.subr.bf16.mxu0 %v12317_v32 }
 0x33c   : > { %9420 = vmatpush3.bf16.msra.mxu1 %v10220_v44  ;;  %v10272_v44 = vld [vmem:[#allocation7 + $0x238] sm:$0xff]  }
 0x33d   : > { %9421 = vmatprep.subr.bf16.mxu1 %v12317_v32 }
 0x33e   : > { %9402 = vmatpush3.bf16.msra.mxu0 %v10217_v61  ;;  %v10269_v61 = vld [vmem:[#allocation7 + $0x180] sm:$0xff]  }
 0x33f   : > { %9427 = vmatprep.subr.bf16.mxu0 %v12317_v32 }
 0x340   : > { %9422 = vmatpush3.bf16.msra.mxu1 %v10222_v20 }
 0x341   : > { %9404 = vmatmul.mubr.bf16.vlgmr.msra.gmra.mxu0 %v4601_v3  ;;  %9447 = vmatprep.subr.bf16.mxu1 %v12317_v32  ;;  %v5225_v3 = vld [vmem:[#allocation3 + $0xc] sm:$0x3] }
 0x342   : > { %9428 = vmatpush3.bf16.msra.mxu0 %v10221_v10  ;;  %9443 = vmatprep.mubr.msk.bf16.mxu0 %vm10635_vm9, %v12317_v32  ;;  %v5354_v10 = vshll.u32 %v10275_v28, 16 }
 0x343   : > { %9429 = vmatprep.subr.bf16.mxu0 %v12317_v32  ;;  %9424 = vmatmul.mubr.bf16.vlgmr.msra.gmra.mxu1 %v4558_v14 }
 0x344   : > { %9448 = vmatpush3.bf16.msra.mxu1 %v10225_v27  ;;  %9463 = vmatprep.mubr.msk.bf16.mxu1 %vm10635_vm9, %v12317_v32  ;;  %v5356_v14 = vrot.slane %v5354_v10, 1 }
 0x345   : > { %9449 = vmatprep.subr.bf16.mxu1 %v12317_v32 }
 0x346   : > { %9430 = vmatpush3.bf16.msra.mxu0 %v10223_v52  ;;  %v10273_v52 = vld [vmem:[#allocation7 + $0x1c0] sm:$0xff]  }
 0x347   : > { %9431 = vmatprep.subr.bf16.mxu0 %v12317_v32 }
 0x348   : > { %9450 = vmatpush3.bf16.msra.mxu1 %v10227_v17  ;;  %v5352_v17 = vshrl.u32 %v10275_v28, 16  ;;  %v10307_v28 = vld [vmem:[#allocation7 + $0xf8] sm:$0xff]  }
 0x349   : > { %9451 = vmatprep.subr.bf16.mxu1 %v12317_v32 }
 0x34a   : > { %9432 = vmatpush3.bf16.msra.mxu0 %v10224_v2  ;;  %v10274_v2 = vld [vmem:[#allocation7 + $0x230] sm:$0xff]  }
 0x34b   : > { %9433 = vmatprep.subr.bf16.mxu0 %v12317_v32 }
 0x34c   : > { %9452 = vmatpush3.bf16.msra.mxu1 %v10229_v31  ;;  %v10277_v31 = vld [vmem:[#allocation7 + $0x78] sm:$0xff]  }
 0x34d   : > { %9453 = vmatprep.subr.bf16.mxu1 %v12317_v32 }
 0x34e   : > { %9434 = vmatpush3.bf16.msra.mxu0 %v10226_v22 }
 0x34f   : > { %9435 = vmatprep.subr.bf16.mxu0 %v12317_v32 }
 0x350   : > { %9454 = vmatpush3.bf16.msra.mxu1 %v10231_v35  ;;  %v5357_v35 = vor.u32 %v5356_v14, %v5352_v17  ;;  %v10310_v14 = vld [vmem:[#allocation3 + $0x8] ss:$0 sps:$4 sm:$0x66]   ;;  %v10311_v17 = vld [vmem:[#allocation7 + $0xe8] sm:$0xff]  }
 0x351   : > { %9455 = vmatprep.subr.bf16.mxu1 %v12317_v32 }
 0x352   : > { %9436 = vmatpush3.bf16.msra.mxu0 %v10228_v39  ;;  %v10276_v39 = vld [vmem:[#allocation7 + $0x228] sm:$0xff]  }
 0x353   : > { %9437 = vmatprep.subr.bf16.mxu0 %v12317_v32 }
 0x354   : > { %9456 = vmatpush3.bf16.msra.mxu1 %v10233_v36  ;;  %v10278_v36 = vld [vmem:[#allocation7 + $0x220] sm:$0xff]  }
 0x355   : > { %9457 = vmatprep.subr.bf16.mxu1 %v12317_v32 }
 0x356   : > { %9438 = vmatpush3.bf16.msra.mxu0 %v10230_v62 }
 0x357   : > { %9439 = vmatprep.subr.bf16.mxu0 %v12317_v32 }
 0x358   : > { %9458 = vmatpush3.bf16.msra.mxu1 %v10235_v23 }
 0x359   : > { %9459 = vmatprep.subr.bf16.mxu1 %v12317_v32 }
 0x35a   : > { %9440 = vmatpush3.bf16.msra.mxu0 %v10232_v57 }
 0x35b   : > { %9441 = vmatprep.subr.bf16.mxu0 %v12317_v32 }
 0x35c   : > { %9460 = vmatpush3.bf16.msra.mxu1 %v10237_v12  ;;  %v10280_v12 = vld [vmem:[#allocation7 + $0x218] sm:$0xff]  }
 0x35d   : > { %9461 = vmatprep.subr.bf16.mxu1 %v12317_v32 }
 0x35e   : > { %9442 = vmatpush3.bf16.msra.mxu0 %v10234_v11  ;;  %v10279_v11 = vld [vmem:[#allocation7 + $0x70] sm:$0xff]  }
 0x35f   : > { %9467 = vmatprep.subr.bf16.mxu0 %v12317_v32 }
 0x360   : > { %9462 = vmatpush3.bf16.msra.mxu1 %v10239_v18  ;;  %v10282_v18 = vld [vmem:[#allocation7 + $0x210] sm:$0xff]  }
 0x361   : > { %9444 = vmatmul.mubr.bf16.vlgmr.msra.gmra.mxu0 %v4799_v1  ;;  %9487 = vmatprep.subr.bf16.mxu1 %v12317_v32 }
 0x362   : > { %9468 = vmatpush3.bf16.msra.mxu0 %v10238_v0  ;;  %9483 = vmatprep.mubr.msk.bf16.mxu0 %vm10635_vm9, %v12317_v32  ;;  %v10281_v0 = vld [vmem:[#allocation7 + $0x68] sm:$0xff]  }
 0x363   : > { %9469 = vmatprep.subr.bf16.mxu0 %v12317_v32  ;;  %9464 = vmatmul.mubr.bf16.vlgmr.msra.gmra.mxu1 %v4890_v56  ;;  %v10286_v56 = vld [vmem:[#allocation7 + $0x200] sm:$0xff]  }
 0x364   : > { %9488 = vmatpush3.bf16.msra.mxu1 %v10242_v43  ;;  %9503 = vmatprep.mubr.msk.bf16.mxu1 %vm10635_vm9, %v12317_v32  ;;  %v10285_v43 = vld [vmem:[#allocation7 + $0x58] sm:$0xff]  }
 0x365   : > { %9489 = vmatprep.subr.bf16.mxu1 %v12317_v32 }
 0x366   : > { %9470 = vmatpush3.bf16.msra.mxu0 %v10240_v8  ;;  %v10283_v8 = vld [vmem:[#allocation7 + $0x60] sm:$0xff]  }
 0x367   : > { %9471 = vmatprep.subr.bf16.mxu0 %v12317_v32 }
 0x368   : > { %9490 = vmatpush3.bf16.msra.mxu1 %v10244_v55  ;;  %v10288_v55 = vld [vmem:[#allocation3 + $0xc] ss:$0 sps:$4 sm:$0x66]  }
 0x369   : > { %9491 = vmatprep.subr.bf16.mxu1 %v12317_v32 }
 0x36a   : > { %9472 = vmatpush3.bf16.msra.mxu0 %v10241_v29  ;;  %v10284_v29 = vld [vmem:[#allocation7 + $0x208] sm:$0xff]  }
 0x36b   : > { %9473 = vmatprep.subr.bf16.mxu0 %v12317_v32 }
 0x36c   : > { %9492 = vmatpush3.bf16.msra.mxu1 %v10246_v37  ;;  %v10289_v37 = vld [vmem:[#allocation7 + $0x48] sm:$0xff]  }
 0x36d   : > { %9493 = vmatprep.subr.bf16.mxu1 %v12317_v32 }
 0x36e   : > { %9474 = vmatpush3.bf16.msra.mxu0 %v10243_v34  ;;  %v10287_v34 = vld [vmem:[#allocation7 + $0x50] sm:$0xff]  }
 0x36f   : > { %9475 = vmatprep.subr.bf16.mxu0 %v12317_v32 }
 0x370   : > { %9494 = vmatpush3.bf16.msra.mxu1 %v10248_v41  ;;  %v5468_v41 = vrot.slane %v10288_v55, 1  ;;  %v10318_v55 = vld [vmem:[#allocation7 + $0x120] sm:$0xff]  }
 0x371   : > { %9495 = vmatprep.subr.bf16.mxu1 %v12317_v32 }
 0x372   : > { %9476 = vmatpush3.bf16.msra.mxu0 %v10245_v7  ;;  %v10293_v7 = vld [vmem:[#allocation3 + $0x8] ss:$0 sps:$4 sm:$0x77]  }
 0x373   : > { %9477 = vmatprep.subr.bf16.mxu0 %v12317_v32  ;;  %v5618_v5 = vshll.u32 %v10293_v7, 16  ;;  %v5616_v48 = vshrl.u32 %v10293_v7, 16  ;;  %v10319_v7 = vld [vmem:[#allocation7 + $0xc8] sm:$0xff]  }
 0x374   : > { %9496 = vmatpush3.bf16.msra.mxu1 %v10250_v6  ;;  %v10291_v6 = vld [vmem:[#allocation7 + $0x40] sm:$0xff]  }
 0x375   : > { %9497 = vmatprep.subr.bf16.mxu1 %v12317_v32 }
 0x376   : > { %9478 = vmatpush3.bf16.msra.mxu0 %v10247_v15  ;;  %v10290_v15 = vld [vmem:[#allocation7 + $0x38] sm:$0xff]  }
 0x377   : > { %9479 = vmatprep.subr.bf16.mxu0 %v12317_v32 }
 0x378   : > { %9498 = vmatpush3.bf16.msra.mxu1 %v10252_v47  ;;  %v5620_v47 = vrot.slane %v5618_v5, 1  ;;  %v10327_v5 = vld [vmem:[#allocation3 + $0xc] ss:$0 sps:$4 sm:$0x77]  }
 0x379   : > { %9499 = vmatprep.subr.bf16.mxu1 %v12317_v32 }
 0x37a   : > { %9480 = vmatpush3.bf16.msra.mxu0 %v10249_v38 }
 0x37b   : > { %9481 = vmatprep.subr.bf16.mxu0 %v12317_v32 }
 0x37c   : > { %9500 = vmatpush3.bf16.msra.mxu1 %v10254_v46  ;;  %v10294_v46 = vld [vmem:[#allocation7 + $0x28] sm:$0xff]  }
 0x37d   : > { %9501 = vmatprep.subr.bf16.mxu1 %v12317_v32 }
 0x37e   : > { %9482 = vmatpush3.bf16.msra.mxu0 %v10251_v21 }
 0x37f   : > { %9507 = vmatprep.subr.bf16.mxu0 %v12317_v32 }
 0x380   : > { %9502 = vmatpush3.bf16.msra.mxu1 %v10256_v30  ;;  %v5621_v30 = vor.u32 %v5620_v47, %v5616_v48  ;;  %v10326_v48 = vld [vmem:[#allocation7 + $0x170] sm:$0xff]  }
 0x381   : > { %9484 = vmatmul.mubr.bf16.vlgmr.msra.gmra.mxu0 %v5022_v16  ;;  %9527 = vmatprep.subr.bf16.mxu1 %v12317_v32 }
 0x382   : > { %9508 = vmatpush3.bf16.msra.mxu0 %v10255_v50  ;;  %9523 = vmatprep.mubr.msk.bf16.mxu0 %vm10635_vm9, %v12317_v32  ;;  %v10295_v50 = vld [vmem:[#allocation7 + $0xb8] sm:$0xff]  }
 0x383   : > { %9509 = vmatprep.subr.bf16.mxu0 %v12317_v32  ;;  %9504 = vmatmul.mubr.bf16.vlgmr.msra.gmra.mxu1 %v5133_v26 }
 0x384   : > { %9528 = vmatpush3.bf16.msra.mxu1 %v10260_v33  ;;  %9543 = vmatprep.mubr.msk.bf16.mxu1 %vm10635_vm9, %v12317_v32 }
 0x385   : > { %9529 = vmatprep.subr.bf16.mxu1 %v12317_v32 }
 0x386   : > { %9510 = vmatpush3.bf16.msra.mxu0 %v10257_v59 }
 0x387   : > { %9511 = vmatprep.subr.bf16.mxu0 %v12317_v32 }
 0x388   : > { %9530 = vmatpush3.bf16.msra.mxu1 %v10262_v19  ;;  %v10299_v19 = vld [vmem:[#allocation7 + $0xa8] sm:$0xff]  }
 0x389   : > { %9531 = vmatprep.subr.bf16.mxu1 %v12317_v32 }
 0x38a   : > { %9512 = vmatpush3.bf16.msra.mxu0 %v10259_v25  ;;  %v10297_v25 = vld [vmem:[#allocation7 + $0xb0] sm:$0xff]  }
 0x38b   : > { %9513 = vmatprep.subr.bf16.mxu0 %v12317_v32 }
 0x38c   : > { %9532 = vmatpush3.bf16.msra.mxu1 %v10264_v13  ;;  %v10300_v13 = vld [vmem:[#allocation7 + $0x10] sm:$0xff]  }
 0x38d   : > { %9533 = vmatprep.subr.bf16.mxu1 %v12317_v32 }
 0x38e   : > { %9514 = vmatpush3.bf16.msra.mxu0 %v10261_v63  ;;  %v10298_v63 = vld [vmem:[#allocation7 + $0x18] sm:$0xff]  }
 0x38f   : > { %9515 = vmatprep.subr.bf16.mxu0 %v12317_v32 }
 0x390   : > { %9534 = vmatpush3.bf16.msra.mxu1 %v10266_v51  ;;  %v10302_v51 = vld [vmem:[#allocation7 + $0x8] sm:$0xff]  }
 0x391   : > { %9535 = vmatprep.subr.bf16.mxu1 %v12317_v32 }
 0x392   : > { %9516 = vmatpush3.bf16.msra.mxu0 %v10263_v40 }
 0x393   : > { %9517 = vmatprep.subr.bf16.mxu0 %v12317_v32 }
 0x394   : > { %9536 = vmatpush3.bf16.msra.mxu1 %v10268_v4  ;;  %v10304_v4 = vld [vmem:[#allocation7] sm:$0xff]  }
 0x395   : > { %9537 = vmatprep.subr.bf16.mxu1 %v12317_v32 }
 0x396   : > { %9518 = vmatpush3.bf16.msra.mxu0 %v10265_v58  ;;  %v10301_v58 = vld [vmem:[#allocation7 + $0xa0] sm:$0xff]  }
 0x397   : > { %9519 = vmatprep.subr.bf16.mxu0 %v12317_v32 }
 0x398   : > { %9538 = vmatpush3.bf16.msra.mxu1 %v10270_v24  ;;  %v10306_v24 = vld [vmem:[#allocation7 + $0x88] sm:$0xff]  }
 0x399   : > { %9539 = vmatprep.subr.bf16.mxu1 %v12317_v32 }
 0x39a   : > { %9520 = vmatpush3.bf16.msra.mxu0 %v10267_v42  ;;  %v10303_v42 = vld [vmem:[#allocation7 + $0x98] sm:$0xff]  }
 0x39b   : > { %9521 = vmatprep.subr.bf16.mxu0 %v12317_v32 }
 0x39c   : > { %9540 = vmatpush3.bf16.msra.mxu1 %v10271_v49 }
 0x39d   : > { %9541 = vmatprep.subr.bf16.mxu1 %v12317_v32 }
 0x39e   : > { %9522 = vmatpush3.bf16.msra.mxu0 %v10269_v61  ;;  %v10305_v61 = vld [vmem:[#allocation7 + $0x90] sm:$0xff]  }
 0x39f   : > { %9547 = vmatprep.subr.bf16.mxu0 %v12317_v32 }
 0x3a0   : > { %9542 = vmatpush3.bf16.msra.mxu1 %v10273_v52  ;;  %v10308_v52 = vld [vmem:[#allocation7 + $0x80] sm:$0xff]  }
 0x3a1   : > { %9524 = vmatmul.mubr.bf16.vlgmr.msra.gmra.mxu0 %v5225_v3  ;;  %v11839_v20 = vpop.f32.mrf.mxu0  ;;  %9567 = vmatprep.subr.bf16.mxu1 %v12317_v32  ;;  %v11847_v57 = vpop.f32.mrf.mxu1 }
 0x3a2   : > { %9548 = vmatpush3.bf16.msra.mxu0 %v10272_v44  ;;  %9563 = vmatprep.mubr.msk.bf16.mxu0 %vm10635_vm9, %v12317_v32  ;;  %v3969_v49 = vadd.f32 %v11839_v20, %v11757_v9  ;;  %v5578_v44 = vld [vmem:[#allocation3 + $0x8] sm:$0x3] }
 0x3a3   : > { %v9285_v27 = vpop.f32.mrf.mxu0  ;;  %9549 = vmatprep.subr.bf16.mxu0 %v12317_v32  ;;  %9544 = vmatmul.mubr.bf16.vlgmr.msra.gmra.mxu1 %v5357_v35  ;;  %v9305_v23 = vpop.f32.mrf.mxu1 }
 0x3a4   : > { %9568 = vmatpush3.bf16.msra.mxu1 %v10277_v31  ;;  %9583 = vmatprep.mubr.msk.bf16.mxu1 %vm10635_vm9, %v12317_v32  ;;  %v4087_v3 = vadd.f32 %v11847_v57, %v3969_v49  ;;  %v10313_v23 = vld [vmem:[#allocation7 + $0xe0] sm:$0xff]   ;;  %v10337_v49 = vld [vmem:[#allocation7 + $0x198] sm:$0xff]  }
 0x3a5   : > { %v3966_v22 = vpop.f32.mrf.mxu0  ;;  %9569 = vmatprep.subr.bf16.mxu1 %v12317_v32  ;;  %v4084_v45 = vpop.f32.mrf.mxu1 }
 0x3a6   : > { %9550 = vmatpush3.bf16.msra.mxu0 %v10274_v2  ;;  %v10309_v2 = vld [vmem:[#allocation7 + $0xf0] sm:$0xff]  }
 0x3a7   : > { %v9286_v62 = vpop.f32.mrf.mxu0  ;;  %9551 = vmatprep.subr.bf16.mxu0 %v12317_v32  ;;  %v9306_v1 = vpop.f32.mrf.mxu1  ;;  %v10314_v45 = vld [vmem:[#allocation7 + $0x130] sm:$0xff]  }
 0x3a8   : > { %9570 = vmatpush3.bf16.msra.mxu1 %v10279_v11  ;;  %v5819_v62 = vrot.slane %v10310_v14, 1 }
 0x3a9   : > { %9571 = vmatprep.subr.bf16.mxu1 %v12317_v32 }
 0x3aa   : > { %9552 = vmatpush3.bf16.msra.mxu0 %v10276_v39  ;;  %v10312_v39 = vld [vmem:[#allocation7 + $0x138] sm:$0xff]  }
 0x3ab   : > { %9553 = vmatprep.subr.bf16.mxu0 %v12317_v32 }
 0x3ac   : > { %9572 = vmatpush3.bf16.msra.mxu1 %v10281_v0 }
 0x3ad   : > { %9573 = vmatprep.subr.bf16.mxu1 %v12317_v32 }
 0x3ae   : > { %9554 = vmatpush3.bf16.msra.mxu0 %v10278_v36  ;;  %v11901_v36 = vld [vmem:[%s12243_s6] ss:$0 sm:$0xff] }
 0x3af   : > { %9555 = vmatprep.subr.bf16.mxu0 %v12317_v32 }
 0x3b0   : > { %9574 = vmatpush3.bf16.msra.mxu1 %v10283_v8  ;;  %v10315_v8 = vld [vmem:[#allocation7 + $0xd8] sm:$0xff]  }
 0x3b1   : > { %9575 = vmatprep.subr.bf16.mxu1 %v12317_v32 }
 0x3b2   : > { %9556 = vmatpush3.bf16.msra.mxu0 %v10280_v12 }
 0x3b3   : > { %9557 = vmatprep.subr.bf16.mxu0 %v12317_v32 }
 0x3b4   : > { %9576 = vmatpush3.bf16.msra.mxu1 %v10285_v43 }
 0x3b5   : > { %9577 = vmatprep.subr.bf16.mxu1 %v12317_v32 }
 0x3b6   : > { %9558 = vmatpush3.bf16.msra.mxu0 %v10282_v18 }
 0x3b7   : > { %9559 = vmatprep.subr.bf16.mxu0 %v12317_v32 }
 0x3b8   : > { %9578 = vmatpush3.bf16.msra.mxu1 %v10287_v34  ;;  %v10317_v34 = vld [vmem:[#allocation7 + $0xd0] sm:$0xff]  }
 0x3b9   : > { %9579 = vmatprep.subr.bf16.mxu1 %v12317_v32 }
 0x3ba   : > { %9560 = vmatpush3.bf16.msra.mxu0 %v10284_v29  ;;  %v10316_v29 = vld [vmem:[#allocation7 + $0x128] sm:$0xff]  }
 0x3bb   : > { %9561 = vmatprep.subr.bf16.mxu0 %v12317_v32 }
 0x3bc   : > { %9580 = vmatpush3.bf16.msra.mxu1 %v10289_v37  ;;  %v10320_v37 = vld [vmem:[#allocation7 + $0x118] sm:$0xff]  }
 0x3bd   : > { %9581 = vmatprep.subr.bf16.mxu1 %v12317_v32 }
 0x3be   : > { %9562 = vmatpush3.bf16.msra.mxu0 %v10286_v56 }
 0x3bf   : > { %9587 = vmatprep.subr.bf16.mxu0 %v12317_v32 }
 0x3c0   : > { %9582 = vmatpush3.bf16.msra.mxu1 %v10291_v6  ;;  %v10324_v6 = vld [vmem:[#allocation7 + $0x178] sm:$0xff]  }
 0x3c1   : > { %v11863_v38 = vpop.f32.mrf.mxu0  ;;  %9564 = vmatmul.mubr.bf16.vlgmr.msra.gmra.mxu0 %v5468_v41  ;;  %9607 = vmatprep.subr.bf16.mxu1 %v12317_v32  ;;  %v10322_v41 = vld [vmem:[#allocation7 + $0x110] sm:$0xff]  }
 0x3c2   : > { %9588 = vmatpush3.bf16.msra.mxu0 %v10290_v15  ;;  %9603 = vmatprep.mubr.msk.bf16.mxu0 %vm10635_vm9, %v12317_v32  ;;  %v4199_v22 = vadd.f32 %v11863_v38, %v4087_v3  ;;  %v10321_v15 = vld [vmem:[#allocation7 + $0xc0] sm:$0xff]   ;;  %v10323_v38 = vld [vmem:[#allocation7 + $0x108] sm:$0xff]   ;;  %v10340_v3 = vld [vmem:[#allocation3 + $0xc] ss:$0 sps:$4 sm:$0x66]  }
 0x3c3   : > { %v9325_v21 = vpop.f32.mrf.mxu0  ;;  %9589 = vmatprep.subr.bf16.mxu0 %v12317_v32  ;;  %v4301_v59 = vpop.f32.mrf.mxu1  ;;  %9584 = vmatmul.mubr.bf16.vlgmr.msra.gmra.mxu1 %v5621_v30  ;;  %v6037_v30 = vshrl.u32 %v10327_v5, 16 }
 0x3c4   : > { %9608 = vmatpush3.bf16.msra.mxu1 %v10295_v50  ;;  %9623 = vmatprep.mubr.msk.bf16.mxu1 %vm10635_vm9, %v12317_v32  ;;  %v4307_v20 = vadd.f32 %v4301_v59, %v4199_v22  ;;  %v5910_v21 = vld [vmem:[#allocation3 + $0xc] sm:$0x3]  ;;  %v10328_v59 = vld [vmem:[#allocation7 + $0x168] sm:$0xff]  }
 0x3c5   : > { %v4196_v60 = vpop.f32.mrf.mxu0  ;;  %v9345_v33 = vpop.f32.mrf.mxu1  ;;  %9609 = vmatprep.subr.bf16.mxu1 %v12317_v32 }
 0x3c6   : > { %9590 = vmatpush3.bf16.msra.mxu0 %v10292_v53  ;;  %v6039_v53 = vshll.u32 %v10327_v5, 16  ;;  %v10325_v60 = vld [vmem:[#allocation7 + $0x100] sm:$0xff]   ;;  %v10356_v5 = vld [vmem:[#allocation7 + $0x210] sm:$0xff]  }
 0x3c7   : > { %v9326_v16 = vpop.f32.mrf.mxu0  ;;  %9591 = vmatprep.subr.bf16.mxu0 %v12317_v32  ;;  %v4304_v26 = vpop.f32.mrf.mxu1 }
 0x3c8   : > { %9610 = vmatpush3.bf16.msra.mxu1 %v10297_v25  ;;  %v6041_v50 = vrot.slane %v6039_v53, 1  ;;  %v10358_v53 = vld [vmem:[#allocation7 + $0x208] sm:$0xff]  }
 0x3c9   : > { %v9346_v40 = vpop.f32.mrf.mxu1  ;;  %9611 = vmatprep.subr.bf16.mxu1 %v12317_v32 }
 0x3ca   : > { %9592 = vmatpush3.bf16.msra.mxu0 %v10294_v46  ;;  %v6042_v33 = vor.u32 %v6041_v50, %v6037_v30  ;;  %v10331_v40 = vld [vmem:[#allocation7 + $0x1b0] sm:$0xff]  }
 0x3cb   : > { %9593 = vmatprep.subr.bf16.mxu0 %v12317_v32 }
 0x3cc   : > { %9612 = vmatpush3.bf16.msra.mxu1 %v10299_v19  ;;  %v10330_v19 = vld [vmem:[#allocation7 + $0x160] sm:$0xff]  }
 0x3cd   : > { %9613 = vmatprep.subr.bf16.mxu1 %v12317_v32 }
 0x3ce   : > { %9594 = vmatpush3.bf16.msra.mxu0 %v10296_v54  ;;  %v10329_v54 = vld [vmem:[#allocation7 + $0x1b8] sm:$0xff]  }
 0x3cf   : > { %9595 = vmatprep.subr.bf16.mxu0 %v12317_v32 }
 0x3d0   : > { %9614 = vmatpush3.bf16.msra.mxu1 %v10301_v58 }
 0x3d1   : > { %9615 = vmatprep.subr.bf16.mxu1 %v12317_v32 }
 0x3d2   : > { %9596 = vmatpush3.bf16.msra.mxu0 %v10298_v63 }
 0x3d3   : > { %9597 = vmatprep.subr.bf16.mxu0 %v12317_v32 }
 0x3d4   : > { %9616 = vmatpush3.bf16.msra.mxu1 %v10303_v42  ;;  %v10333_v42 = vld [vmem:[#allocation7 + $0x1a8] sm:$0xff]  }
 0x3d5   : > { %9617 = vmatprep.subr.bf16.mxu1 %v12317_v32 }
 0x3d6   : > { %9598 = vmatpush3.bf16.msra.mxu0 %v10300_v13 }
 0x3d7   : > { %9599 = vmatprep.subr.bf16.mxu0 %v12317_v32 }
 0x3d8   : > { %9618 = vmatpush3.bf16.msra.mxu1 %v10305_v61  ;;  %v10334_v61 = vld [vmem:[#allocation7 + $0x150] sm:$0xff]  }
 0x3d9   : > { %9619 = vmatprep.subr.bf16.mxu1 %v12317_v32 }
 0x3da   : > { %9600 = vmatpush3.bf16.msra.mxu0 %v10302_v51  ;;  %v10332_v51 = vld [vmem:[#allocation7 + $0x158] sm:$0xff]  }
 0x3db   : > { %9601 = vmatprep.subr.bf16.mxu0 %v12317_v32 }
 0x3dc   : > { %9620 = vmatpush3.bf16.msra.mxu1 %v10306_v24  ;;  %v10335_v24 = vld [vmem:[#allocation7 + $0x1a0] sm:$0xff]  }
 0x3dd   : > { %9621 = vmatprep.subr.bf16.mxu1 %v12317_v32 }
 0x3de   : > { %9602 = vmatpush3.bf16.msra.mxu0 %v10304_v4 }
 0x3df   : > { %9627 = vmatprep.subr.bf16.mxu0 %v12317_v32 }
 0x3e0   : > { %9622 = vmatpush3.bf16.msra.mxu1 %v10308_v52  ;;  %v10341_v52 = vld [vmem:[#allocation7 + $0x188] sm:$0xff]  }
 0x3e1   : > { %v4419_v10 = vpop.f32.mrf.mxu0  ;;  %9604 = vmatmul.mubr.bf16.vlgmr.msra.gmra.mxu0 %v5578_v44  ;;  %9647 = vmatprep.subr.bf16.mxu1 %v12317_v32  ;;  %v10338_v44 = vld [vmem:[#allocation7 + $0x140] sm:$0xff]  }
 0x3e2   : > { %9628 = vmatpush3.bf16.msra.mxu0 %v10307_v28  ;;  %9643 = vmatprep.mubr.msk.bf16.mxu0 %vm10635_vm9, %v12317_v32  ;;  %v4425_v35 = vadd.f32 %v4419_v10, %v4307_v20  ;;  %v10336_v28 = vld [vmem:[#allocation7 + $0x148] sm:$0xff]   ;;  %v10339_v10 = vld [vmem:[#allocation7 + $0x190] sm:$0xff]  }
 0x3e3   : > { %v9365_v27 = vpop.f32.mrf.mxu0  ;;  %9629 = vmatprep.subr.bf16.mxu0 %v12317_v32  ;;  %v4531_v57 = vpop.f32.mrf.mxu1  ;;  %9624 = vmatmul.mubr.bf16.vlgmr.msra.gmra.mxu1 %v5819_v62  ;;  %v10344_v20 = vld [vmem:[#allocation7 + $0x1f0] sm:$0xff]   ;;  %v10346_v62 = vld [vmem:[#allocation7 + $0x238] sm:$0xff]  }
 0x3e4   : > { %v4537_v11 = vadd.f32 %v4531_v57, %v4425_v35  ;;  %9648 = vmatpush3.bf16.msra.mxu1 %v10312_v39  ;;  %9663 = vmatprep.mubr.msk.bf16.mxu1 %vm10635_vm9, %v12317_v32  ;;  %v6153_v27 = vrot.slane %v10340_v3, 1  ;;  %v6245_v57 = vld [vmem:[#allocation3 + $0x10] sm:$0x3]  ;;  %v10374_v3 = vld [vmem:[#allocation7 + $0x10] sm:$0xff]  }
 0x3e5   : > { %v4422_v9 = vpop.f32.mrf.mxu0  ;;  %v9385_v12 = vpop.f32.mrf.mxu1  ;;  %9649 = vmatprep.subr.bf16.mxu1 %v12317_v32 }
 0x3e6   : > { %9630 = vmatpush3.bf16.msra.mxu0 %v10309_v2  ;;  %v4545_v0 = vadd.f32 %v11901_v36, %v4537_v11  ;;  %v10342_v2 = vld [vmem:[#allocation7 + $0x1f8] sm:$0xff]   ;;  %v10343_v9 = vld [vmem:[#allocation7 + $0x180] sm:$0xff]   ;;  %v10348_v12 = vld [vmem:[#allocation7 + $0x230] sm:$0xff]  }
 0x3e7   : > { %v9366_v31 = vpop.f32.mrf.mxu0  ;;  %9631 = vmatprep.subr.bf16.mxu0 %v12317_v32  ;;  %v4534_v1 = vpop.f32.mrf.mxu1 }
 0x3e8   : > { %v4546_v18 = vmul.f32 0.1, %v4545_v0  ;;  %9650 = vmatpush3.bf16.msra.mxu1 %v10314_v45  ;;  %v10345_v31 = vld [vmem:[#allocation7 + $0x1e8] sm:$0xff]   ;;  %v10347_v45 = vld [vmem:[#allocation7 + $0x1e0] sm:$0xff]  }
 0x3e9   : > { %v9386_v43 = vpop.f32.mrf.mxu1  ;;  %9651 = vmatprep.subr.bf16.mxu1 %v12317_v32 }
 0x3ea   : > { %9632 = vmatpush3.bf16.msra.mxu0 %v10311_v17  ;;  %v11911_v56 = vmax.f32 %v4545_v0, %v4546_v18  ;;  %v10349_v18 = vld [vmem:[#allocation7 + $0x1d8] sm:$0xff]   ;;  %v10351_v43 = vld [vmem:[#allocation7 + $0x1d0] sm:$0xff]  }
 0x3eb   : > { %9633 = vmatprep.subr.bf16.mxu0 %v12317_v32 }
 0x3ec   : > { %4548 = vst [vmem:[%s11913_s24] sm:$0xf] %v11911_v56  ;;  %9652 = vmatpush3.bf16.msra.mxu1 %v10316_v29 }
 0x3ed   : > { %9653 = vmatprep.subr.bf16.mxu1 %v12317_v32 }
 0x3ee   : > { %9634 = vmatpush3.bf16.msra.mxu0 %v10313_v23 }
 0x3ef   : > { %9635 = vmatprep.subr.bf16.mxu0 %v12317_v32 }
 0x3f0   : > { %9654 = vmatpush3.bf16.msra.mxu1 %v10318_v55  ;;  %v10357_v55 = vld [vmem:[#allocation3 + $0x10] ss:$0 sps:$4 sm:$0x77]  }
 0x3f1   : > { %9655 = vmatprep.subr.bf16.mxu1 %v12317_v32 }
 0x3f2   : > { %9636 = vmatpush3.bf16.msra.mxu0 %v10315_v8  ;;  %v10350_v8 = vld [vmem:[#allocation7 + $0x228] sm:$0xff]  }
 0x3f3   : > { %9637 = vmatprep.subr.bf16.mxu0 %v12317_v32 }
 0x3f4   : > { %9656 = vmatpush3.bf16.msra.mxu1 %v10320_v37  ;;  %v10354_v37 = vld [vmem:[#allocation7 + $0x218] sm:$0xff]  }
 0x3f5   : > { %9657 = vmatprep.subr.bf16.mxu1 %v12317_v32 }
 0x3f6   : > { %9638 = vmatpush3.bf16.msra.mxu0 %v10317_v34  ;;  %v10352_v34 = vld [vmem:[#allocation7 + $0x220] sm:$0xff]  }
 0x3f7   : > { %9639 = vmatprep.subr.bf16.mxu0 %v12317_v32 }
 0x3f8   : > { %9658 = vmatpush3.bf16.msra.mxu1 %v10322_v41  ;;  %v10355_v41 = vld [vmem:[#allocation7 + $0x1c0] sm:$0xff]  }
 0x3f9   : > { %9659 = vmatprep.subr.bf16.mxu1 %v12317_v32 }
 0x3fa   : > { %9640 = vmatpush3.bf16.msra.mxu0 %v10319_v7  ;;  %v10353_v7 = vld [vmem:[#allocation7 + $0x1c8] sm:$0xff]  }
 0x3fb   : > { %9641 = vmatprep.subr.bf16.mxu0 %v12317_v32 }
 0x3fc   : > { %9660 = vmatpush3.bf16.msra.mxu1 %v10323_v38 }
 0x3fd   : > { %9661 = vmatprep.subr.bf16.mxu1 %v12317_v32 }
 0x3fe   : > { %9642 = vmatpush3.bf16.msra.mxu0 %v10321_v15  ;;  %v6374_v15 = vshll.u32 %v10357_v55, 16 }
 0x3ff   : > { %9667 = vmatprep.subr.bf16.mxu0 %v12317_v32 }
 0x400   : > { %9662 = vmatpush3.bf16.msra.mxu1 %v10325_v60  ;;  %v6376_v38 = vrot.slane %v6374_v15, 1 }
 0x401   : > { %v4685_v47 = vpop.f32.mrf.mxu0  ;;  %9644 = vmatmul.mubr.bf16.vlgmr.msra.gmra.mxu0 %v5910_v21  ;;  %9687 = vmatprep.subr.bf16.mxu1 %v12317_v32  ;;  %v10359_v21 = vld [vmem:[#allocation7 + $0x78] sm:$0xff]  }
 0x402   : > { %9668 = vmatpush3.bf16.msra.mxu0 %v10324_v6  ;;  %9683 = vmatprep.mubr.msk.bf16.mxu0 %vm10635_vm9, %v12317_v32  ;;  %v6372_v6 = vshrl.u32 %v10357_v55, 16  ;;  %v10387_v55 = vld [vmem:[#allocation7 + $0xe0] sm:$0xff]  }
 0x403   : > { %v9405_v46 = vpop.f32.mrf.mxu0  ;;  %9669 = vmatprep.subr.bf16.mxu0 %v12317_v32  ;;  %v4773_v26 = vpop.f32.mrf.mxu1  ;;  %9664 = vmatmul.mubr.bf16.vlgmr.msra.gmra.mxu1 %v6042_v33 }
 0x404   : > { %v4774_v63 = vadd.f32 %v4773_v26, %v4685_v47  ;;  %9688 = vmatpush3.bf16.msra.mxu1 %v10329_v54  ;;  %9703 = vmatprep.mubr.msk.bf16.mxu1 %vm10635_vm9, %v12317_v32  ;;  %v6377_v47 = vor.u32 %v6376_v38, %v6372_v6  ;;  %v10361_v46 = vld [vmem:[#allocation7 + $0x70] sm:$0xff]   ;;  %v10364_v54 = vld [vmem:[#allocation7 + $0x38] sm:$0xff]  }
 0x405   : > { %v4688_v16 = vpop.f32.mrf.mxu0  ;;  %v9425_v13 = vpop.f32.mrf.mxu1  ;;  %9689 = vmatprep.subr.bf16.mxu1 %v12317_v32  ;;  %v10392_v38 = vld [vmem:[#allocation3 + $0xc] ss:$0 sps:$4 sm:$0x66]  }
 0x406   : > { %9670 = vmatpush3.bf16.msra.mxu0 %v10326_v48  ;;  %v10360_v48 = vld [vmem:[#allocation7 + $0x200] sm:$0xff]   ;;  %v10362_v16 = vld [vmem:[#allocation3 + $0x10] ss:$0 sps:$4 sm:$0x66]  }
 0x407   : > { %v9406_v25 = vpop.f32.mrf.mxu0  ;;  %9671 = vmatprep.subr.bf16.mxu0 %v12317_v32  ;;  %v4776_v58 = vpop.f32.mrf.mxu1  ;;  %v6488_v33 = vrot.slane %v10362_v16, 1 }
 0x408   : > { %9690 = vmatpush3.bf16.msra.mxu1 %v10331_v40  ;;  %v10367_v58 = vld [vmem:[#allocation7 + $0x58] sm:$0xff]  }
 0x409   : > { %v9426_v4 = vpop.f32.mrf.mxu1  ;;  %9691 = vmatprep.subr.bf16.mxu1 %v12317_v32 }
 0x40a   : > { %9672 = vmatpush3.bf16.msra.mxu0 %v10328_v59  ;;  %v10363_v59 = vld [vmem:[#allocation7 + $0x68] sm:$0xff]   ;;  %v10369_v4 = vld [vmem:[#allocation7 + $0x50] sm:$0xff]  }
 0x40b   : > { %9673 = vmatprep.subr.bf16.mxu0 %v12317_v32 }
 0x40c   : > { %9692 = vmatpush3.bf16.msra.mxu1 %v10333_v42 }
 0x40d   : > { %9693 = vmatprep.subr.bf16.mxu1 %v12317_v32 }
 0x40e   : > { %9674 = vmatpush3.bf16.msra.mxu0 %v10330_v19  ;;  %v10366_v19 = vld [vmem:[#allocation7 + $0x30] sm:$0xff]  }
 0x40f   : > { %9675 = vmatprep.subr.bf16.mxu0 %v12317_v32 }
 0x410   : > { %9694 = vmatpush3.bf16.msra.mxu1 %v10335_v24  ;;  %v10375_v24 = vld [vmem:[#allocation3 + $0xc] ss:$0 sps:$4 sm:$0x77]  }
 0x411   : > { %9695 = vmatprep.subr.bf16.mxu1 %v12317_v32 }
 0x412   : > { %9676 = vmatpush3.bf16.msra.mxu0 %v10332_v51  ;;  %v10368_v51 = vld [vmem:[#allocation7 + $0x28] sm:$0xff]  }
 0x413   : > { %9677 = vmatprep.subr.bf16.mxu0 %v12317_v32 }
 0x414   : > { %9696 = vmatpush3.bf16.msra.mxu1 %v10337_v49  ;;  %v10372_v49 = vld [vmem:[#allocation7 + $0x18] sm:$0xff]  }
 0x415   : > { %9697 = vmatprep.subr.bf16.mxu1 %v12317_v32 }
 0x416   : > { %9678 = vmatpush3.bf16.msra.mxu0 %v10334_v61  ;;  %v10370_v61 = vld [vmem:[#allocation7 + $0x20] sm:$0xff]  }
 0x417   : > { %9679 = vmatprep.subr.bf16.mxu0 %v12317_v32 }
 0x418   : > { %9698 = vmatpush3.bf16.msra.mxu1 %v10339_v10  ;;  %v10373_v10 = vld [vmem:[#allocation7 + $0x40] sm:$0xff]  }
 0x419   : > { %9699 = vmatprep.subr.bf16.mxu1 %v12317_v32 }
 0x41a   : > { %9680 = vmatpush3.bf16.msra.mxu0 %v10336_v28  ;;  %v10371_v28 = vld [vmem:[#allocation7 + $0x48] sm:$0xff]  }
 0x41b   : > { %9681 = vmatprep.subr.bf16.mxu0 %v12317_v32 }
 0x41c   : > { %9700 = vmatpush3.bf16.msra.mxu1 %v10341_v52 }
 0x41d   : > { %9701 = vmatprep.subr.bf16.mxu1 %v12317_v32 }
 0x41e   : > { %9682 = vmatpush3.bf16.msra.mxu0 %v10338_v44  ;;  %v6638_v44 = vshll.u32 %v10375_v24, 16 }
 0x41f   : > { %9707 = vmatprep.subr.bf16.mxu0 %v12317_v32 }
 0x420   : > { %9702 = vmatpush3.bf16.msra.mxu1 %v10343_v9  ;;  %v6640_v52 = vrot.slane %v6638_v44, 1 }
 0x421   : > { %v4883_v14 = vpop.f32.mrf.mxu0  ;;  %9684 = vmatmul.mubr.bf16.vlgmr.msra.gmra.mxu0 %v6153_v27  ;;  %9727 = vmatprep.subr.bf16.mxu1 %v12317_v32  ;;  %v10376_v27 = vld [vmem:[#allocation7 + $0x8] sm:$0xff]  }
 0x422   : > { %v4889_v22 = vadd.f32 %v4883_v14, %v4774_v63  ;;  %9708 = vmatpush3.bf16.msra.mxu0 %v10342_v2  ;;  %9723 = vmatprep.mubr.msk.bf16.mxu0 %vm10635_vm9, %v12317_v32  ;;  %v10365_v63 = vld [vmem:[#allocation7 + $0x60] sm:$0xff]   ;;  %v6636_v2 = vshrl.u32 %v10375_v24, 16  ;;  %v10377_v14 = vld [vmem:[#allocation7 + $0xb8] sm:$0xff]  }
 0x423   : > { %v9445_v17 = vpop.f32.mrf.mxu0  ;;  %9709 = vmatprep.subr.bf16.mxu0 %v12317_v32  ;;  %v4989_v11 = vpop.f32.mrf.mxu1  ;;  %9704 = vmatmul.mubr.bf16.vlgmr.msra.gmra.mxu1 %v6245_v57 }
 0x424   : > { %v11951_v23 = vadd.f32 %v4989_v11, %v4889_v22  ;;  %9728 = vmatpush3.bf16.msra.mxu1 %v10346_v62  ;;  %9743 = vmatprep.mubr.msk.bf16.mxu1 %vm10635_vm9, %v12317_v32  ;;  %v6641_v22 = vor.u32 %v6640_v52, %v6636_v2  ;;  %v10379_v17 = vld [vmem:[#allocation7 + $0xb0] sm:$0xff]   ;;  %v10380_v62 = vld [vmem:[#allocation7 + $0xa8] sm:$0xff]  }
 0x425   : > { %v4886_v39 = vpop.f32.mrf.mxu0  ;;  %v9465_v0 = vpop.f32.mrf.mxu1  ;;  %9729 = vmatprep.subr.bf16.mxu1 %v12317_v32  ;;  %v6598_v11 = vld [vmem:[#allocation3 + $0xc] sm:$0x3]  ;;  %v10402_v52 = vld [vmem:[#allocation7 + $0x168] sm:$0xff]  }
 0x426   : > { %9710 = vmatpush3.bf16.msra.mxu0 %v10344_v20  ;;  %v10378_v20 = vld [vmem:[#allocation7] sm:$0xff]   ;;  %v10383_v0 = vld [vmem:[#allocation7 + $0xf0] sm:$0xff]  }
 0x427   : > { %v9446_v35 = vpop.f32.mrf.mxu0  ;;  %9711 = vmatprep.subr.bf16.mxu0 %v12317_v32  ;;  %v4992_v1 = vpop.f32.mrf.mxu1 }
 0x428   : > { %9730 = vmatpush3.bf16.msra.mxu1 %v10348_v12  ;;  %v10381_v35 = vld [vmem:[#allocation7 + $0xf8] sm:$0xff]   ;;  %v10382_v12 = vld [vmem:[#allocation7 + $0xa0] sm:$0xff]  }
 0x429   : > { %v9466_v29 = vpop.f32.mrf.mxu1  ;;  %9731 = vmatprep.subr.bf16.mxu1 %v12317_v32 }
 0x42a   : > { %9712 = vmatpush3.bf16.msra.mxu0 %v10345_v31  ;;  %v10385_v29 = vld [vmem:[#allocation7 + $0xe8] sm:$0xff]  }
 0x42b   : > { %9713 = vmatprep.subr.bf16.mxu0 %v12317_v32 }
 0x42c   : > { %9732 = vmatpush3.bf16.msra.mxu1 %v10350_v8  ;;  %v10384_v8 = vld [vmem:[#allocation7 + $0x98] sm:$0xff]  }
 0x42d   : > { %9733 = vmatprep.subr.bf16.mxu1 %v12317_v32 }
 0x42e   : > { %9714 = vmatpush3.bf16.msra.mxu0 %v10347_v45 }
 0x42f   : > { %9715 = vmatprep.subr.bf16.mxu0 %v12317_v32 }
 0x430   : > { %9734 = vmatpush3.bf16.msra.mxu1 %v10352_v34  ;;  %v10386_v34 = vld [vmem:[#allocation7 + $0x90] sm:$0xff]  }
 0x431   : > { %9735 = vmatprep.subr.bf16.mxu1 %v12317_v32 }
 0x432   : > { %9716 = vmatpush3.bf16.msra.mxu0 %v10349_v18 }
 0x433   : > { %9717 = vmatprep.subr.bf16.mxu0 %v12317_v32 }
 0x434   : > { %9736 = vmatpush3.bf16.msra.mxu1 %v10354_v37  ;;  %v10389_v37 = vld [vmem:[#allocation7 + $0xd8] sm:$0xff]  }
 0x435   : > { %9737 = vmatprep.subr.bf16.mxu1 %v12317_v32 }
 0x436   : > { %9718 = vmatpush3.bf16.msra.mxu0 %v10351_v43 }
 0x437   : > { %9719 = vmatprep.subr.bf16.mxu0 %v12317_v32 }
 0x438   : > { %9738 = vmatpush3.bf16.msra.mxu1 %v10356_v5  ;;  %v10391_v5 = vld [vmem:[#allocation7 + $0xd0] sm:$0xff]  }
 0x439   : > { %9739 = vmatprep.subr.bf16.mxu1 %v12317_v32 }
 0x43a   : > { %9720 = vmatpush3.bf16.msra.mxu0 %v10353_v7  ;;  %v10388_v7 = vld [vmem:[#allocation7 + $0x88] sm:$0xff]  }
 0x43b   : > { %9721 = vmatprep.subr.bf16.mxu0 %v12317_v32 }
 0x43c   : > { %9740 = vmatpush3.bf16.msra.mxu1 %v10358_v53  ;;  %v4550_v53 = vsel %vm4549_vm13, %v11911_v56, 0.0 }
 0x43d   : > { %9741 = vmatprep.subr.bf16.mxu1 %v12317_v32 }
 0x43e   : > { %9722 = vmatpush3.bf16.msra.mxu0 %v10355_v41  ;;  %v10390_v41 = vld [vmem:[#allocation7 + $0x80] sm:$0xff]  }
 0x43f   : > { %9747 = vmatprep.subr.bf16.mxu0 %v12317_v32 }
 0x440   : > { %9742 = vmatpush3.bf16.msra.mxu1 %v10360_v48 }
 0x441   : > { %v11967_v60 = vpop.f32.mrf.mxu0  ;;  %9724 = vmatmul.mubr.bf16.vlgmr.msra.gmra.mxu0 %v6377_v47  ;;  %9767 = vmatprep.subr.bf16.mxu1 %v12317_v32  ;;  %v10393_v47 = vld [vmem:[#allocation7 + $0xc8] sm:$0xff]  }
 0x442   : > { %9748 = vmatpush3.bf16.msra.mxu0 %v10359_v21  ;;  %9763 = vmatprep.mubr.msk.bf16.mxu0 %vm10635_vm9, %v12317_v32  ;;  %v5112_v15 = vadd.f32 %v11967_v60, %v11951_v23  ;;  %v10394_v23 = vld [vmem:[#allocation7 + $0x138] sm:$0xff]   ;;  %v6839_v60 = vrot.slane %v10392_v38, 1  ;;  %v10415_v38 = vld [vmem:[#allocation7 + $0x1a8] sm:$0xff]  }
 0x443   : > { %v9485_v50 = vpop.f32.mrf.mxu0  ;;  %9749 = vmatprep.subr.bf16.mxu0 %v12317_v32  ;;  %v11975_v26 = vpop.f32.mrf.mxu1  ;;  %9744 = vmatmul.mubr.bf16.vlgmr.msra.gmra.mxu1 %v6488_v33 }
 0x444   : > { %9768 = vmatpush3.bf16.msra.mxu1 %v10364_v54  ;;  %9783 = vmatprep.mubr.msk.bf16.mxu1 %vm10635_vm9, %v12317_v32  ;;  %v5223_v6 = vadd.f32 %v11975_v26, %v5112_v15 }
 0x445   : > { %v5109_v30 = vpop.f32.mrf.mxu0  ;;  %v9505_v40 = vpop.f32.mrf.mxu1  ;;  %9769 = vmatprep.subr.bf16.mxu1 %v12317_v32 }
 0x446   : > { %9750 = vmatpush3.bf16.msra.mxu0 %v10361_v46  ;;  %v4551_v46 = vrot.slane %v4550_v53, 4  ;;  %v10395_v30 = vld [vmem:[#allocation7 + $0xc0] sm:$0xff]  }
 0x447   : > { %v9486_v25 = vpop.f32.mrf.mxu0  ;;  %9751 = vmatprep.subr.bf16.mxu0 %v12317_v32  ;;  %v5220_v13 = vpop.f32.mrf.mxu1 }
 0x448   : > { %9770 = vmatpush3.bf16.msra.mxu1 %v10366_v19  ;;  %v4552_v25 = vadd.f32 %v4551_v46, %v4550_v53  ;;  %v10398_v19 = vld [vmem:[#allocation7 + $0x178] sm:$0xff]  }
 0x449   : > { %v9506_v42 = vpop.f32.mrf.mxu1  ;;  %9771 = vmatprep.subr.bf16.mxu1 %v12317_v32 }
 0x44a   : > { %9752 = vmatpush3.bf16.msra.mxu0 %v10363_v59  ;;  %v10396_v59 = vld [vmem:[#allocation7 + $0x130] sm:$0xff]  }
 0x44b   : > { %9753 = vmatprep.subr.bf16.mxu0 %v12317_v32 }
 0x44c   : > { %9772 = vmatpush3.bf16.msra.mxu1 %v10368_v51  ;;  %v4553_v51 = vrot.slane %v4552_v25, 2 }
 0x44d   : > { %9773 = vmatprep.subr.bf16.mxu1 %v12317_v32 }
 0x44e   : > { %9754 = vmatpush3.bf16.msra.mxu0 %v10365_v63  ;;  %v10397_v63 = vld [vmem:[#allocation7 + $0x128] sm:$0xff]  }
 0x44f   : > { %9755 = vmatprep.subr.bf16.mxu0 %v12317_v32 }
 0x450   : > { %9774 = vmatpush3.bf16.msra.mxu1 %v10370_v61  ;;  %v10400_v61 = vld [vmem:[#allocation7 + $0x170] sm:$0xff]  }
 0x451   : > { %9775 = vmatprep.subr.bf16.mxu1 %v12317_v32 }
 0x452   : > { %9756 = vmatpush3.bf16.msra.mxu0 %v10367_v58  ;;  %v6930_v58 = vld [vmem:[#allocation3 + $0x10] sm:$0x3] }
 0x453   : > { %9757 = vmatprep.subr.bf16.mxu0 %v12317_v32 }
 0x454   : > { %9776 = vmatpush3.bf16.msra.mxu1 %v10372_v49  ;;  %v4554_v49 = vadd.f32 %v4553_v51, %v4552_v25  ;;  %v10423_v25 = vld [vmem:[#allocation7 + $0x188] sm:$0xff]   ;;  %v10428_v51 = vld [vmem:[#allocation7 + $0x238] sm:$0xff]  }
 0x455   : > { %9777 = vmatprep.subr.bf16.mxu1 %v12317_v32 }
 0x456   : > { %9758 = vmatpush3.bf16.msra.mxu0 %v10369_v4  ;;  %v10399_v4 = vld [vmem:[#allocation7 + $0x120] sm:$0xff]  }
 0x457   : > { %9759 = vmatprep.subr.bf16.mxu0 %v12317_v32 }
 0x458   : > { %9778 = vmatpush3.bf16.msra.mxu1 %v10374_v3  ;;  %v10401_v3 = vld [vmem:[#allocation7 + $0x118] sm:$0xff]  }
 0x459   : > { %9779 = vmatprep.subr.bf16.mxu1 %v12317_v32 }
 0x45a   : > { %9760 = vmatpush3.bf16.msra.mxu0 %v10371_v28 }
 0x45b   : > { %9761 = vmatprep.subr.bf16.mxu0 %v12317_v32 }
 0x45c   : > { %9780 = vmatpush3.bf16.msra.mxu1 %v10376_v27 }
 0x45d   : > { %9781 = vmatprep.subr.bf16.mxu1 %v12317_v32 }
 0x45e   : > { %9762 = vmatpush3.bf16.msra.mxu0 %v10373_v10 }
 0x45f   : > { %9787 = vmatprep.subr.bf16.mxu0 %v12317_v32 }
 0x460   : > { %9782 = vmatpush3.bf16.msra.mxu1 %v10378_v20  ;;  %v10404_v20 = vld [vmem:[#allocation7 + $0x160] sm:$0xff]  }
 0x461   : > { %v5324_v9 = vpop.f32.mrf.mxu0  ;;  %9764 = vmatmul.mubr.bf16.vlgmr.msra.gmra.mxu0 %v6641_v22  ;;  %9807 = vmatprep.subr.bf16.mxu1 %v12317_v32 }
 0x462   : > { %9788 = vmatpush3.bf16.msra.mxu0 %v10377_v14  ;;  %9803 = vmatprep.mubr.msk.bf16.mxu0 %vm10635_vm9, %v12317_v32  ;;  %v5330_v21 = vadd.f32 %v5324_v9, %v5223_v6  ;;  %v4555_v14 = vrot.slane %v4554_v49, 1  ;;  %v10403_v9 = vld [vmem:[#allocation7 + $0x110] sm:$0xff]   ;;  %v10416_v6 = vld [vmem:[#allocation7 + $0x1f8] sm:$0xff]  }
 0x463   : > { %v9525_v39 = vpop.f32.mrf.mxu0  ;;  %9789 = vmatprep.subr.bf16.mxu0 %v12317_v32  ;;  %v5441_v45 = vpop.f32.mrf.mxu1  ;;  %9784 = vmatmul.mubr.bf16.vlgmr.msra.gmra.mxu1 %v6598_v11 }
 0x464   : > { %9808 = vmatpush3.bf16.msra.mxu1 %v10381_v35  ;;  %9823 = vmatprep.mubr.msk.bf16.mxu1 %vm10635_vm9, %v12317_v32  ;;  %v5447_v48 = vadd.f32 %v5441_v45, %v5330_v21  ;;  %v10409_v39 = vld [vmem:[#allocation3 + $0x10] ss:$0 sps:$4 sm:$0x77]   ;;  %v10405_v35 = vld [vmem:[#allocation7 + $0x108] sm:$0xff]  }
 0x465   : > { %v5327_v31 = vpop.f32.mrf.mxu0  ;;  %v9545_v1 = vpop.f32.mrf.mxu1  ;;  %9809 = vmatprep.subr.bf16.mxu1 %v12317_v32  ;;  %v7059_v45 = vshll.u32 %v10409_v39, 16 }
 0x466   : > { %9790 = vmatpush3.bf16.msra.mxu0 %v10379_v17  ;;  %v4556_v31 = vadd.f32 %v4555_v14, %v4554_v49 }
 0x467   : > { %v9526_v57 = vpop.f32.mrf.mxu0  ;;  %9791 = vmatprep.subr.bf16.mxu0 %v12317_v32  ;;  %v5444_v18 = vpop.f32.mrf.mxu1  ;;  %v7061_v1 = vrot.slane %v7059_v45, 1 }
 0x468   : > { %9810 = vmatpush3.bf16.msra.mxu1 %v10383_v0  ;;  %v10406_v57 = vld [vmem:[#allocation7 + $0x158] sm:$0xff]   ;;  %v10408_v0 = vld [vmem:[#allocation7 + $0x150] sm:$0xff]   ;;  %v7057_v18 = vshrl.u32 %v10409_v39, 16 }
 0x469   : > { %v9546_v43 = vpop.f32.mrf.mxu1  ;;  %9811 = vmatprep.subr.bf16.mxu1 %v12317_v32  ;;  %v10438_v39 = vld [vmem:[#allocation3 + $0x14] ss:$0 sps:$4 sm:$0x66]  }
 0x46a   : > { %9792 = vmatpush3.bf16.msra.mxu0 %v10380_v62  ;;  %v7062_v43 = vor.u32 %v7061_v1, %v7057_v18 }
 0x46b   : > { %9793 = vmatprep.subr.bf16.mxu0 %v12317_v32 }
 0x46c   : > { %9812 = vmatpush3.bf16.msra.mxu1 %v10385_v29  ;;  %v10411_v29 = vld [vmem:[#allocation7 + $0x1b8] sm:$0xff]  }
 0x46d   : > { %9813 = vmatprep.subr.bf16.mxu1 %v12317_v32 }
 0x46e   : > { %9794 = vmatpush3.bf16.msra.mxu0 %v10382_v12  ;;  %v10407_v12 = vld [vmem:[#allocation7 + $0x100] sm:$0xff]  }
 0x46f   : > { %9795 = vmatprep.subr.bf16.mxu0 %v12317_v32 }
 0x470   : > { %9814 = vmatpush3.bf16.msra.mxu1 %v10387_v55 }
 0x471   : > { %9815 = vmatprep.subr.bf16.mxu1 %v12317_v32 }
 0x472   : > { %9796 = vmatpush3.bf16.msra.mxu0 %v10384_v8  ;;  %v10410_v8 = vld [vmem:[#allocation7 + $0x148] sm:$0xff]  }
 0x473   : > { %9797 = vmatprep.subr.bf16.mxu0 %v12317_v32 }
 0x474   : > { %9816 = vmatpush3.bf16.msra.mxu1 %v10389_v37  ;;  %v10413_v37 = vld [vmem:[#allocation7 + $0x1b0] sm:$0xff]  }
 0x475   : > { %9817 = vmatprep.subr.bf16.mxu1 %v12317_v32 }
 0x476   : > { %9798 = vmatpush3.bf16.msra.mxu0 %v10386_v34 }
 0x477   : > { %9799 = vmatprep.subr.bf16.mxu0 %v12317_v32 }
 0x478   : > { %9818 = vmatpush3.bf16.msra.mxu1 %v10391_v5 }
 0x479   : > { %9819 = vmatprep.subr.bf16.mxu1 %v12317_v32 }
 0x47a   : > { %9800 = vmatpush3.bf16.msra.mxu0 %v10388_v7  ;;  %v10412_v7 = vld [vmem:[#allocation7 + $0x140] sm:$0xff]  }
 0x47b   : > { %9801 = vmatprep.subr.bf16.mxu0 %v12317_v32 }
 0x47c   : > { %9820 = vmatpush3.bf16.msra.mxu1 %v10393_v47 }
 0x47d   : > { %9821 = vmatprep.subr.bf16.mxu1 %v12317_v32 }
 0x47e   : > { %9802 = vmatpush3.bf16.msra.mxu0 %v10390_v41  ;;  %v10414_v41 = vld [vmem:[#allocation3 + $0x10] ss:$0 sps:$4 sm:$0x66]  }
 0x47f   : > { %9827 = vmatprep.subr.bf16.mxu0 %v12317_v32  ;;  %v7173_v21 = vrot.slane %v10414_v41, 1 }
 0x480   : > { %9822 = vmatpush3.bf16.msra.mxu1 %v10395_v30  ;;  %v10420_v30 = vld [vmem:[#allocation7 + $0x1e8] sm:$0xff]  }
 0x481   : > { %v5552_v50 = vpop.f32.mrf.mxu0  ;;  %9804 = vmatmul.mubr.bf16.vlgmr.msra.gmra.mxu0 %v6839_v60  ;;  %9847 = vmatprep.subr.bf16.mxu1 %v12317_v32  ;;  %v10417_v60 = vld [vmem:[#allocation7 + $0x1a0] sm:$0xff]  }
 0x482   : > { %v5558_v16 = vadd.f32 %v5552_v50, %v5447_v48  ;;  %9828 = vmatpush3.bf16.msra.mxu0 %v10394_v23  ;;  %9843 = vmatprep.mubr.msk.bf16.mxu0 %vm10635_vm9, %v12317_v32  ;;  %v10418_v48 = vld [vmem:[#allocation7 + $0x1f0] sm:$0xff]  }
 0x483   : > { %v9565_v56 = vpop.f32.mrf.mxu0  ;;  %9829 = vmatprep.subr.bf16.mxu0 %v12317_v32  ;;  %9824 = vmatmul.mubr.bf16.vlgmr.msra.gmra.mxu1 %v6930_v58  ;;  %v10427_v58 = vld [vmem:[#allocation7 + $0x1c8] sm:$0xff]  }
 0x484   : > { %v5566_v54 = vadd.f32 %v11901_v36, %v5558_v16  ;;  %v5705_v36 = vpop.f32.mrf.mxu1  ;;  %9848 = vmatpush3.bf16.msra.mxu1 %v10398_v19  ;;  %9863 = vmatprep.mubr.msk.bf16.mxu1 %vm10635_vm9, %v12317_v32  ;;  %v10419_v16 = vld [vmem:[#allocation7 + $0x198] sm:$0xff]   ;;  %v10421_v56 = vld [vmem:[#allocation7 + $0x190] sm:$0xff]  }
 0x485   : > { %v5555_v33 = vpop.f32.mrf.mxu0  ;;  %9849 = vmatprep.subr.bf16.mxu1 %v12317_v32  ;;  %v10426_v19 = vld [vmem:[#allocation7 + $0x1d0] sm:$0xff]  }
 0x486   : > { %v5567_v26 = vmul.f32 0.1, %v5566_v54  ;;  %9830 = vmatpush3.bf16.msra.mxu0 %v10396_v59  ;;  %v9585_v28 = vpop.f32.mrf.mxu1  ;;  %v10424_v33 = vld [vmem:[#allocation7 + $0x1d8] sm:$0xff]  }
 0x487   : > { %v9566_v40 = vpop.f32.mrf.mxu0  ;;  %9831 = vmatprep.subr.bf16.mxu0 %v12317_v32 }
 0x488   : > { %v5568_v13 = vmax.f32 %v5566_v54, %v5567_v26  ;;  %v5708_v10 = vpop.f32.mrf.mxu1  ;;  %9850 = vmatpush3.bf16.msra.mxu1 %v10400_v61  ;;  %v10422_v54 = vld [vmem:[#allocation7 + $0x1e0] sm:$0xff]   ;;  %v10431_v26 = vld [vmem:[#allocation3 + $0x14] ss:$0 sps:$4 sm:$0x77]  }
 0x489   : > { %9851 = vmatprep.subr.bf16.mxu1 %v12317_v32  ;;  %v7394_v40 = vshll.u32 %v10431_v26, 16  ;;  %v10429_v61 = vld [vmem:[#allocation7 + $0x1c0] sm:$0xff]   ;;  %v10432_v10 = vld [vmem:[#allocation7 + $0x228] sm:$0xff]  }
 0x48a   : > { %5569 = vst [vmem:[%s11913_s24 + $0x4] sm:$0xf] %v5568_v13  ;;  %v5570_v42 = vsel %vm4549_vm13, %v5568_v13, 0.0  ;;  %9832 = vmatpush3.bf16.msra.mxu0 %v10397_v63  ;;  %v9586_v27 = vpop.f32.mrf.mxu1  ;;  %v10425_v63 = vld [vmem:[#allocation7 + $0x180] sm:$0xff]   ;;  %v7265_v13 = vld [vmem:[#allocation3 + $0x14] sm:$0x3] }
 0x48b   : > { %v5571_v24 = vrot.slane %v5570_v42, 4  ;;  %9833 = vmatprep.subr.bf16.mxu0 %v12317_v32 }
 0x48c   : > { %9852 = vmatpush3.bf16.msra.mxu1 %v10402_v52 }
 0x48d   : > { %v5572_v44 = vadd.f32 %v5571_v24, %v5570_v42  ;;  %9853 = vmatprep.subr.bf16.mxu1 %v12317_v32  ;;  %v7392_v42 = vshrl.u32 %v10431_v26, 16  ;;  %v10430_v24 = vld [vmem:[#allocation7 + $0x230] sm:$0xff]  }
 0x48e   : > { %9834 = vmatpush3.bf16.msra.mxu0 %v10399_v4  ;;  %v7396_v4 = vrot.slane %v7394_v40, 1 }
 0x48f   : > { %v5573_v2 = vrot.slane %v5572_v44, 2  ;;  %9835 = vmatprep.subr.bf16.mxu0 %v12317_v32 }
 0x490   : > { %9854 = vmatpush3.bf16.msra.mxu1 %v10404_v20  ;;  %v10435_v20 = vld [vmem:[#allocation7 + $0x210] sm:$0xff]  }
 0x491   : > { %v5574_v22 = vadd.f32 %v5573_v2, %v5572_v44  ;;  %9855 = vmatprep.subr.bf16.mxu1 %v12317_v32  ;;  %v7397_v44 = vor.u32 %v7396_v4, %v7392_v42  ;;  %v10433_v2 = vld [vmem:[#allocation7 + $0x220] sm:$0xff]  }
 0x492   : > { %9836 = vmatpush3.bf16.msra.mxu0 %v10401_v3 }
 0x493   : > { %v5575_v17 = vrot.slane %v5574_v22, 1  ;;  %9837 = vmatprep.subr.bf16.mxu0 %v12317_v32 }
 0x494   : > { %9856 = vmatpush3.bf16.msra.mxu1 %v10406_v57 }
 0x495   : > { %v5576_v62 = vadd.f32 %v5575_v17, %v5574_v22  ;;  %9857 = vmatprep.subr.bf16.mxu1 %v12317_v32  ;;  %v10434_v22 = vld [vmem:[#allocation7 + $0x218] sm:$0xff]   ;;  %v10436_v17 = vld [vmem:[#allocation7 + $0x208] sm:$0xff]  }
 0x496   : > { %9838 = vmatpush3.bf16.msra.mxu0 %v10403_v9 }
 0x497   : > { %v12033_v11 = vadd.f32 %v5576_v62, %v4556_v31  ;;  %9839 = vmatprep.subr.bf16.mxu0 %v12317_v32  ;;  %v10437_v31 = vld [vmem:[#allocation7 + $0x200] sm:$0xff]   ;;  %v7508_v62 = vrot.slane %v10438_v39, 1 }
 0x498   : > { %9858 = vmatpush3.bf16.msra.mxu1 %v10408_v0 }
 0x499   : > { %9859 = vmatprep.subr.bf16.mxu1 %v12317_v32 }
 0x49a   : > { %9840 = vmatpush3.bf16.msra.mxu0 %v10405_v35 }
 0x49b   : > { %9841 = vmatprep.subr.bf16.mxu0 %v12317_v32 }
 0x49c   : > { %9860 = vmatpush3.bf16.msra.mxu1 %v10410_v8 }
 0x49d   : > { %9861 = vmatprep.subr.bf16.mxu1 %v12317_v32 }
 0x49e   : > { %9842 = vmatpush3.bf16.msra.mxu0 %v10407_v12 }
 0x49f   : > { %9867 = vmatprep.subr.bf16.mxu0 %v12317_v32 }
 0x4a0   : > { %9862 = vmatpush3.bf16.msra.mxu1 %v10412_v7 }
 0x4a1   : > { %v5793_v34 = vpop.f32.mrf.mxu0  ;;  %9844 = vmatmul.mubr.bf16.vlgmr.msra.gmra.mxu0 %v7062_v43  ;;  %9887 = vmatprep.subr.bf16.mxu1 %v12317_v32 }
 0x4a2   : > { %v5794_v55 = vadd.f32 %v5793_v34, %v5705_v36  ;;  %9868 = vmatpush3.bf16.msra.mxu0 %v10411_v29  ;;  %9883 = vmatprep.mubr.msk.bf16.mxu0 %vm10635_vm9, %v12317_v32 }
 0x4a3   : > { %v9605_v15 = vpop.f32.mrf.mxu0  ;;  %9869 = vmatprep.subr.bf16.mxu0 %v12317_v32  ;;  %v5903_v47 = vpop.f32.mrf.mxu1  ;;  %9864 = vmatmul.mubr.bf16.vlgmr.msra.gmra.mxu1 %v7173_v21 }
 0x4a4   : > { %v12047_v23 = vadd.f32 %v5903_v47, %v5794_v55  ;;  %9888 = vmatpush3.bf16.msra.mxu1 %v10416_v6  ;;  %9903 = vmatprep.mubr.msk.bf16.mxu1 %vm10635_vm9, %v12317_v32  ;;  %v12080_v6 = vld [vmem:[%s12243_s6] ss:$0 sm:$0xff] }
 0x4a5   : > { %v5796_v5 = vpop.f32.mrf.mxu0  ;;  %v9625_v46 = vpop.f32.mrf.mxu1  ;;  %9889 = vmatprep.subr.bf16.mxu1 %v12317_v32 }
 0x4a6   : > { %9870 = vmatpush3.bf16.msra.mxu0 %v10413_v37 }
 0x4a7   : > { %v9606_v53 = vpop.f32.mrf.mxu0  ;;  %9871 = vmatprep.subr.bf16.mxu0 %v12317_v32  ;;  %v5906_v50 = vpop.f32.mrf.mxu1 }
 0x4a8   : > { %9890 = vmatpush3.bf16.msra.mxu1 %v10418_v48 }
 0x4a9   : > { %v9626_v59 = vpop.f32.mrf.mxu1  ;;  %9891 = vmatprep.subr.bf16.mxu1 %v12317_v32 }
 0x4aa   : > { %9872 = vmatpush3.bf16.msra.mxu0 %v10415_v38 }
 0x4ab   : > { %9873 = vmatprep.subr.bf16.mxu0 %v12317_v32 }
 0x4ac   : > { %9892 = vmatpush3.bf16.msra.mxu1 %v10420_v30 }
 0x4ad   : > { %9893 = vmatprep.subr.bf16.mxu1 %v12317_v32 }
 0x4ae   : > { %9874 = vmatpush3.bf16.msra.mxu0 %v10417_v60  ;;  %v10439_v60 = vld [vmem:[%s12244_s7 + $0x38] sm:$0xff]  }
 0x4af   : > { %9875 = vmatprep.subr.bf16.mxu0 %v12317_v32 }
 0x4b0   : > { %9894 = vmatpush3.bf16.msra.mxu1 %v10422_v54 }
 0x4b1   : > { %9895 = vmatprep.subr.bf16.mxu1 %v12317_v32 }
 0x4b2   : > { %9876 = vmatpush3.bf16.msra.mxu0 %v10419_v16 }
 0x4b3   : > { %9877 = vmatprep.subr.bf16.mxu0 %v12317_v32 }
 0x4b4   : > { %9896 = vmatpush3.bf16.msra.mxu1 %v10424_v33 }
 0x4b5   : > { %9897 = vmatprep.subr.bf16.mxu1 %v12317_v32 }
 0x4b6   : > { %9878 = vmatpush3.bf16.msra.mxu0 %v10421_v56 }
 0x4b7   : > { %9879 = vmatprep.subr.bf16.mxu0 %v12317_v32 }
 0x4b8   : > { %9898 = vmatpush3.bf16.msra.mxu1 %v10426_v19 }
 0x4b9   : > { %9899 = vmatprep.subr.bf16.mxu1 %v12317_v32 }
 0x4ba   : > { %9880 = vmatpush3.bf16.msra.mxu0 %v10423_v25 }
 0x4bb   : > { %9881 = vmatprep.subr.bf16.mxu0 %v12317_v32 }
 0x4bc   : > { %9900 = vmatpush3.bf16.msra.mxu1 %v10427_v58 }
 0x4bd   : > { %9901 = vmatprep.subr.bf16.mxu1 %v12317_v32 }
 0x4be   : > { %9882 = vmatpush3.bf16.msra.mxu0 %v10425_v63 }
 0x4bf   : > { %9907 = vmatprep.subr.bf16.mxu0 %v12317_v32 }
 0x4c0   : > { %9902 = vmatpush3.bf16.msra.mxu1 %v10429_v61  ;;  %v10440_v61 = vld [vmem:[%s12244_s7 + $0x30] sm:$0xff]  }
 0x4c1   : > { %v6009_v36 = vpop.f32.mrf.mxu0  ;;  %9884 = vmatmul.mubr.bf16.vlgmr.msra.gmra.mxu0 %v7265_v13  ;;  %9927 = vmatprep.subr.bf16.mxu1 %v12317_v32 }
 0x4c2   : > { %9908 = vmatpush3.bf16.msra.mxu0 %v10428_v51  ;;  %9923 = vmatprep.mubr.msk.bf16.mxu0 %vm10635_vm9, %v12317_v32  ;;  %v6015_v29 = vadd.f32 %v6009_v36, %v12047_v23 }
 0x4c3   : > { %v9645_v28 = vpop.f32.mrf.mxu0  ;;  %9909 = vmatprep.subr.bf16.mxu0 %v12317_v32  ;;  %v6126_v52 = vpop.f32.mrf.mxu1  ;;  %9904 = vmatmul.mubr.bf16.vlgmr.msra.gmra.mxu1 %v7397_v44 }
 0x4c4   : > { %9943 = vmatprep.mubr.msk.bf16.mxu1 %vm10635_vm9, %v12317_v32  ;;  %v6132_v34 = vadd.f32 %v6126_v52, %v6015_v29  ;;  %9928 = vmatpush3.bf16.msra.mxu1 %v10439_v60  ;;  %v10444_v52 = vld [vmem:[%s12244_s7 + $0x10] sm:$0xff]  }
 0x4c5   : > { %v6012_v49 = vpop.f32.mrf.mxu0  ;;  %v9665_v27 = vpop.f32.mrf.mxu1  ;;  %9929 = vmatprep.subr.bf16.mxu1 %v12317_v32 }
 0x4c6   : > { %9910 = vmatpush3.bf16.msra.mxu0 %v10430_v24  ;;  %v10441_v24 = vld [vmem:[%s12244_s7 + $0x28] sm:$0xff]   ;;  %v10443_v49 = vld [vmem:[%s12244_s7 + $0x18] sm:$0xff]  }
 0x4c7   : > { %v9646_v3 = vpop.f32.mrf.mxu0  ;;  %9911 = vmatprep.subr.bf16.mxu0 %v12317_v32  ;;  %v6129_v14 = vpop.f32.mrf.mxu1 }
 0x4c8   : > { %9930 = vmatpush3.bf16.msra.mxu1 %v10440_v61  ;;  %v10445_v14 = vld [vmem:[%s12244_s7 + $0x8] sm:$0xff]  }
 0x4c9   : > { %v9666_v9 = vpop.f32.mrf.mxu1  ;;  %9931 = vmatprep.subr.bf16.mxu1 %v12317_v32 }
 0x4ca   : > { %9912 = vmatpush3.bf16.msra.mxu0 %v10432_v10 }
 0x4cb   : > { %9913 = vmatprep.subr.bf16.mxu0 %v12317_v32 }
 0x4cc   : > { %9932 = vmatpush3.bf16.msra.mxu1 %v10441_v24 }
 0x4cd   : > { %9933 = vmatprep.subr.bf16.mxu1 %v12317_v32 }
 0x4ce   : > { %9914 = vmatpush3.bf16.msra.mxu0 %v10433_v2 }
 0x4cf   : > { %9915 = vmatprep.subr.bf16.mxu0 %v12317_v32 }
 0x4d2   : > { %9916 = vmatpush3.bf16.msra.mxu0 %v10434_v22 }
 0x4d3   : > { %9917 = vmatprep.subr.bf16.mxu0 %v12317_v32 }
 0x4d6   : > { %9918 = vmatpush3.bf16.msra.mxu0 %v10435_v20 }
 0x4d7   : > { %9919 = vmatprep.subr.bf16.mxu0 %v12317_v32 }
 0x4da   : > { %9920 = vmatpush3.bf16.msra.mxu0 %v10436_v17  ;;  %v10446_v17 = vld [vmem:[%s12244_s7] sm:$0xff]  }
 0x4db   : > { %9921 = vmatprep.subr.bf16.mxu0 %v12317_v32 }
 0x4de   : > { %9922 = vmatpush3.bf16.msra.mxu0 %v10437_v31 }
 0x4e1   : > { %v6237_v35 = vpop.f32.mrf.mxu0  ;;  %9924 = vmatmul.mubr.bf16.vlgmr.msra.gmra.mxu0 %v7508_v62 }
 0x4e2   : > { %v6243_v7 = vadd.f32 %v6237_v35, %v6132_v34 }
 0x4e3   : > { %v9685_v57 = vpop.f32.mrf.mxu0  ;;  %v6344_v0 = vpop.f32.mrf.mxu1 }
 0x4e4   : > { %v6350_v15 = vadd.f32 %v6344_v0, %v6243_v7 }
 0x4e5   : > { %v6240_v45 = vpop.f32.mrf.mxu0  ;;  %v9705_v1 = vpop.f32.mrf.mxu1 }
 0x4e7   : > { %v9686_v12 = vpop.f32.mrf.mxu0  ;;  %v6347_v18 = vpop.f32.mrf.mxu1 }
 0x4e9   : > { %v9706_v8 = vpop.f32.mrf.mxu1 }
 0x501   : > { %v6461_v43 = vpop.f32.mrf.mxu0 }
 0x502   : > { %v6467_v5 = vadd.f32 %v6461_v43, %v6350_v15 }
 0x503   : > { %v9725_v55 = vpop.f32.mrf.mxu0  ;;  %v6572_v38 = vpop.f32.mrf.mxu1 }
 0x504   : > { %v6578_v53 = vadd.f32 %v6572_v38, %v6467_v5 }
 0x505   : > { %v6464_v37 = vpop.f32.mrf.mxu0  ;;  %v9745_v21 = vpop.f32.mrf.mxu1 }
 0x506   : > { %v6586_v47 = vadd.f32 %v12080_v6, %v6578_v53 }
 0x507   : > { %v9726_v41 = vpop.f32.mrf.mxu0  ;;  %v6575_v23 = vpop.f32.mrf.mxu1 }
 0x508   : > { %v6587_v48 = vmul.f32 0.1, %v6586_v47 }
 0x509   : > { %v9746_v46 = vpop.f32.mrf.mxu1 }
 0x50a   : > { %v6588_v50 = vmax.f32 %v6586_v47, %v6587_v48 }
 0x50c   : > { %6589 = vst [vmem:[%s11913_s24 + $0x8] sm:$0xf] %v6588_v50  ;;  %v6590_v16 = vsel %vm4549_vm13, %v6588_v50, 0.0 }
 0x50d   : > { %v6591_v30 = vrot.slane %v6590_v16, 4 }
 0x50f   : > { %v6592_v59 = vadd.f32 %v6591_v30, %v6590_v16 }
 0x511   : > { %v6593_v56 = vrot.slane %v6592_v59, 2 }
 0x513   : > { %v6594_v54 = vadd.f32 %v6593_v56, %v6592_v59 }
 0x515   : > { %v6595_v25 = vrot.slane %v6594_v54, 1 }
 0x517   : > { %v6596_v33 = vadd.f32 %v6595_v25, %v6594_v54 }
 0x519   : > { %v12090_v26 = vadd.f32 %v6596_v33, %v12033_v11  ;;  %v10442_v11 = vld [vmem:[%s12244_s7 + $0x20] sm:$0xff]  }
 0x51a   : > { %9934 = vmatpush3.bf16.msra.mxu1 %v10442_v11 }
 0x51b   : > { %9935 = vmatprep.subr.bf16.mxu1 %v12317_v32 }
 0x51e   : > { %9936 = vmatpush3.bf16.msra.mxu1 %v10443_v49 }
 0x51f   : > { %9937 = vmatprep.subr.bf16.mxu1 %v12317_v32 }
 0x521   : > { %v6725_v63 = vpop.f32.mrf.mxu0 }
 0x522   : > { %9938 = vmatpush3.bf16.msra.mxu1 %v10444_v52 }
 0x523   : > { %v9765_v19 = vpop.f32.mrf.mxu0  ;;  %v6813_v58 = vpop.f32.mrf.mxu1  ;;  %9939 = vmatprep.subr.bf16.mxu1 %v12317_v32 }
 0x524   : > { %v6814_v51 = vadd.f32 %v6813_v58, %v6725_v63 }
 0x525   : > { %v6728_v40 = vpop.f32.mrf.mxu0  ;;  %v9785_v36 = vpop.f32.mrf.mxu1 }
 0x526   : > { %9940 = vmatpush3.bf16.msra.mxu1 %v10445_v14 }
 0x527   : > { %v9766_v13 = vpop.f32.mrf.mxu0  ;;  %v6816_v42 = vpop.f32.mrf.mxu1  ;;  %9941 = vmatprep.subr.bf16.mxu1 %v12317_v32 }
 0x529   : > { %v9786_v4 = vpop.f32.mrf.mxu1 }
 0x52a   : > { %9942 = vmatpush3.bf16.msra.mxu1 %v10446_v17 }
 0x541   : > { %v6923_v28 = vpop.f32.mrf.mxu0 }
 0x542   : > { %v6929_v44 = vadd.f32 %v6923_v28, %v6814_v51 }
 0x543   : > { %v9805_v10 = vpop.f32.mrf.mxu0  ;;  %v7029_v27 = vpop.f32.mrf.mxu1 }
 0x544   : > { %v7035_v22 = vadd.f32 %v7029_v27, %v6929_v44 }
 0x545   : > { %v6926_v3 = vpop.f32.mrf.mxu0  ;;  %v9825_v9 = vpop.f32.mrf.mxu1 }
 0x547   : > { %v9806_v2 = vpop.f32.mrf.mxu0  ;;  %v7032_v20 = vpop.f32.mrf.mxu1 }
 0x549   : > { %v9826_v39 = vpop.f32.mrf.mxu1 }
 0x561   : > { %v7146_v31 = vpop.f32.mrf.mxu0 }
 0x562   : > { %v7152_v32 = vadd.f32 %v7146_v31, %v7035_v22 }
 0x563   : > { %v9845_v62 = vpop.f32.mrf.mxu0  ;;  %v7257_v45 = vpop.f32.mrf.mxu1 }
 0x564   : > { %v7263_v15 = vadd.f32 %v7257_v45, %v7152_v32 }
 0x565   : > { %v7149_v35 = vpop.f32.mrf.mxu0  ;;  %v9865_v12 = vpop.f32.mrf.mxu1 }
 0x567   : > { %v9846_v57 = vpop.f32.mrf.mxu0  ;;  %v7260_v0 = vpop.f32.mrf.mxu1 }
 0x569   : > { %v9866_v1 = vpop.f32.mrf.mxu1 }
 0x581   : > { %v7364_v18 = vpop.f32.mrf.mxu0 }
 0x582   : > { %v7370_v41 = vadd.f32 %v7364_v18, %v7263_v15 }
 0x583   : > { %v9885_v8 = vpop.f32.mrf.mxu0  ;;  %v7481_v34 = vpop.f32.mrf.mxu1 }
 0x584   : > { %v7487_v5 = vadd.f32 %v7481_v34, %v7370_v41 }
 0x585   : > { %v7367_v29 = vpop.f32.mrf.mxu0  ;;  %v9905_v55 = vpop.f32.mrf.mxu1 }
 0x587   : > { %v9886_v43 = vpop.f32.mrf.mxu0  ;;  %v7484_v7 = vpop.f32.mrf.mxu1 }
 0x589   : > { %v9906_v37 = vpop.f32.mrf.mxu1 }
 0x5a1   : > { %v7592_v38 = vpop.f32.mrf.mxu0 }
 0x5a2   : > { %v7598_v53 = vadd.f32 %v7592_v38, %v7487_v5 }
 0x5a3   : > { %v9925_v21 = vpop.f32.mrf.mxu0 }
 0x5a4   : > { %v7606_v47 = vadd.f32 %v12080_v6, %v7598_v53 }
 0x5a5   : > { %v7595_v23 = vpop.f32.mrf.mxu0 }
 0x5a6   : > { %v7607_v60 = vmul.f32 0.1, %v7606_v47 }
 0x5a7   : > { %v9926_v48 = vpop.f32.mrf.mxu0 }
 0x5a8   : > { %v7608_v46 = vmax.f32 %v7606_v47, %v7607_v60 }
 0x5aa   : > { %7609 = vst [vmem:[%s11913_s24 + $0xc] sm:$0xf] %v7608_v46  ;;  %v7610_v50 = vsel %vm4549_vm13, %v7608_v46, 0.0 }
 0x5ab   : > { %v7611_v16 = vrot.slane %v7610_v50, 4 }
 0x5ad   : > { %v7612_v30 = vadd.f32 %v7611_v16, %v7610_v50 }
 0x5af   : > { %v7613_v59 = vrot.slane %v7612_v30, 2 }
 0x5b1   : > { %v7614_v56 = vadd.f32 %v7613_v59, %v7612_v30 }
 0x5b3   : > { %v7615_v54 = vrot.slane %v7614_v56, 1 }
 0x5b5   : > { %v7616_v25 = vadd.f32 %v7615_v54, %v7614_v56 }
 0x5b7   : > { %v7617_v6 = vadd.f32 %v7616_v25, %v12090_v26 }
 0x5b9   : > { %v7618_v33 = vmul.f32 0.0625, %v7617_v6 }
 0x5bb   : > { %v7620_v63 = vpack.c.bf16 %v7618_v33, %v7618_v33  ;;  %7619 = vst [vmem:[%s418_s25] sm:$0x1] %v7618_v33 }
 0x5bd   : > { %9944 = vmatmul.mubr.bf16.vlgmr.msra.gmra.mxu1 %v7620_v63 }
 0x5be   : > { %10515 = shalt.err (!%p10512_p3)
}
 0x5bf   : > { %s10516_s25 = scalar_lea.hbm %s12131_s26, 16  ;;  %s10520_s1 = scalar_lea.hbm %s12247_s10, 32 }
 0x5c0   : > { %p10517_p2 = scmp.ne.s32.totalorder %s12131_s26, %s10516_s25  ;;  %p10521_p7 = scmp.lt.s32.totalorder %s12131_s26, %s12247_s10 }
 0x5c1   : > { %p10522_p6 = scmp.lt.s32.totalorder %s10520_s1, %s10516_s25 }
 0x5c2   : > { %p10518_p4 = pnand %p10517_p2, %p10741_p5 }
 0x5c3   : > { %p10523_p9 = por %p10522_p6, %p10521_p7 }
 0x5c4   : > { %p10519_p13 = pneg %p10518_p4 }
 0x5c6   : > { %p10524_p10 = pnand %p10523_p9, %p10519_p13 }
 0x5c8   : > { %10527 = shalt.err (!%p10524_p10)
}
 0x5c9   : > { %9956 = dma.vmem_to_hbm [thread:$0]  (%p10741_p5), %s7763_s13, 16, %s12131_s26, %s12134_s15  }
 0x5ca   : > { %s8495_s0 = sshll.u32 %s10722_s21, 8  ;;  %s10528_s25 = scalar_lea.vmem %s12155_s12, 256 }
 0x5cb   : > { %s12161_s14 = scalar_lea.hbm %s12248_s11, %s8495_s0  ;;  %p10529_p12 = scmp.ne.s32.totalorder %s12155_s12, %s10528_s25 }
 0x5cc   : > { %s10637_s30 = smov [#allocation12]  }
 0x5cd   : > { %p10530_p8 = pnand %p10529_p12, %p10741_p5  ;;  %s10532_s16 = sshll.u32 %s10637_s30, 4  ;;  %s10533_s16 = int_to_ptr.vmem [resolvable:$false] %s10532_s16 }
 0x5ce   : > { %s10534_s24 = scalar_lea.vmem %s10533_s16, 512  ;;  %p10535_p0 = scmp.lt.s32.totalorder %s12155_s12, %s10533_s16 }
 0x5cf   : > { %p10531_p11 = pneg %p10530_p8  ;;  %p10536_p1 = scmp.lt.s32.totalorder %s10534_s24, %s10528_s25 }
 0x5d1   : > { %p10537_p3 = por %p10536_p1, %p10535_p0 }
 0x5d3   : > { %p10538_p2 = pnand %p10537_p3, %p10531_p11 }
 0x5d5   : > { %10541 = shalt.err (!%p10538_p2)
}
 0x5d6   : > { %s10542_s26 = scalar_lea.hbm %s12161_s14, 256  ;;  %s10546_s22 = scalar_lea.hbm %s12248_s11, 512 }
 0x5d7   : > { %p10543_p4 = scmp.ne.s32.totalorder %s12161_s14, %s10542_s26  ;;  %p10547_p6 = scmp.lt.s32.totalorder %s12161_s14, %s12248_s11 }
 0x5d8   : > { %p10548_p9 = scmp.lt.s32.totalorder %s10546_s22, %s10542_s26 }
 0x5d9   : > { %p10544_p13 = pnand %p10543_p4, %p10741_p5 }
 0x5da   : > { %p10549_p10 = por %p10548_p9, %p10547_p6 }
 0x5db   : > { %p10545_p7 = pneg %p10544_p13 }
 0x5dd   : > { %p10550_p12 = pnand %p10549_p10, %p10545_p7 }
 0x5df   : > { %10553 = shalt.err (!%p10550_p12)
}
 0x5e0   : > { %s10638_s3 = smov 128   ;;  %s10639_s25 = smov 8   ;;  %v7637_v26 = vld [vmem:[%s12245_s8] sm:$0x1] }
 0x5e1   : > { %9957 = dma.vmem_to_hbm [thread:$0]  (%p10741_p5), %s12155_s12, 256, %s12161_s14, %s12134_s15, %s10638_s3, %s10638_s3, %s10639_s25  }
 0x5e2   : > { %s412_s24 = scalar_lea.vmem [#allocation9], %s11896_s29  ;;  %s12318_s13 = sshll.u32 %s10722_s21, 4 }
 0x5e3   : > { %s7749_s26 = sshll.u32 %s412_s24, 4  ;;  %s12193_s0 = scalar_lea.hbm %s12246_s9, %s12318_s13  ;;  %s12195_s26 = int_to_ptr.vmem [resolvable:$true] %s7749_s26 }
 0x5e4   : > { %s7728_s12 = scalar_lea.sflag [#allocation6], %s11896_s29  ;;  %s10554_s15 = scalar_lea.vmem %s12195_s26, 16 }
 0x5e5   : > { %p10555_p8 = scmp.ne.s32.totalorder %s12195_s26, %s10554_s15  ;;  %s10640_s21 = smov [#allocation9]  }
 0x5e6   : > { %s10558_s14 = sshll.u32 %s10640_s21, 4  ;;  %s10559_s14 = int_to_ptr.vmem [resolvable:$false] %s10558_s14 }
 0x5e7   : > { %p10556_p11 = pnand %p10555_p8, %p10741_p5  ;;  %s10560_s2 = scalar_lea.vmem %s10559_s14, 32 }
 0x5e8   : > { %p10561_p1 = scmp.lt.s32.totalorder %s12195_s26, %s10559_s14  ;;  %p10562_p3 = scmp.lt.s32.totalorder %s10560_s2, %s10554_s15 }
 0x5e9   : > { %p10557_p0 = pneg %p10556_p11 }
 0x5ea   : > { %p10563_p2 = por %p10562_p3, %p10561_p1 }
 0x5ec   : > { %p10564_p4 = pnand %p10563_p2, %p10557_p0 }
 0x67d   : > { %v7720_v19 = vpop.f32.mrf.mxu1 }
 0x67e   : > { %v7721_v40 = vadd.f32 %v7720_v19, %v7637_v26 }
 0x67f   : > { %v9945_v13 = vpop.f32.mrf.mxu1 }
 0x680   : > { %7726 = vst [vmem:[%s412_s24] sm:$0x1] %v7721_v40 }
 0x681   : > { %v7723_v58 = vpop.f32.mrf.mxu1 }
 0x682   : > { %10567 = shalt.err (!%p10564_p4)
}
 0x683   : > { %s10568_s3 = scalar_lea.hbm %s12193_s0, 16  ;;  %s10572_s30 = scalar_lea.hbm %s12246_s9, 32 }
 0x684   : > { %p10569_p13 = scmp.ne.s32.totalorder %s12193_s0, %s10568_s3  ;;  %p10573_p9 = scmp.lt.s32.totalorder %s12193_s0, %s12246_s9 }
 0x685   : > { %p10574_p10 = scmp.lt.s32.totalorder %s10572_s30, %s10568_s3 }
 0x686   : > { %p10570_p7 = pnand %p10569_p13, %p10741_p5 }
 0x687   : > { %p10575_p12 = por %p10574_p10, %p10573_p9 }
 0x688   : > { %p10571_p6 = pneg %p10570_p7 }
 0x68a   : > { %p10576_p8 = pnand %p10575_p12, %p10571_p6 }
 0x68c   : > { %10579 = shalt.err (!%p10576_p8)
}
 0x68d   : > { %9955 = dma.vmem_to_hbm [thread:$0]  (%p10741_p5), %s12195_s26, 16, %s12193_s0, %s7728_s12   ;;  %v9946_v51 = vpop.f32.mrf.mxu1 }
 0x68e PF: > { %p9982_p11 = scmp.ge.s32.totalorder %s10626_s20, 2  ;;  %s7790_s13 = sand.u32 1, %s10614_s17  }
 0x68f   : > { %p12319_p0 = scmp.ne.s32.totalorder %s12265_s28, 0  ;;  %s7791_s1 = scalar_lea.sflag [#allocation6], %s7790_s13 }
 0x691   : > { %p9969_p1 = pnand %p9982_p11, %p12319_p0 }
 0x693   : > { %p9970_p3 = pneg %p9969_p1 }
 0x695   : > { %10605 = dma.done.wait (%p9970_p3), %s7791_s1, 16  }
 0x696   : > { %10607 = vsyncadd (%p9970_p3), %s7791_s1, 4294967280  ;;  %s12320_s22 = sadd.s32 4294967294, %s10626_s20  }
 0x697   : > { %s7798_s15 = sand.u32 1, %s12320_s22  }
 0x698   : > { %s7799_s27 = scalar_lea.sflag [#allocation11], %s7798_s15 }
 0x699   : > { %10609 = dma.done.wait (%p9970_p3), %s7799_s27, 272  }
 0x69a   : > { %10611 = vsyncadd (%p9970_p3), %s7799_s27, 4294967024  ;;  %s12321_s26 = sld [smem:[#allocation17_spill]]  ;;  %p27_p5 = scmp.ge.s32.totalorder %s10726_s23, 4  }
 0x69b   : > { %s12322_s17 = smov %s10618_s18  ;;  %s12323_s18 = smov %s10622_s19 }
 0x69c   : > { %s12325_s20 = smov %s10726_s23  ;;  %29 = sbr.rel (!%p27_p5) target bundleno = 12 (0xc), region = 155 }
 0x6a0   : > { %s12324_s19 = smov %s12321_s26 }
 0x6a1   :  { %7812 = vsyncpa [#allocation5], 1 }
 0x6a2   :  { %7814 = vsyncpa [#allocation5 + $0x1], 1 }
 0x6a3   :  { %7815 = vsyncpa [#allocation8], 1 }
 0x6a4   :  { %7816 = vsyncpa [#allocation6], 1 }
 0x6a5   :  { %7818 = vsyncpa [#allocation6 + $0x1], 1 }
 0x6a6   :  { %7819 = vsyncpa [#allocation11], 1 }
 0x6a7   :  { %7821 = vsyncpa [#allocation11 + $0x1], 1 }

</bundles_post_ra>
